<compile_context>
chip_gen: v7x
topology: tpu7x:2x2x1
jax: 0.10.0
libtpu: 0.0.40
codegen_flags: <defaults>
</compile_context>

<pallas_src>
import functools

import jax
import jax.numpy as jnp
from jax.experimental import pallas as pl
from jax.experimental.pallas import tpu as pltpu


# ---------------------------------------------------------------------------
# Kernels
# ---------------------------------------------------------------------------

def _conv3x3_stage_kernel(x_ref, w_ref, sc_ref, sh_ref,
                          out_ref, sum_ref, sumsq_ref, xpad_ref,
                          *, apply_pre_affine_relu):
    """One DoubleConv stage: [optional BN-affine + ReLU] -> 3x3 conv -> partial stats.

    x_ref:     [1, H, W, Ci]   stage input (NHWC, one image per grid step)
    w_ref:     [9, Ci, Co]     conv taps, tap index t = kh*3 + kw
    sc_ref:    [1, Ci]         per-channel scale of the previous BN (stage 2 only)
    sh_ref:    [1, Ci]         per-channel shift of the previous BN (stage 2 only)
    out_ref:   [1, H, W, Co]   raw conv output (pre-BN)
    sum_ref:   [1, 1, Co]      per-image per-channel sum of the conv output
    sumsq_ref: [1, 1, Co]      per-image per-channel sum of squares
    xpad_ref:  [H+2, W+2, Ci]  VMEM scratch holding the zero-padded stage input
    """
    _, H, W, Ci = x_ref.shape
    Co = w_ref.shape[-1]

    x = x_ref[0].astype(jnp.float32)                          # (H, W, Ci)
    if apply_pre_affine_relu:
        # Fused BatchNorm (as per-channel affine) + ReLU of the previous stage.
        x = jnp.maximum(x * sc_ref[...] + sh_ref[...], 0.0)

    # Zero-pad (padding=1) into VMEM scratch; no extra HBM traffic.
    xpad_ref[...] = jnp.zeros_like(xpad_ref)
    xpad_ref[1:H + 1, 1:W + 1, :] = x

    # 3x3 conv as 9 shifted [H*W, Ci] @ [Ci, Co] matmuls (MXU, f32 accumulate).
    acc = jnp.zeros((H * W, Co), jnp.float32)
    for kh in range(3):
        for kw in range(3):
            patch = xpad_ref[kh:kh + H, kw:kw + W, :]          # (H, W, Ci)
            acc = acc + jnp.dot(patch.reshape(H * W, Ci),
                                w_ref[kh * 3 + kw],
                                preferred_element_type=jnp.float32)

    out_ref[0] = acc.reshape(H, W, Co)
    # Partial BatchNorm statistics (finished with a tiny [N, C] reduction outside).
    sum_ref[0] = jnp.sum(acc, axis=0, keepdims=True)
    sumsq_ref[0] = jnp.sum(acc * acc, axis=0, keepdims=True)


def _affine_relu_kernel(x_ref, sc_ref, sh_ref, o_ref):
    """Final BatchNorm-affine + ReLU (elementwise)."""
    o_ref[...] = jnp.maximum(x_ref[...] * sc_ref[...] + sh_ref[...], 0.0
                             ).astype(o_ref.dtype)


# ---------------------------------------------------------------------------
# Wrappers
# ---------------------------------------------------------------------------

def _vmem_limit_bytes(n_bytes):
    # Generous headroom for double-buffering, but stay well inside v7x's
    # 64 MiB physical VMEM (feedback: budget <= ~48 MiB there).
    return int(min(max(4 * n_bytes, 8 * 1024 * 1024), 48 * 1024 * 1024))


def _conv_stage(x_nhwc, w_taps, pre_scale, pre_shift, *, apply_pre):
    """Runs one conv stage. Returns (conv_out, per-image sums, per-image sumsqs)."""
    N, H, W, Ci = x_nhwc.shape
    Co = w_taps.shape[-1]

    kernel = functools.partial(_conv3x3_stage_kernel,
                               apply_pre_affine_relu=apply_pre)

    # Rough VMEM budget: double-buffered in/out blocks + weights + padded scratch
    # (minor dim is padded to 128 lanes by the layout).
    lane = lambda c: max(c, 128)
    blk_bytes = 4 * (H * W * lane(Ci) + H * W * lane(Co) + 2 * lane(Co))
    fixed_bytes = 4 * (9 * Ci * lane(Co) + 2 * lane(Ci)
                       + (H + 2) * (W + 2) * lane(Ci))
    vmem_bytes = 2 * blk_bytes + fixed_bytes

    flops = 2 * N * H * W * 9 * Ci * Co
    bytes_accessed = 4 * (N * H * W * (Ci + Co) + 9 * Ci * Co
                          + 4 * Ci + 2 * N * Co)

    out_shapes = (
        jax.ShapeDtypeStruct((N, H, W, Co), jnp.float32),   # raw conv output
        jax.ShapeDtypeStruct((N, 1, Co), jnp.float32),      # per-image sums
        jax.ShapeDtypeStruct((N, 1, Co), jnp.float32),      # per-image sum of squares
    )

    return pl.pallas_call(
        kernel,
        out_shape=out_shapes,
        grid_spec=pltpu.PrefetchScalarGridSpec(
            num_scalar_prefetch=0,
            grid=(N,),
            in_specs=[
                pl.BlockSpec((1, H, W, Ci), lambda n: (n, 0, 0, 0)),
                pl.BlockSpec((9, Ci, Co), lambda n: (0, 0, 0)),
                pl.BlockSpec((1, Ci), lambda n: (0, 0)),
                pl.BlockSpec((1, Ci), lambda n: (0, 0)),
            ],
            out_specs=(
                pl.BlockSpec((1, H, W, Co), lambda n: (n, 0, 0, 0)),
                pl.BlockSpec((1, 1, Co), lambda n: (n, 0, 0)),
                pl.BlockSpec((1, 1, Co), lambda n: (n, 0, 0)),
            ),
            scratch_shapes=[pltpu.VMEM((H + 2, W + 2, Ci), jnp.float32)],
        ),
        compiler_params=pltpu.CompilerParams(
            dimension_semantics=("parallel",),
            vmem_limit_bytes=_vmem_limit_bytes(vmem_bytes)),
        cost_estimate=pl.CostEstimate(flops=flops, transcendentals=0,
                                      bytes_accessed=bytes_accessed),
    )(x_nhwc.astype(jnp.float32), w_taps.astype(jnp.float32),
      pre_scale.astype(jnp.float32), pre_shift.astype(jnp.float32))


def _affine_relu(x_nhwc, scale, shift, out_dtype):
    N, H, W, C = x_nhwc.shape
    lane_c = max(C, 128)
    vmem_bytes = 4 * (2 * 2 * H * W * lane_c + 4 * lane_c)
    return pl.pallas_call(
        _affine_relu_kernel,
        out_shape=jax.ShapeDtypeStruct((N, H, W, C), out_dtype),
        grid_spec=pltpu.PrefetchScalarGridSpec(
            num_scalar_prefetch=0,
            grid=(N,),
            in_specs=[
                pl.BlockSpec((1, H, W, C), lambda n: (n, 0, 0, 0)),
                pl.BlockSpec((1, C), lambda n: (0, 0)),
                pl.BlockSpec((1, C), lambda n: (0, 0)),
            ],
            out_specs=pl.BlockSpec((1, H, W, C), lambda n: (n, 0, 0, 0)),
        ),
        compiler_params=pltpu.CompilerParams(
            dimension_semantics=("parallel",),
            vmem_limit_bytes=_vmem_limit_bytes(vmem_bytes)),
        cost_estimate=pl.CostEstimate(flops=2 * N * H * W * C, transcendentals=0,
                                      bytes_accessed=4 * (2 * N * H * W * C + 4 * C)),
    )(x_nhwc.astype(jnp.float32),
      scale.reshape(1, C).astype(jnp.float32),
      shift.reshape(1, C).astype(jnp.float32))


def double_conv(x_nchw, w1, gamma1, beta1, w2, gamma2, beta2, *, eps=1e-5):
    """DoubleConv forward (training-mode BatchNorm, i.e. batch statistics).

    x_nchw: [N, Cin, H, W]
    w1:     [Cmid, Cin, 3, 3]  (PyTorch OIHW, bias=False)
    gamma1, beta1: [Cmid]      BatchNorm2d affine params
    w2:     [Cout, Cmid, 3, 3]
    gamma2, beta2: [Cout]
    returns [N, Cout, H, W]
    """
    N, Cin, H, W = x_nchw.shape
    Cmid = w1.shape[0]
    Cout = w2.shape[0]
    count = N * H * W

    # Layout glue: NCHW -> NHWC once; conv taps to [9, Ci, Co] (tap = kh*3 + kw).
    # NOTE: one transpose pair at the boundary is amortized over the whole
    # fused DoubleConv (2 convs + 2 BN + 2 ReLU).
    x_nhwc = jnp.transpose(x_nchw, (0, 2, 3, 1))
    w1_t = jnp.transpose(w1, (2, 3, 1, 0)).reshape(9, Cin, Cmid)
    w2_t = jnp.transpose(w2, (2, 3, 1, 0)).reshape(9, Cmid, Cout)

    def finish_bn_stats(sums, sumsqs, gamma, beta):
        mean = jnp.sum(sums, axis=(0, 1)) / count
        var = jnp.maximum(jnp.sum(sumsqs, axis=(0, 1)) / count - mean * mean, 0.0)
        scale = gamma / jnp.sqrt(var + eps)
        shift = beta - mean * scale
        return scale.reshape(1, -1), shift.reshape(1, -1)

    ones = jnp.ones((1, Cin), jnp.float32)
    zeros = jnp.zeros((1, Cin), jnp.float32)

    # Stage 1: conv1 + partial BN1 stats.
    conv1, s1, ss1 = _conv_stage(x_nhwc, w1_t, ones, zeros, apply_pre=False)
    scale1, shift1 = finish_bn_stats(s1, ss1, gamma1, beta1)

    # Stage 2: BN1-affine + ReLU fused with conv2, + partial BN2 stats.
    conv2, s2, ss2 = _conv_stage(conv1, w2_t, scale1, shift1, apply_pre=True)
    scale2, shift2 = finish_bn_stats(s2, ss2, gamma2, beta2)

    # Stage 3: BN2-affine + ReLU.
    y_nhwc = _affine_relu(conv2, scale2, shift2, x_nchw.dtype)

    # Layout glue back to NCHW.
    return jnp.transpose(y_nhwc, (0, 3, 1, 2))


# ---------------------------------------------------------------------------
# Demo / correctness check
# ---------------------------------------------------------------------------

if __name__ == "__main__":
    key = jax.random.PRNGKey(0)
    kx, kw1, kw2, kg1, kb1, kg2, kb2 = jax.random.split(key, 7)

    N, Cin, Cmid, Cout, H, W = 2, 4, 8, 8, 16, 16

    x = jax.random.normal(kx, (N, Cin, H, W), dtype=jnp.float32)

    def conv_init(k, co, ci):
        bound = 1.0 / (ci * 9) ** 0.5
        return jax.random.uniform(k, (co, ci, 3, 3), jnp.float32,
                                  minval=-bound, maxval=bound)

    w1 = conv_init(kw1, Cmid, Cin)
    w2 = conv_init(kw2, Cout, Cmid)
    gamma1 = jax.random.uniform(kg1, (Cmid,), jnp.float32, minval=0.5, maxval=1.5)
    beta1 = 0.1 * jax.random.normal(kb1, (Cmid,), jnp.float32)
    gamma2 = jax.random.uniform(kg2, (Cout,), jnp.float32, minval=0.5, maxval=1.5)
    beta2 = 0.1 * jax.random.normal(kb2, (Cout,), jnp.float32)

    y = jax.jit(double_conv)(x, w1, gamma1, beta1, w2, gamma2, beta2)
    y = jax.block_until_ready(y)

    # Plain-JAX reference: (Conv3x3 -> BatchNorm(train) -> ReLU) x 2.
    def ref_double_conv(x, w1, g1, b1, w2, g2, b2, eps=1e-5):
        def conv3x3(z, w):
            return jax.lax.conv_general_dilated(
                z, w, window_strides=(1, 1), padding=((1, 1), (1, 1)),
                dimension_numbers=("NCHW", "OIHW", "NCHW"))

        def bn_relu(z, g, b):
            mean = jnp.mean(z, axis=(0, 2, 3), keepdims=True)
            var = jnp.var(z, axis=(0, 2, 3), keepdims=True)   # biased, as PyTorch
            zn = (z - mean) / jnp.sqrt(var + eps)
            return jnp.maximum(zn * g.reshape(1, -1, 1, 1)
                               + b.reshape(1, -1, 1, 1), 0.0)

        h = bn_relu(conv3x3(x, w1), g1, b1)
        return bn_relu(conv3x3(h, w2), g2, b2)

    ref = ref_double_conv(x, w1, gamma1, beta1, w2, gamma2, beta2)
    assert y.shape == (N, Cout, H, W)
    max_err = float(jnp.max(jnp.abs(y - ref)))
    assert jnp.allclose(y, ref, atol=2e-3, rtol=2e-3), f"max abs err {max_err}"

    print("KERNEL_OK")
</pallas_src>

<mosaic_0001>
module attributes {stable_mosaic.version = 11 : i64} {
  func.func @_conv3x3_stage_kernel(%arg0: i32, %arg1: memref<1x16x16x4xf32, #tpu.memory_space<vmem>>, %arg2: memref<9x4x8xf32, #tpu.memory_space<vmem>>, %arg3: memref<1x4xf32, #tpu.memory_space<vmem>>, %arg4: memref<1x4xf32, #tpu.memory_space<vmem>>, %arg5: memref<1x16x16x8xf32, #tpu.memory_space<vmem>>, %arg6: memref<1x1x8xf32, #tpu.memory_space<vmem>>, %arg7: memref<1x1x8xf32, #tpu.memory_space<vmem>>, %arg8: memref<18x18x4xf32, #tpu.memory_space<vmem>>) attributes {dimension_semantics = [#tpu.dimension_semantics<parallel>], iteration_bounds = array<i64: 2>, scalar_prefetch = 0 : i64, scratch_operands = 1 : i64, tpu.core_type = #tpu.core_type<tc>, window_params = [{transform_indices = @transform_0, window_bounds = array<i64: 1, 16, 16, 4>}, {pipeline_mode = #tpu.pipeline_mode<synchronous>, transform_indices = @transform_1, window_bounds = array<i64: 9, 4, 8>}, {pipeline_mode = #tpu.pipeline_mode<synchronous>, transform_indices = @transform_2, window_bounds = array<i64: 1, 4>}, {pipeline_mode = #tpu.pipeline_mode<synchronous>, transform_indices = @transform_3, window_bounds = array<i64: 1, 4>}, {transform_indices = @transform_4, window_bounds = array<i64: 1, 16, 16, 8>}, {transform_indices = @transform_5, window_bounds = array<i64: 1, 1, 8>}, {transform_indices = @transform_6, window_bounds = array<i64: 1, 1, 8>}]} {
    %c0 = arith.constant 0 : index
    %c0_0 = arith.constant 0 : index
    %c0_1 = arith.constant 0 : index
    %c0_2 = arith.constant 0 : index
    %0 = vector.load %arg1[%c0, %c0_0, %c0_1, %c0_2] : memref<1x16x16x4xf32, #tpu.memory_space<vmem>>, vector<1x16x16x4xf32>
    %1 = vector.shape_cast %0 : vector<1x16x16x4xf32> to vector<16x16x4xf32>
    %cst = arith.constant 0.000000e+00 : f32
    %2 = vector.broadcast %cst : f32 to vector<18x18x4xf32>
    %c0_3 = arith.constant 0 : index
    %c0_4 = arith.constant 0 : index
    %c0_5 = arith.constant 0 : index
    %3 = vector.load %arg8[%c0_3, %c0_4, %c0_5] : memref<18x18x4xf32, #tpu.memory_space<vmem>>, vector<18x18x4xf32>
    tpu.vector_store %arg8[%c0_3, %c0_4, %c0_5], %2 {strides = array<i32>} : memref<18x18x4xf32, #tpu.memory_space<vmem>>, vector<18x18x4xf32>,
    %c1 = arith.constant 1 : index
    %c1_6 = arith.constant 1 : index
    %c0_7 = arith.constant 0 : index
    %4 = vector.load %arg8[%c1, %c1_6, %c0_7] : memref<18x18x4xf32, #tpu.memory_space<vmem>>, vector<16x16x4xf32>
    tpu.vector_store %arg8[%c1, %c1_6, %c0_7], %1 {strides = array<i32>} : memref<18x18x4xf32, #tpu.memory_space<vmem>>, vector<16x16x4xf32>,
    %cst_8 = arith.constant 0.000000e+00 : f32
    %5 = vector.broadcast %cst_8 : f32 to vector<256x8xf32>
    %c0_9 = arith.constant 0 : index
    %c0_10 = arith.constant 0 : index
    %c0_11 = arith.constant 0 : index
    %6 = vector.load %arg8[%c0_9, %c0_10, %c0_11] : memref<18x18x4xf32, #tpu.memory_space<vmem>>, vector<16x16x4xf32>
    %7 = vector.shape_cast %6 : vector<16x16x4xf32> to vector<256x4xf32>
    %c0_12 = arith.constant 0 : index
    %c0_13 = arith.constant 0 : index
    %c0_14 = arith.constant 0 : index
    %8 = vector.load %arg2[%c0_12, %c0_13, %c0_14] : memref<9x4x8xf32, #tpu.memory_space<vmem>>, vector<1x4x8xf32>
    %9 = vector.shape_cast %8 : vector<1x4x8xf32> to vector<4x8xf32>
    %cst_15 = arith.constant dense<0.000000e+00> : vector<256x8xf32>
    %10 = tpu.matmul %7, %9, %cst_15 {dimension_numbers = #tpu.dot_dimension_numbers<[1], [0], [0], [1], [0, 0, 1, 1], [], []>} : vector<256x4xf32>, vector<4x8xf32>, vector<256x8xf32> -> vector<256x8xf32>
    %11 = arith.addf %5, %10 : vector<256x8xf32>
    %c0_16 = arith.constant 0 : index
    %c1_17 = arith.constant 1 : index
    %c0_18 = arith.constant 0 : index
    %12 = vector.load %arg8[%c0_16, %c1_17, %c0_18] : memref<18x18x4xf32, #tpu.memory_space<vmem>>, vector<16x16x4xf32>
    %13 = vector.shape_cast %12 : vector<16x16x4xf32> to vector<256x4xf32>
    %c1_19 = arith.constant 1 : index
    %c0_20 = arith.constant 0 : index
    %c0_21 = arith.constant 0 : index
    %14 = vector.load %arg2[%c1_19, %c0_20, %c0_21] : memref<9x4x8xf32, #tpu.memory_space<vmem>>, vector<1x4x8xf32>
    %15 = vector.shape_cast %14 : vector<1x4x8xf32> to vector<4x8xf32>
    %cst_22 = arith.constant dense<0.000000e+00> : vector<256x8xf32>
    %16 = tpu.matmul %13, %15, %cst_22 {dimension_numbers = #tpu.dot_dimension_numbers<[1], [0], [0], [1], [0, 0, 1, 1], [], []>} : vector<256x4xf32>, vector<4x8xf32>, vector<256x8xf32> -> vector<256x8xf32>
    %17 = arith.addf %11, %16 : vector<256x8xf32>
    %c0_23 = arith.constant 0 : index
    %c2 = arith.constant 2 : index
    %c0_24 = arith.constant 0 : index
    %18 = vector.load %arg8[%c0_23, %c2, %c0_24] : memref<18x18x4xf32, #tpu.memory_space<vmem>>, vector<16x16x4xf32>
    %19 = vector.shape_cast %18 : vector<16x16x4xf32> to vector<256x4xf32>
    %c2_25 = arith.constant 2 : index
    %c0_26 = arith.constant 0 : index
    %c0_27 = arith.constant 0 : index
    %20 = vector.load %arg2[%c2_25, %c0_26, %c0_27] : memref<9x4x8xf32, #tpu.memory_space<vmem>>, vector<1x4x8xf32>
    %21 = vector.shape_cast %20 : vector<1x4x8xf32> to vector<4x8xf32>
    %cst_28 = arith.constant dense<0.000000e+00> : vector<256x8xf32>
    %22 = tpu.matmul %19, %21, %cst_28 {dimension_numbers = #tpu.dot_dimension_numbers<[1], [0], [0], [1], [0, 0, 1, 1], [], []>} : vector<256x4xf32>, vector<4x8xf32>, vector<256x8xf32> -> vector<256x8xf32>
    %23 = arith.addf %17, %22 : vector<256x8xf32>
    %c1_29 = arith.constant 1 : index
    %c0_30 = arith.constant 0 : index
    %c0_31 = arith.constant 0 : index
    %24 = vector.load %arg8[%c1_29, %c0_30, %c0_31] : memref<18x18x4xf32, #tpu.memory_space<vmem>>, vector<16x16x4xf32>
    %25 = vector.shape_cast %24 : vector<16x16x4xf32> to vector<256x4xf32>
    %c3 = arith.constant 3 : index
    %c0_32 = arith.constant 0 : index
    %c0_33 = arith.constant 0 : index
    %26 = vector.load %arg2[%c3, %c0_32, %c0_33] : memref<9x4x8xf32, #tpu.memory_space<vmem>>, vector<1x4x8xf32>
    %27 = vector.shape_cast %26 : vector<1x4x8xf32> to vector<4x8xf32>
    %cst_34 = arith.constant dense<0.000000e+00> : vector<256x8xf32>
    %28 = tpu.matmul %25, %27, %cst_34 {dimension_numbers = #tpu.dot_dimension_numbers<[1], [0], [0], [1], [0, 0, 1, 1], [], []>} : vector<256x4xf32>, vector<4x8xf32>, vector<256x8xf32> -> vector<256x8xf32>
    %29 = arith.addf %23, %28 : vector<256x8xf32>
    %c1_35 = arith.constant 1 : index
    %c1_36 = arith.constant 1 : index
    %c0_37 = arith.constant 0 : index
    %30 = vector.load %arg8[%c1_35, %c1_36, %c0_37] : memref<18x18x4xf32, #tpu.memory_space<vmem>>, vector<16x16x4xf32>
    %31 = vector.shape_cast %30 : vector<16x16x4xf32> to vector<256x4xf32>
    %c4 = arith.constant 4 : index
    %c0_38 = arith.constant 0 : index
    %c0_39 = arith.constant 0 : index
    %32 = vector.load %arg2[%c4, %c0_38, %c0_39] : memref<9x4x8xf32, #tpu.memory_space<vmem>>, vector<1x4x8xf32>
    %33 = vector.shape_cast %32 : vector<1x4x8xf32> to vector<4x8xf32>
    %cst_40 = arith.constant dense<0.000000e+00> : vector<256x8xf32>
    %34 = tpu.matmul %31, %33, %cst_40 {dimension_numbers = #tpu.dot_dimension_numbers<[1], [0], [0], [1], [0, 0, 1, 1], [], []>} : vector<256x4xf32>, vector<4x8xf32>, vector<256x8xf32> -> vector<256x8xf32>
    %35 = arith.addf %29, %34 : vector<256x8xf32>
    %c1_41 = arith.constant 1 : index
    %c2_42 = arith.constant 2 : index
    %c0_43 = arith.constant 0 : index
    %36 = vector.load %arg8[%c1_41, %c2_42, %c0_43] : memref<18x18x4xf32, #tpu.memory_space<vmem>>, vector<16x16x4xf32>
    %37 = vector.shape_cast %36 : vector<16x16x4xf32> to vector<256x4xf32>
    %c5 = arith.constant 5 : index
    %c0_44 = arith.constant 0 : index
    %c0_45 = arith.constant 0 : index
    %38 = vector.load %arg2[%c5, %c0_44, %c0_45] : memref<9x4x8xf32, #tpu.memory_space<vmem>>, vector<1x4x8xf32>
    %39 = vector.shape_cast %38 : vector<1x4x8xf32> to vector<4x8xf32>
    %cst_46 = arith.constant dense<0.000000e+00> : vector<256x8xf32>
    %40 = tpu.matmul %37, %39, %cst_46 {dimension_numbers = #tpu.dot_dimension_numbers<[1], [0], [0], [1], [0, 0, 1, 1], [], []>} : vector<256x4xf32>, vector<4x8xf32>, vector<256x8xf32> -> vector<256x8xf32>
    %41 = arith.addf %35, %40 : vector<256x8xf32>
    %c2_47 = arith.constant 2 : index
    %c0_48 = arith.constant 0 : index
    %c0_49 = arith.constant 0 : index
    %42 = vector.load %arg8[%c2_47, %c0_48, %c0_49] : memref<18x18x4xf32, #tpu.memory_space<vmem>>, vector<16x16x4xf32>
    %43 = vector.shape_cast %42 : vector<16x16x4xf32> to vector<256x4xf32>
    %c6 = arith.constant 6 : index
    %c0_50 = arith.constant 0 : index
    %c0_51 = arith.constant 0 : index
    %44 = vector.load %arg2[%c6, %c0_50, %c0_51] : memref<9x4x8xf32, #tpu.memory_space<vmem>>, vector<1x4x8xf32>
    %45 = vector.shape_cast %44 : vector<1x4x8xf32> to vector<4x8xf32>
    %cst_52 = arith.constant dense<0.000000e+00> : vector<256x8xf32>
    %46 = tpu.matmul %43, %45, %cst_52 {dimension_numbers = #tpu.dot_dimension_numbers<[1], [0], [0], [1], [0, 0, 1, 1], [], []>} : vector<256x4xf32>, vector<4x8xf32>, vector<256x8xf32> -> vector<256x8xf32>
    %47 = arith.addf %41, %46 : vector<256x8xf32>
    %c2_53 = arith.constant 2 : index
    %c1_54 = arith.constant 1 : index
    %c0_55 = arith.constant 0 : index
    %48 = vector.load %arg8[%c2_53, %c1_54, %c0_55] : memref<18x18x4xf32, #tpu.memory_space<vmem>>, vector<16x16x4xf32>
    %49 = vector.shape_cast %48 : vector<16x16x4xf32> to vector<256x4xf32>
    %c7 = arith.constant 7 : index
    %c0_56 = arith.constant 0 : index
    %c0_57 = arith.constant 0 : index
    %50 = vector.load %arg2[%c7, %c0_56, %c0_57] : memref<9x4x8xf32, #tpu.memory_space<vmem>>, vector<1x4x8xf32>
    %51 = vector.shape_cast %50 : vector<1x4x8xf32> to vector<4x8xf32>
    %cst_58 = arith.constant dense<0.000000e+00> : vector<256x8xf32>
    %52 = tpu.matmul %49, %51, %cst_58 {dimension_numbers = #tpu.dot_dimension_numbers<[1], [0], [0], [1], [0, 0, 1, 1], [], []>} : vector<256x4xf32>, vector<4x8xf32>, vector<256x8xf32> -> vector<256x8xf32>
    %53 = arith.addf %47, %52 : vector<256x8xf32>
    %c2_59 = arith.constant 2 : index
    %c2_60 = arith.constant 2 : index
    %c0_61 = arith.constant 0 : index
    %54 = vector.load %arg8[%c2_59, %c2_60, %c0_61] : memref<18x18x4xf32, #tpu.memory_space<vmem>>, vector<16x16x4xf32>
    %55 = vector.shape_cast %54 : vector<16x16x4xf32> to vector<256x4xf32>
    %c8 = arith.constant 8 : index
    %c0_62 = arith.constant 0 : index
    %c0_63 = arith.constant 0 : index
    %56 = vector.load %arg2[%c8, %c0_62, %c0_63] : memref<9x4x8xf32, #tpu.memory_space<vmem>>, vector<1x4x8xf32>
    %57 = vector.shape_cast %56 : vector<1x4x8xf32> to vector<4x8xf32>
    %cst_64 = arith.constant dense<0.000000e+00> : vector<256x8xf32>
    %58 = tpu.matmul %55, %57, %cst_64 {dimension_numbers = #tpu.dot_dimension_numbers<[1], [0], [0], [1], [0, 0, 1, 1], [], []>} : vector<256x4xf32>, vector<4x8xf32>, vector<256x8xf32> -> vector<256x8xf32>
    %59 = arith.addf %53, %58 : vector<256x8xf32>
    %60 = vector.shape_cast %59 : vector<256x8xf32> to vector<16x16x8xf32>
    %c0_65 = arith.constant 0 : index
    %c0_66 = arith.constant 0 : index
    %c0_67 = arith.constant 0 : index
    %c0_68 = arith.constant 0 : index
    %61 = vector.load %arg5[%c0_65, %c0_66, %c0_67, %c0_68] : memref<1x16x16x8xf32, #tpu.memory_space<vmem>>, vector<1x16x16x8xf32>
    %62 = vector.shape_cast %61 : vector<1x16x16x8xf32> to vector<16x16x8xf32>
    %63 = vector.shape_cast %60 : vector<16x16x8xf32> to vector<1x16x16x8xf32>
    tpu.vector_store %arg5[%c0_65, %c0_66, %c0_67, %c0_68], %63 {strides = array<i32>} : memref<1x16x16x8xf32, #tpu.memory_space<vmem>>, vector<1x16x16x8xf32>,
    %cst_69 = arith.constant dense<0.000000e+00> : vector<8xf32>
    %64 = vector.multi_reduction <add>, %59, %cst_69 [0] : vector<256x8xf32> to vector<8xf32>
    %65 = vector.shape_cast %64 : vector<8xf32> to vector<1x8xf32>
    %c0_70 = arith.constant 0 : index
    %c0_71 = arith.constant 0 : index
    %c0_72 = arith.constant 0 : index
    %66 = vector.load %arg6[%c0_70, %c0_71, %c0_72] : memref<1x1x8xf32, #tpu.memory_space<vmem>>, vector<1x1x8xf32>
    %67 = vector.shape_cast %66 : vector<1x1x8xf32> to vector<1x8xf32>
    %68 = vector.shape_cast %65 : vector<1x8xf32> to vector<1x1x8xf32>
    tpu.vector_store %arg6[%c0_70, %c0_71, %c0_72], %68 {strides = array<i32>} : memref<1x1x8xf32, #tpu.memory_space<vmem>>, vector<1x1x8xf32>,
    %69 = arith.mulf %59, %59 : vector<256x8xf32>
    %cst_73 = arith.constant dense<0.000000e+00> : vector<8xf32>
    %70 = vector.multi_reduction <add>, %69, %cst_73 [0] : vector<256x8xf32> to vector<8xf32>
    %71 = vector.shape_cast %70 : vector<8xf32> to vector<1x8xf32>
    %c0_74 = arith.constant 0 : index
    %c0_75 = arith.constant 0 : index
    %c0_76 = arith.constant 0 : index
    %72 = vector.load %arg7[%c0_74, %c0_75, %c0_76] : memref<1x1x8xf32, #tpu.memory_space<vmem>>, vector<1x1x8xf32>
    %73 = vector.shape_cast %72 : vector<1x1x8xf32> to vector<1x8xf32>
    %74 = vector.shape_cast %71 : vector<1x8xf32> to vector<1x1x8xf32>
    tpu.vector_store %arg7[%c0_74, %c0_75, %c0_76], %74 {strides = array<i32>} : memref<1x1x8xf32, #tpu.memory_space<vmem>>, vector<1x1x8xf32>,
    return
  }
  func.func @transform_0(%arg0: i32) -> (i32, i32, i32, i32) {
    %c0_i32 = arith.constant 0 : i32
    %c0_i32_0 = arith.constant 0 : i32
    %c0_i32_1 = arith.constant 0 : i32
    %c0_i32_2 = arith.constant 0 : i32
    return %arg0, %c0_i32, %c0_i32_0, %c0_i32_1 : i32, i32, i32, i32
  }
  func.func @transform_1(%arg0: i32) -> (i32, i32, i32) {
    %c0_i32 = arith.constant 0 : i32
    %c0_i32_0 = arith.constant 0 : i32
    %c0_i32_1 = arith.constant 0 : i32
    %c0_i32_2 = arith.constant 0 : i32
    return %c0_i32, %c0_i32_0, %c0_i32_1 : i32, i32, i32
  }
  func.func @transform_2(%arg0: i32) -> (i32, i32) {
    %c0_i32 = arith.constant 0 : i32
    %c0_i32_0 = arith.constant 0 : i32
    %c0_i32_1 = arith.constant 0 : i32
    return %c0_i32, %c0_i32_0 : i32, i32
  }
  func.func @transform_3(%arg0: i32) -> (i32, i32) {
    %c0_i32 = arith.constant 0 : i32
    %c0_i32_0 = arith.constant 0 : i32
    %c0_i32_1 = arith.constant 0 : i32
    return %c0_i32, %c0_i32_0 : i32, i32
  }
  func.func @transform_4(%arg0: i32) -> (i32, i32, i32, i32) {
    %c0_i32 = arith.constant 0 : i32
    %c0_i32_0 = arith.constant 0 : i32
    %c0_i32_1 = arith.constant 0 : i32
    %c0_i32_2 = arith.constant 0 : i32
    return %arg0, %c0_i32, %c0_i32_0, %c0_i32_1 : i32, i32, i32, i32
  }
  func.func @transform_5(%arg0: i32) -> (i32, i32, i32) {
    %c0_i32 = arith.constant 0 : i32
    %c0_i32_0 = arith.constant 0 : i32
    %c0_i32_1 = arith.constant 0 : i32
    return %arg0, %c0_i32, %c0_i32_0 : i32, i32, i32
  }
  func.func @transform_6(%arg0: i32) -> (i32, i32, i32) {
    %c0_i32 = arith.constant 0 : i32
    %c0_i32_0 = arith.constant 0 : i32
    %c0_i32_1 = arith.constant 0 : i32
    return %arg0, %c0_i32, %c0_i32_0 : i32, i32, i32
  }
}

module attributes {stable_mosaic.version = 11 : i64} {
  func.func @_affine_relu_kernel(%arg0: i32, %arg1: memref<1x16x16x8xf32, #tpu.memory_space<vmem>>, %arg2: memref<1x8xf32, #tpu.memory_space<vmem>>, %arg3: memref<1x8xf32, #tpu.memory_space<vmem>>, %arg4: memref<1x16x16x8xf32, #tpu.memory_space<vmem>>) attributes {dimension_semantics = [#tpu.dimension_semantics<parallel>], iteration_bounds = array<i64: 2>, scalar_prefetch = 0 : i64, scratch_operands = 0 : i64, tpu.core_type = #tpu.core_type<tc>, window_params = [{transform_indices = @transform_0, window_bounds = array<i64: 1, 16, 16, 8>}, {pipeline_mode = #tpu.pipeline_mode<synchronous>, transform_indices = @transform_1, window_bounds = array<i64: 1, 8>}, {pipeline_mode = #tpu.pipeline_mode<synchronous>, transform_indices = @transform_2, window_bounds = array<i64: 1, 8>}, {transform_indices = @transform_3, window_bounds = array<i64: 1, 16, 16, 8>}]} {
    %c0 = arith.constant 0 : index
    %c0_0 = arith.constant 0 : index
    %c0_1 = arith.constant 0 : index
    %c0_2 = arith.constant 0 : index
    %0 = vector.load %arg1[%c0, %c0_0, %c0_1, %c0_2] : memref<1x16x16x8xf32, #tpu.memory_space<vmem>>, vector<1x16x16x8xf32>
    %c0_3 = arith.constant 0 : index
    %c0_4 = arith.constant 0 : index
    %1 = vector.load %arg2[%c0_3, %c0_4] : memref<1x8xf32, #tpu.memory_space<vmem>>, vector<1x8xf32>
    %2 = vector.shape_cast %1 : vector<1x8xf32> to vector<1x1x1x8xf32>
    %3 = vector.broadcast %2 : vector<1x1x1x8xf32> to vector<1x16x16x8xf32>
    %4 = arith.mulf %0, %3 : vector<1x16x16x8xf32>
    %c0_5 = arith.constant 0 : index
    %c0_6 = arith.constant 0 : index
    %5 = vector.load %arg3[%c0_5, %c0_6] : memref<1x8xf32, #tpu.memory_space<vmem>>, vector<1x8xf32>
    %6 = vector.shape_cast %5 : vector<1x8xf32> to vector<1x1x1x8xf32>
    %7 = vector.broadcast %6 : vector<1x1x1x8xf32> to vector<1x16x16x8xf32>
    %8 = arith.addf %4, %7 : vector<1x16x16x8xf32>
    %cst = arith.constant 0.000000e+00 : f32
    %9 = vector.broadcast %cst : f32 to vector<1x16x16x8xf32>
    %10 = arith.maximumf %8, %9 : vector<1x16x16x8xf32>
    %c0_7 = arith.constant 0 : index
    %c0_8 = arith.constant 0 : index
    %c0_9 = arith.constant 0 : index
    %c0_10 = arith.constant 0 : index
    %11 = vector.load %arg4[%c0_7, %c0_8, %c0_9, %c0_10] : memref<1x16x16x8xf32, #tpu.memory_space<vmem>>, vector<1x16x16x8xf32>
    tpu.vector_store %arg4[%c0_7, %c0_8, %c0_9, %c0_10], %10 {strides = array<i32>} : memref<1x16x16x8xf32, #tpu.memory_space<vmem>>, vector<1x16x16x8xf32>,
    return
  }
  func.func @transform_0(%arg0: i32) -> (i32, i32, i32, i32) {
    %c0_i32 = arith.constant 0 : i32
    %c0_i32_0 = arith.constant 0 : i32
    %c0_i32_1 = arith.constant 0 : i32
    %c0_i32_2 = arith.constant 0 : i32
    return %arg0, %c0_i32, %c0_i32_0, %c0_i32_1 : i32, i32, i32, i32
  }
  func.func @transform_1(%arg0: i32) -> (i32, i32) {
    %c0_i32 = arith.constant 0 : i32
    %c0_i32_0 = arith.constant 0 : i32
    %c0_i32_1 = arith.constant 0 : i32
    return %c0_i32, %c0_i32_0 : i32, i32
  }
  func.func @transform_2(%arg0: i32) -> (i32, i32) {
    %c0_i32 = arith.constant 0 : i32
    %c0_i32_0 = arith.constant 0 : i32
    %c0_i32_1 = arith.constant 0 : i32
    return %c0_i32, %c0_i32_0 : i32, i32
  }
  func.func @transform_3(%arg0: i32) -> (i32, i32, i32, i32) {
    %c0_i32 = arith.constant 0 : i32
    %c0_i32_0 = arith.constant 0 : i32
    %c0_i32_1 = arith.constant 0 : i32
    %c0_i32_2 = arith.constant 0 : i32
    return %arg0, %c0_i32, %c0_i32_0, %c0_i32_1 : i32, i32, i32, i32
  }
}

module attributes {stable_mosaic.version = 11 : i64} {
  func.func @_conv3x3_stage_kernel(%arg0: i32, %arg1: memref<1x16x16x8xf32, #tpu.memory_space<vmem>>, %arg2: memref<9x8x8xf32, #tpu.memory_space<vmem>>, %arg3: memref<1x8xf32, #tpu.memory_space<vmem>>, %arg4: memref<1x8xf32, #tpu.memory_space<vmem>>, %arg5: memref<1x16x16x8xf32, #tpu.memory_space<vmem>>, %arg6: memref<1x1x8xf32, #tpu.memory_space<vmem>>, %arg7: memref<1x1x8xf32, #tpu.memory_space<vmem>>, %arg8: memref<18x18x8xf32, #tpu.memory_space<vmem>>) attributes {dimension_semantics = [#tpu.dimension_semantics<parallel>], iteration_bounds = array<i64: 2>, scalar_prefetch = 0 : i64, scratch_operands = 1 : i64, tpu.core_type = #tpu.core_type<tc>, window_params = [{transform_indices = @transform_0, window_bounds = array<i64: 1, 16, 16, 8>}, {pipeline_mode = #tpu.pipeline_mode<synchronous>, transform_indices = @transform_1, window_bounds = array<i64: 9, 8, 8>}, {pipeline_mode = #tpu.pipeline_mode<synchronous>, transform_indices = @transform_2, window_bounds = array<i64: 1, 8>}, {pipeline_mode = #tpu.pipeline_mode<synchronous>, transform_indices = @transform_3, window_bounds = array<i64: 1, 8>}, {transform_indices = @transform_4, window_bounds = array<i64: 1, 16, 16, 8>}, {transform_indices = @transform_5, window_bounds = array<i64: 1, 1, 8>}, {transform_indices = @transform_6, window_bounds = array<i64: 1, 1, 8>}]} {
    %c0 = arith.constant 0 : index
    %c0_0 = arith.constant 0 : index
    %c0_1 = arith.constant 0 : index
    %c0_2 = arith.constant 0 : index
    %0 = vector.load %arg1[%c0, %c0_0, %c0_1, %c0_2] : memref<1x16x16x8xf32, #tpu.memory_space<vmem>>, vector<1x16x16x8xf32>
    %1 = vector.shape_cast %0 : vector<1x16x16x8xf32> to vector<16x16x8xf32>
    %c0_3 = arith.constant 0 : index
    %c0_4 = arith.constant 0 : index
    %2 = vector.load %arg3[%c0_3, %c0_4] : memref<1x8xf32, #tpu.memory_space<vmem>>, vector<1x8xf32>
    %3 = vector.shape_cast %2 : vector<1x8xf32> to vector<1x1x8xf32>
    %4 = vector.broadcast %3 : vector<1x1x8xf32> to vector<16x16x8xf32>
    %5 = arith.mulf %1, %4 : vector<16x16x8xf32>
    %c0_5 = arith.constant 0 : index
    %c0_6 = arith.constant 0 : index
    %6 = vector.load %arg4[%c0_5, %c0_6] : memref<1x8xf32, #tpu.memory_space<vmem>>, vector<1x8xf32>
    %7 = vector.shape_cast %6 : vector<1x8xf32> to vector<1x1x8xf32>
    %8 = vector.broadcast %7 : vector<1x1x8xf32> to vector<16x16x8xf32>
    %9 = arith.addf %5, %8 : vector<16x16x8xf32>
    %cst = arith.constant 0.000000e+00 : f32
    %10 = vector.broadcast %cst : f32 to vector<16x16x8xf32>
    %11 = arith.maximumf %9, %10 : vector<16x16x8xf32>
    %cst_7 = arith.constant 0.000000e+00 : f32
    %12 = vector.broadcast %cst_7 : f32 to vector<18x18x8xf32>
    %c0_8 = arith.constant 0 : index
    %c0_9 = arith.constant 0 : index
    %c0_10 = arith.constant 0 : index
    %13 = vector.load %arg8[%c0_8, %c0_9, %c0_10] : memref<18x18x8xf32, #tpu.memory_space<vmem>>, vector<18x18x8xf32>
    tpu.vector_store %arg8[%c0_8, %c0_9, %c0_10], %12 {strides = array<i32>} : memref<18x18x8xf32, #tpu.memory_space<vmem>>, vector<18x18x8xf32>,
    %c1 = arith.constant 1 : index
    %c1_11 = arith.constant 1 : index
    %c0_12 = arith.constant 0 : index
    %14 = vector.load %arg8[%c1, %c1_11, %c0_12] : memref<18x18x8xf32, #tpu.memory_space<vmem>>, vector<16x16x8xf32>
    tpu.vector_store %arg8[%c1, %c1_11, %c0_12], %11 {strides = array<i32>} : memref<18x18x8xf32, #tpu.memory_space<vmem>>, vector<16x16x8xf32>,
    %cst_13 = arith.constant 0.000000e+00 : f32
    %15 = vector.broadcast %cst_13 : f32 to vector<256x8xf32>
    %c0_14 = arith.constant 0 : index
    %c0_15 = arith.constant 0 : index
    %c0_16 = arith.constant 0 : index
    %16 = vector.load %arg8[%c0_14, %c0_15, %c0_16] : memref<18x18x8xf32, #tpu.memory_space<vmem>>, vector<16x16x8xf32>
    %17 = vector.shape_cast %16 : vector<16x16x8xf32> to vector<256x8xf32>
    %c0_17 = arith.constant 0 : index
    %c0_18 = arith.constant 0 : index
    %c0_19 = arith.constant 0 : index
    %18 = vector.load %arg2[%c0_17, %c0_18, %c0_19] : memref<9x8x8xf32, #tpu.memory_space<vmem>>, vector<1x8x8xf32>
    %19 = vector.shape_cast %18 : vector<1x8x8xf32> to vector<8x8xf32>
    %cst_20 = arith.constant dense<0.000000e+00> : vector<256x8xf32>
    %20 = tpu.matmul %17, %19, %cst_20 {dimension_numbers = #tpu.dot_dimension_numbers<[1], [0], [0], [1], [0, 0, 1, 1], [], []>} : vector<256x8xf32>, vector<8x8xf32>, vector<256x8xf32> -> vector<256x8xf32>
    %21 = arith.addf %15, %20 : vector<256x8xf32>
    %c0_21 = arith.constant 0 : index
    %c1_22 = arith.constant 1 : index
    %c0_23 = arith.constant 0 : index
    %22 = vector.load %arg8[%c0_21, %c1_22, %c0_23] : memref<18x18x8xf32, #tpu.memory_space<vmem>>, vector<16x16x8xf32>
    %23 = vector.shape_cast %22 : vector<16x16x8xf32> to vector<256x8xf32>
    %c1_24 = arith.constant 1 : index
    %c0_25 = arith.constant 0 : index
    %c0_26 = arith.constant 0 : index
    %24 = vector.load %arg2[%c1_24, %c0_25, %c0_26] : memref<9x8x8xf32, #tpu.memory_space<vmem>>, vector<1x8x8xf32>
    %25 = vector.shape_cast %24 : vector<1x8x8xf32> to vector<8x8xf32>
    %cst_27 = arith.constant dense<0.000000e+00> : vector<256x8xf32>
    %26 = tpu.matmul %23, %25, %cst_27 {dimension_numbers = #tpu.dot_dimension_numbers<[1], [0], [0], [1], [0, 0, 1, 1], [], []>} : vector<256x8xf32>, vector<8x8xf32>, vector<256x8xf32> -> vector<256x8xf32>
    %27 = arith.addf %21, %26 : vector<256x8xf32>
    %c0_28 = arith.constant 0 : index
    %c2 = arith.constant 2 : index
    %c0_29 = arith.constant 0 : index
    %28 = vector.load %arg8[%c0_28, %c2, %c0_29] : memref<18x18x8xf32, #tpu.memory_space<vmem>>, vector<16x16x8xf32>
    %29 = vector.shape_cast %28 : vector<16x16x8xf32> to vector<256x8xf32>
    %c2_30 = arith.constant 2 : index
    %c0_31 = arith.constant 0 : index
    %c0_32 = arith.constant 0 : index
    %30 = vector.load %arg2[%c2_30, %c0_31, %c0_32] : memref<9x8x8xf32, #tpu.memory_space<vmem>>, vector<1x8x8xf32>
    %31 = vector.shape_cast %30 : vector<1x8x8xf32> to vector<8x8xf32>
    %cst_33 = arith.constant dense<0.000000e+00> : vector<256x8xf32>
    %32 = tpu.matmul %29, %31, %cst_33 {dimension_numbers = #tpu.dot_dimension_numbers<[1], [0], [0], [1], [0, 0, 1, 1], [], []>} : vector<256x8xf32>, vector<8x8xf32>, vector<256x8xf32> -> vector<256x8xf32>
    %33 = arith.addf %27, %32 : vector<256x8xf32>
    %c1_34 = arith.constant 1 : index
    %c0_35 = arith.constant 0 : index
    %c0_36 = arith.constant 0 : index
    %34 = vector.load %arg8[%c1_34, %c0_35, %c0_36] : memref<18x18x8xf32, #tpu.memory_space<vmem>>, vector<16x16x8xf32>
    %35 = vector.shape_cast %34 : vector<16x16x8xf32> to vector<256x8xf32>
    %c3 = arith.constant 3 : index
    %c0_37 = arith.constant 0 : index
    %c0_38 = arith.constant 0 : index
    %36 = vector.load %arg2[%c3, %c0_37, %c0_38] : memref<9x8x8xf32, #tpu.memory_space<vmem>>, vector<1x8x8xf32>
    %37 = vector.shape_cast %36 : vector<1x8x8xf32> to vector<8x8xf32>
    %cst_39 = arith.constant dense<0.000000e+00> : vector<256x8xf32>
    %38 = tpu.matmul %35, %37, %cst_39 {dimension_numbers = #tpu.dot_dimension_numbers<[1], [0], [0], [1], [0, 0, 1, 1], [], []>} : vector<256x8xf32>, vector<8x8xf32>, vector<256x8xf32> -> vector<256x8xf32>
    %39 = arith.addf %33, %38 : vector<256x8xf32>
    %c1_40 = arith.constant 1 : index
    %c1_41 = arith.constant 1 : index
    %c0_42 = arith.constant 0 : index
    %40 = vector.load %arg8[%c1_40, %c1_41, %c0_42] : memref<18x18x8xf32, #tpu.memory_space<vmem>>, vector<16x16x8xf32>
    %41 = vector.shape_cast %40 : vector<16x16x8xf32> to vector<256x8xf32>
    %c4 = arith.constant 4 : index
    %c0_43 = arith.constant 0 : index
    %c0_44 = arith.constant 0 : index
    %42 = vector.load %arg2[%c4, %c0_43, %c0_44] : memref<9x8x8xf32, #tpu.memory_space<vmem>>, vector<1x8x8xf32>
    %43 = vector.shape_cast %42 : vector<1x8x8xf32> to vector<8x8xf32>
    %cst_45 = arith.constant dense<0.000000e+00> : vector<256x8xf32>
    %44 = tpu.matmul %41, %43, %cst_45 {dimension_numbers = #tpu.dot_dimension_numbers<[1], [0], [0], [1], [0, 0, 1, 1], [], []>} : vector<256x8xf32>, vector<8x8xf32>, vector<256x8xf32> -> vector<256x8xf32>
    %45 = arith.addf %39, %44 : vector<256x8xf32>
    %c1_46 = arith.constant 1 : index
    %c2_47 = arith.constant 2 : index
    %c0_48 = arith.constant 0 : index
    %46 = vector.load %arg8[%c1_46, %c2_47, %c0_48] : memref<18x18x8xf32, #tpu.memory_space<vmem>>, vector<16x16x8xf32>
    %47 = vector.shape_cast %46 : vector<16x16x8xf32> to vector<256x8xf32>
    %c5 = arith.constant 5 : index
    %c0_49 = arith.constant 0 : index
    %c0_50 = arith.constant 0 : index
    %48 = vector.load %arg2[%c5, %c0_49, %c0_50] : memref<9x8x8xf32, #tpu.memory_space<vmem>>, vector<1x8x8xf32>
    %49 = vector.shape_cast %48 : vector<1x8x8xf32> to vector<8x8xf32>
    %cst_51 = arith.constant dense<0.000000e+00> : vector<256x8xf32>
    %50 = tpu.matmul %47, %49, %cst_51 {dimension_numbers = #tpu.dot_dimension_numbers<[1], [0], [0], [1], [0, 0, 1, 1], [], []>} : vector<256x8xf32>, vector<8x8xf32>, vector<256x8xf32> -> vector<256x8xf32>
    %51 = arith.addf %45, %50 : vector<256x8xf32>
    %c2_52 = arith.constant 2 : index
    %c0_53 = arith.constant 0 : index
    %c0_54 = arith.constant 0 : index
    %52 = vector.load %arg8[%c2_52, %c0_53, %c0_54] : memref<18x18x8xf32, #tpu.memory_space<vmem>>, vector<16x16x8xf32>
    %53 = vector.shape_cast %52 : vector<16x16x8xf32> to vector<256x8xf32>
    %c6 = arith.constant 6 : index
    %c0_55 = arith.constant 0 : index
    %c0_56 = arith.constant 0 : index
    %54 = vector.load %arg2[%c6, %c0_55, %c0_56] : memref<9x8x8xf32, #tpu.memory_space<vmem>>, vector<1x8x8xf32>
    %55 = vector.shape_cast %54 : vector<1x8x8xf32> to vector<8x8xf32>
    %cst_57 = arith.constant dense<0.000000e+00> : vector<256x8xf32>
    %56 = tpu.matmul %53, %55, %cst_57 {dimension_numbers = #tpu.dot_dimension_numbers<[1], [0], [0], [1], [0, 0, 1, 1], [], []>} : vector<256x8xf32>, vector<8x8xf32>, vector<256x8xf32> -> vector<256x8xf32>
    %57 = arith.addf %51, %56 : vector<256x8xf32>
    %c2_58 = arith.constant 2 : index
    %c1_59 = arith.constant 1 : index
    %c0_60 = arith.constant 0 : index
    %58 = vector.load %arg8[%c2_58, %c1_59, %c0_60] : memref<18x18x8xf32, #tpu.memory_space<vmem>>, vector<16x16x8xf32>
    %59 = vector.shape_cast %58 : vector<16x16x8xf32> to vector<256x8xf32>
    %c7 = arith.constant 7 : index
    %c0_61 = arith.constant 0 : index
    %c0_62 = arith.constant 0 : index
    %60 = vector.load %arg2[%c7, %c0_61, %c0_62] : memref<9x8x8xf32, #tpu.memory_space<vmem>>, vector<1x8x8xf32>
    %61 = vector.shape_cast %60 : vector<1x8x8xf32> to vector<8x8xf32>
    %cst_63 = arith.constant dense<0.000000e+00> : vector<256x8xf32>
    %62 = tpu.matmul %59, %61, %cst_63 {dimension_numbers = #tpu.dot_dimension_numbers<[1], [0], [0], [1], [0, 0, 1, 1], [], []>} : vector<256x8xf32>, vector<8x8xf32>, vector<256x8xf32> -> vector<256x8xf32>
    %63 = arith.addf %57, %62 : vector<256x8xf32>
    %c2_64 = arith.constant 2 : index
    %c2_65 = arith.constant 2 : index
    %c0_66 = arith.constant 0 : index
    %64 = vector.load %arg8[%c2_64, %c2_65, %c0_66] : memref<18x18x8xf32, #tpu.memory_space<vmem>>, vector<16x16x8xf32>
    %65 = vector.shape_cast %64 : vector<16x16x8xf32> to vector<256x8xf32>
    %c8 = arith.constant 8 : index
    %c0_67 = arith.constant 0 : index
    %c0_68 = arith.constant 0 : index
    %66 = vector.load %arg2[%c8, %c0_67, %c0_68] : memref<9x8x8xf32, #tpu.memory_space<vmem>>, vector<1x8x8xf32>
    %67 = vector.shape_cast %66 : vector<1x8x8xf32> to vector<8x8xf32>
    %cst_69 = arith.constant dense<0.000000e+00> : vector<256x8xf32>
    %68 = tpu.matmul %65, %67, %cst_69 {dimension_numbers = #tpu.dot_dimension_numbers<[1], [0], [0], [1], [0, 0, 1, 1], [], []>} : vector<256x8xf32>, vector<8x8xf32>, vector<256x8xf32> -> vector<256x8xf32>
    %69 = arith.addf %63, %68 : vector<256x8xf32>
    %70 = vector.shape_cast %69 : vector<256x8xf32> to vector<16x16x8xf32>
    %c0_70 = arith.constant 0 : index
    %c0_71 = arith.constant 0 : index
    %c0_72 = arith.constant 0 : index
    %c0_73 = arith.constant 0 : index
    %71 = vector.load %arg5[%c0_70, %c0_71, %c0_72, %c0_73] : memref<1x16x16x8xf32, #tpu.memory_space<vmem>>, vector<1x16x16x8xf32>
    %72 = vector.shape_cast %71 : vector<1x16x16x8xf32> to vector<16x16x8xf32>
    %73 = vector.shape_cast %70 : vector<16x16x8xf32> to vector<1x16x16x8xf32>
    tpu.vector_store %arg5[%c0_70, %c0_71, %c0_72, %c0_73], %73 {strides = array<i32>} : memref<1x16x16x8xf32, #tpu.memory_space<vmem>>, vector<1x16x16x8xf32>,
    %cst_74 = arith.constant dense<0.000000e+00> : vector<8xf32>
    %74 = vector.multi_reduction <add>, %69, %cst_74 [0] : vector<256x8xf32> to vector<8xf32>
    %75 = vector.shape_cast %74 : vector<8xf32> to vector<1x8xf32>
    %c0_75 = arith.constant 0 : index
    %c0_76 = arith.constant 0 : index
    %c0_77 = arith.constant 0 : index
    %76 = vector.load %arg6[%c0_75, %c0_76, %c0_77] : memref<1x1x8xf32, #tpu.memory_space<vmem>>, vector<1x1x8xf32>
    %77 = vector.shape_cast %76 : vector<1x1x8xf32> to vector<1x8xf32>
    %78 = vector.shape_cast %75 : vector<1x8xf32> to vector<1x1x8xf32>
    tpu.vector_store %arg6[%c0_75, %c0_76, %c0_77], %78 {strides = array<i32>} : memref<1x1x8xf32, #tpu.memory_space<vmem>>, vector<1x1x8xf32>,
    %79 = arith.mulf %69, %69 : vector<256x8xf32>
    %cst_78 = arith.constant dense<0.000000e+00> : vector<8xf32>
    %80 = vector.multi_reduction <add>, %79, %cst_78 [0] : vector<256x8xf32> to vector<8xf32>
    %81 = vector.shape_cast %80 : vector<8xf32> to vector<1x8xf32>
    %c0_79 = arith.constant 0 : index
    %c0_80 = arith.constant 0 : index
    %c0_81 = arith.constant 0 : index
    %82 = vector.load %arg7[%c0_79, %c0_80, %c0_81] : memref<1x1x8xf32, #tpu.memory_space<vmem>>, vector<1x1x8xf32>
    %83 = vector.shape_cast %82 : vector<1x1x8xf32> to vector<1x8xf32>
    %84 = vector.shape_cast %81 : vector<1x8xf32> to vector<1x1x8xf32>
    tpu.vector_store %arg7[%c0_79, %c0_80, %c0_81], %84 {strides = array<i32>} : memref<1x1x8xf32, #tpu.memory_space<vmem>>, vector<1x1x8xf32>,
    return
  }
  func.func @transform_0(%arg0: i32) -> (i32, i32, i32, i32) {
    %c0_i32 = arith.constant 0 : i32
    %c0_i32_0 = arith.constant 0 : i32
    %c0_i32_1 = arith.constant 0 : i32
    %c0_i32_2 = arith.constant 0 : i32
    return %arg0, %c0_i32, %c0_i32_0, %c0_i32_1 : i32, i32, i32, i32
  }
  func.func @transform_1(%arg0: i32) -> (i32, i32, i32) {
    %c0_i32 = arith.constant 0 : i32
    %c0_i32_0 = arith.constant 0 : i32
    %c0_i32_1 = arith.constant 0 : i32
    %c0_i32_2 = arith.constant 0 : i32
    return %c0_i32, %c0_i32_0, %c0_i32_1 : i32, i32, i32
  }
  func.func @transform_2(%arg0: i32) -> (i32, i32) {
    %c0_i32 = arith.constant 0 : i32
    %c0_i32_0 = arith.constant 0 : i32
    %c0_i32_1 = arith.constant 0 : i32
    return %c0_i32, %c0_i32_0 : i32, i32
  }
  func.func @transform_3(%arg0: i32) -> (i32, i32) {
    %c0_i32 = arith.constant 0 : i32
    %c0_i32_0 = arith.constant 0 : i32
    %c0_i32_1 = arith.constant 0 : i32
    return %c0_i32, %c0_i32_0 : i32, i32
  }
  func.func @transform_4(%arg0: i32) -> (i32, i32, i32, i32) {
    %c0_i32 = arith.constant 0 : i32
    %c0_i32_0 = arith.constant 0 : i32
    %c0_i32_1 = arith.constant 0 : i32
    %c0_i32_2 = arith.constant 0 : i32
    return %arg0, %c0_i32, %c0_i32_0, %c0_i32_1 : i32, i32, i32, i32
  }
  func.func @transform_5(%arg0: i32) -> (i32, i32, i32) {
    %c0_i32 = arith.constant 0 : i32
    %c0_i32_0 = arith.constant 0 : i32
    %c0_i32_1 = arith.constant 0 : i32
    return %arg0, %c0_i32, %c0_i32_0 : i32, i32, i32
  }
  func.func @transform_6(%arg0: i32) -> (i32, i32, i32) {
    %c0_i32 = arith.constant 0 : i32
    %c0_i32_0 = arith.constant 0 : i32
    %c0_i32_1 = arith.constant 0 : i32
    return %arg0, %c0_i32, %c0_i32_0 : i32, i32, i32
  }
}

</mosaic_0001>

<bundles_post_ra>
// kernel: double_conv.5
= control target key start
LH: loop header
LB: loop body
LE: loop exit
PB: predicated region body
PF: predicated region fallthrough
CT: control target
= control target key end

     0   :  { %s452_s12 = smov 0   ;;  %s643_s0 = inlined_call_operand.vmem [shape: f32[2,16,16,8], index: 0, kind: input, shape index: {}]   ;;  %s644_s1 = inlined_call_operand.vmem [shape: f32[1,8], index: 1, kind: input, shape index: {}]   ;;  %s645_s2 = inlined_call_operand.vmem [shape: f32[1,8], index: 2, kind: input, shape index: {}]   ;;  %s646_s3 = inlined_call_operand.vmem [shape: f32[2,16,16,8], index: 3, kind: output, shape index: {}]  }
   0x1 LB: > { %s401_s13 = sadd.s32 4294967295, %s430_s12   ;;  %p405_p0 = scmp.ge.s32.totalorder %s430_s12, 1  ;;  %s430_s12 = sphi %s452_s12, %s13_s12  }
   0x2   : > { %p137_p1 = scmp.lt.s32.totalorder %s430_s12, 3 }
   0x4   : > { %p138_p2 = pnand %p405_p0, %p137_p1 }
   0x5   : > { %p161_p3 = scmp.lt.s32.totalorder (!%p138_p2), %s401_s13, 1  ;;  %v463_v0 = vld [vmem:[%s644_s1] ss:$0 sm:$0xff] (!%p138_p2)  ;;  %vm313_vm0 = vcmask (!%p138_p2), 64512  }
   0x6   : > { %141 = sbr.rel (%p138_p2) target bundleno = 46 (0x2e), region = 32  ;;  %v473_v1 = vld [vmem:[%s645_s2] ss:$0 sm:$0xff] (!%p138_p2) }
   0xd   : > { %s648_s13 = smov (!%p161_p3, %s401_s13), 1 }
   0xe   : > { %s414_s14 = sshll.u32 %s648_s13, 8 }
   0xf   : > { %s468_s19 = scalar_lea.vmem %s643_s0, %s414_s14  ;;  %s496_s24 = scalar_lea.vmem %s646_s3, %s414_s14 }
  0x10   : > { %v171_v2 = vld [vmem:[%s468_s19] sm:$0xff]  ;;  %v172_v3 = vld [vmem:[%s468_s19 + $0x8] sm:$0xff]  ;;  %v173_v4 = vld [vmem:[%s468_s19 + $0x10] sm:$0xff] }
  0x11   : > { %v210_v5 = vmul.f32 %v463_v0, %v171_v2  ;;  %v211_v6 = vmul.f32 %v463_v0, %v172_v3  ;;  %v212_v7 = vmul.f32 %v463_v0, %v173_v4  ;;  %v174_v8 = vld [vmem:[%s468_s19 + $0x18] sm:$0xff]  ;;  %v175_v9 = vld [vmem:[%s468_s19 + $0x20] sm:$0xff]  ;;  %v176_v10 = vld [vmem:[%s468_s19 + $0x28] sm:$0xff] }
  0x12   : > { %v213_v11 = vmul.f32 %v463_v0, %v174_v8  ;;  %v214_v12 = vmul.f32 %v463_v0, %v175_v9  ;;  %v215_v13 = vmul.f32 %v463_v0, %v176_v10  ;;  %v177_v14 = vld [vmem:[%s468_s19 + $0x30] sm:$0xff]  ;;  %v178_v15 = vld [vmem:[%s468_s19 + $0x38] sm:$0xff]  ;;  %v179_v24 = vld [vmem:[%s468_s19 + $0x40] sm:$0xff] }
  0x13   : > { %v249_v16 = vadd.f32 %v473_v1, %v210_v5  ;;  %v250_v17 = vadd.f32 %v473_v1, %v211_v6  ;;  %v251_v18 = vadd.f32 %v473_v1, %v212_v7  ;;  %v216_v19 = vmul.f32 %v463_v0, %v177_v14  ;;  %v180_v25 = vld [vmem:[%s468_s19 + $0x48] sm:$0xff]  ;;  %v181_v26 = vld [vmem:[%s468_s19 + $0x50] sm:$0xff]  ;;  %v182_v31 = vld [vmem:[%s468_s19 + $0x58] sm:$0xff] }
  0x14   : > { %v252_v20 = vadd.f32 %v473_v1, %v213_v11  ;;  %v253_v21 = vadd.f32 %v473_v1, %v214_v12  ;;  %v254_v22 = vadd.f32 %v473_v1, %v215_v13  ;;  %v217_v23 = vmul.f32 %v463_v0, %v178_v15  ;;  %v183_v32 = vld [vmem:[%s468_s19 + $0x60] sm:$0xff]  ;;  %v184_v33 = vld [vmem:[%s468_s19 + $0x68] sm:$0xff]  ;;  %v185_v38 = vld [vmem:[%s468_s19 + $0x70] sm:$0xff] }
  0x15   : > { %v281_v27 = vmax.f32 %v249_v16, 0.0  ;;  %v282_v28 = vmax.f32 %v250_v17, 0.0  ;;  %v283_v29 = vmax.f32 %v251_v18, 0.0  ;;  %v255_v30 = vadd.f32 %v473_v1, %v216_v19  ;;  %v186_v43 = vld [vmem:[%s468_s19 + $0x78] sm:$0xff]  ;;  %v187_v56 = vld [vmem:[%s468_s19 + $0x80] sm:$0xff]  ;;  %v188_v57 = vld [vmem:[%s468_s19 + $0x88] sm:$0xff] }
  0x16   : > { %v284_v34 = vmax.f32 %v252_v20, 0.0  ;;  %v285_v35 = vmax.f32 %v253_v21, 0.0  ;;  %v286_v36 = vmax.f32 %v254_v22, 0.0  ;;  %v256_v37 = vadd.f32 %v473_v1, %v217_v23  ;;  %v189_v58 = vld [vmem:[%s468_s19 + $0x90] sm:$0xff]  ;;  %v190_v63 = vld [vmem:[%s468_s19 + $0x98] sm:$0xff]  ;;  %v191_v2 = vld [vmem:[%s468_s19 + $0xa0] sm:$0xff] }
  0x17   : > { %314 = vst.msk [vmem:[%s496_s24] sm:$0xff] %vm313_vm0, %v281_v27  ;;  %315 = vst.msk [vmem:[%s496_s24 + $0x8] sm:$0xff] %vm313_vm0, %v282_v28  ;;  %v287_v39 = vmax.f32 %v255_v30, 0.0  ;;  %v218_v40 = vmul.f32 %v463_v0, %v179_v24  ;;  %v219_v41 = vmul.f32 %v463_v0, %v180_v25  ;;  %v220_v42 = vmul.f32 %v463_v0, %v181_v26  ;;  %v192_v3 = vld [vmem:[%s468_s19 + $0xa8] sm:$0xff]  ;;  %v193_v8 = vld [vmem:[%s468_s19 + $0xb0] sm:$0xff] }
  0x18   : > { %316 = vst.msk [vmem:[%s496_s24 + $0x10] sm:$0xff] %vm313_vm0, %v283_v29  ;;  %317 = vst.msk [vmem:[%s496_s24 + $0x18] sm:$0xff] %vm313_vm0, %v284_v34  ;;  %v288_v44 = vmax.f32 %v256_v37, 0.0  ;;  %v221_v45 = vmul.f32 %v463_v0, %v182_v31  ;;  %v222_v46 = vmul.f32 %v463_v0, %v183_v32  ;;  %v223_v47 = vmul.f32 %v463_v0, %v184_v33  ;;  %v194_v13 = vld [vmem:[%s468_s19 + $0xb8] sm:$0xff]  ;;  %v195_v26 = vld [vmem:[%s468_s19 + $0xc0] sm:$0xff] }
  0x19   : > { %318 = vst.msk [vmem:[%s496_s24 + $0x20] sm:$0xff] %vm313_vm0, %v285_v35  ;;  %319 = vst.msk [vmem:[%s496_s24 + $0x28] sm:$0xff] %vm313_vm0, %v286_v36  ;;  %v257_v48 = vadd.f32 %v473_v1, %v218_v40  ;;  %v258_v49 = vadd.f32 %v473_v1, %v219_v41  ;;  %v259_v50 = vadd.f32 %v473_v1, %v220_v42  ;;  %v196_v27 = vld [vmem:[%s468_s19 + $0xc8] sm:$0xff]  ;;  %v197_v28 = vld [vmem:[%s468_s19 + $0xd0] sm:$0xff] }
  0x1a   : > { %320 = vst.msk [vmem:[%s496_s24 + $0x30] sm:$0xff] %vm313_vm0, %v287_v39  ;;  %v224_v51 = vmul.f32 %v463_v0, %v185_v38  ;;  %321 = vst.msk [vmem:[%s496_s24 + $0x38] sm:$0xff] %vm313_vm0, %v288_v44  ;;  %v260_v52 = vadd.f32 %v473_v1, %v221_v45  ;;  %v261_v53 = vadd.f32 %v473_v1, %v222_v46  ;;  %v198_v33 = vld [vmem:[%s468_s19 + $0xd8] sm:$0xff]  ;;  %v199_v34 = vld [vmem:[%s468_s19 + $0xe0] sm:$0xff] }
  0x1b   : > { %v262_v54 = vadd.f32 %v473_v1, %v223_v47  ;;  %v225_v55 = vmul.f32 %v463_v0, %v186_v43  ;;  %v289_v59 = vmax.f32 %v257_v48, 0.0  ;;  %v290_v60 = vmax.f32 %v258_v49, 0.0  ;;  %v200_v35 = vld [vmem:[%s468_s19 + $0xe8] sm:$0xff]  ;;  %v201_v40 = vld [vmem:[%s468_s19 + $0xf0] sm:$0xff]  ;;  %v202_v45 = vld [vmem:[%s468_s19 + $0xf8] sm:$0xff] }
  0x1c   : > { %v291_v61 = vmax.f32 %v259_v50, 0.0  ;;  %v263_v62 = vadd.f32 %v473_v1, %v224_v51  ;;  %v292_v4 = vmax.f32 %v260_v52, 0.0  ;;  %v293_v5 = vmax.f32 %v261_v53, 0.0 }
  0x1d   : > { %v294_v6 = vmax.f32 %v262_v54, 0.0  ;;  %v264_v7 = vadd.f32 %v473_v1, %v225_v55  ;;  %322 = vst.msk [vmem:[%s496_s24 + $0x40] sm:$0xff] %vm313_vm0, %v289_v59  ;;  %323 = vst.msk [vmem:[%s496_s24 + $0x48] sm:$0xff] %vm313_vm0, %v290_v60  ;;  %v226_v10 = vmul.f32 %v463_v0, %v187_v56  ;;  %v227_v11 = vmul.f32 %v463_v0, %v188_v57 }
  0x1e   : > { %324 = vst.msk [vmem:[%s496_s24 + $0x50] sm:$0xff] %vm313_vm0, %v291_v61  ;;  %v295_v9 = vmax.f32 %v263_v62, 0.0  ;;  %v228_v12 = vmul.f32 %v463_v0, %v189_v58  ;;  %325 = vst.msk [vmem:[%s496_s24 + $0x58] sm:$0xff] %vm313_vm0, %v292_v4  ;;  %v229_v15 = vmul.f32 %v463_v0, %v190_v63  ;;  %v230_v16 = vmul.f32 %v463_v0, %v191_v2 }
  0x1f   : > { %326 = vst.msk [vmem:[%s496_s24 + $0x60] sm:$0xff] %vm313_vm0, %v293_v5  ;;  %327 = vst.msk [vmem:[%s496_s24 + $0x68] sm:$0xff] %vm313_vm0, %v294_v6  ;;  %v296_v14 = vmax.f32 %v264_v7, 0.0  ;;  %v231_v17 = vmul.f32 %v463_v0, %v192_v3  ;;  %v265_v18 = vadd.f32 %v473_v1, %v226_v10  ;;  %v266_v19 = vadd.f32 %v473_v1, %v227_v11 }
  0x20   : > { %328 = vst.msk [vmem:[%s496_s24 + $0x70] sm:$0xff] %vm313_vm0, %v295_v9  ;;  %v267_v20 = vadd.f32 %v473_v1, %v228_v12  ;;  %v232_v21 = vmul.f32 %v463_v0, %v193_v8  ;;  %v268_v22 = vadd.f32 %v473_v1, %v229_v15  ;;  %v269_v23 = vadd.f32 %v473_v1, %v230_v16 }
  0x21   : > { %329 = vst.msk [vmem:[%s496_s24 + $0x78] sm:$0xff] %vm313_vm0, %v296_v14  ;;  %v270_v24 = vadd.f32 %v473_v1, %v231_v17  ;;  %v233_v25 = vmul.f32 %v463_v0, %v194_v13  ;;  %v297_v29 = vmax.f32 %v265_v18, 0.0  ;;  %v298_v30 = vmax.f32 %v266_v19, 0.0 }
  0x22   : > { %v299_v31 = vmax.f32 %v267_v20, 0.0  ;;  %v271_v32 = vadd.f32 %v473_v1, %v232_v21  ;;  %v300_v36 = vmax.f32 %v268_v22, 0.0  ;;  %v301_v37 = vmax.f32 %v269_v23, 0.0 }
  0x23   : > { %v302_v38 = vmax.f32 %v270_v24, 0.0  ;;  %v272_v39 = vadd.f32 %v473_v1, %v233_v25  ;;  %330 = vst.msk [vmem:[%s496_s24 + $0x80] sm:$0xff] %vm313_vm0, %v297_v29  ;;  %331 = vst.msk [vmem:[%s496_s24 + $0x88] sm:$0xff] %vm313_vm0, %v298_v30  ;;  %v234_v42 = vmul.f32 %v463_v0, %v195_v26  ;;  %v235_v43 = vmul.f32 %v463_v0, %v196_v27 }
  0x24   : > { %332 = vst.msk [vmem:[%s496_s24 + $0x90] sm:$0xff] %vm313_vm0, %v299_v31  ;;  %v303_v41 = vmax.f32 %v271_v32, 0.0  ;;  %v236_v44 = vmul.f32 %v463_v0, %v197_v28  ;;  %333 = vst.msk [vmem:[%s496_s24 + $0x98] sm:$0xff] %vm313_vm0, %v300_v36  ;;  %v237_v47 = vmul.f32 %v463_v0, %v198_v33  ;;  %v238_v48 = vmul.f32 %v463_v0, %v199_v34 }
  0x25   : > { %334 = vst.msk [vmem:[%s496_s24 + $0xa0] sm:$0xff] %vm313_vm0, %v301_v37  ;;  %335 = vst.msk [vmem:[%s496_s24 + $0xa8] sm:$0xff] %vm313_vm0, %v302_v38  ;;  %v304_v46 = vmax.f32 %v272_v39, 0.0  ;;  %v239_v49 = vmul.f32 %v463_v0, %v200_v35  ;;  %v273_v50 = vadd.f32 %v473_v1, %v234_v42  ;;  %v274_v51 = vadd.f32 %v473_v1, %v235_v43 }
  0x26   : > { %336 = vst.msk [vmem:[%s496_s24 + $0xb0] sm:$0xff] %vm313_vm0, %v303_v41  ;;  %v275_v52 = vadd.f32 %v473_v1, %v236_v44  ;;  %v240_v53 = vmul.f32 %v463_v0, %v201_v40  ;;  %v276_v54 = vadd.f32 %v473_v1, %v237_v47  ;;  %v277_v55 = vadd.f32 %v473_v1, %v238_v48 }
  0x27   : > { %337 = vst.msk [vmem:[%s496_s24 + $0xb8] sm:$0xff] %vm313_vm0, %v304_v46  ;;  %v278_v56 = vadd.f32 %v473_v1, %v239_v49  ;;  %v241_v57 = vmul.f32 %v463_v0, %v202_v45  ;;  %v305_v58 = vmax.f32 %v273_v50, 0.0  ;;  %v306_v59 = vmax.f32 %v274_v51, 0.0 }
  0x28   : > { %v307_v60 = vmax.f32 %v275_v52, 0.0  ;;  %v279_v61 = vadd.f32 %v473_v1, %v240_v53  ;;  %v308_v62 = vmax.f32 %v276_v54, 0.0  ;;  %v309_v63 = vmax.f32 %v277_v55, 0.0 }
  0x29   : > { %v310_v2 = vmax.f32 %v278_v56, 0.0  ;;  %v280_v3 = vadd.f32 %v473_v1, %v241_v57  ;;  %338 = vst.msk [vmem:[%s496_s24 + $0xc0] sm:$0xff] %vm313_vm0, %v305_v58  ;;  %339 = vst.msk [vmem:[%s496_s24 + $0xc8] sm:$0xff] %vm313_vm0, %v306_v59 }
  0x2a   : > { %340 = vst.msk [vmem:[%s496_s24 + $0xd0] sm:$0xff] %vm313_vm0, %v307_v60  ;;  %v311_v4 = vmax.f32 %v279_v61, 0.0  ;;  %341 = vst.msk [vmem:[%s496_s24 + $0xd8] sm:$0xff] %vm313_vm0, %v308_v62 }
  0x2b   : > { %342 = vst.msk [vmem:[%s496_s24 + $0xe0] sm:$0xff] %vm313_vm0, %v309_v63  ;;  %343 = vst.msk [vmem:[%s496_s24 + $0xe8] sm:$0xff] %vm313_vm0, %v310_v2  ;;  %v312_v0 = vmax.f32 %v280_v3, 0.0 }
  0x2c   : > { %344 = vst.msk [vmem:[%s496_s24 + $0xf0] sm:$0xff] %vm313_vm0, %v311_v4 }
  0x2d   : > { %345 = vst.msk [vmem:[%s496_s24 + $0xf8] sm:$0xff] %vm313_vm0, %v312_v0 }
  0x2e PF: > { %s13_s12 = sadd.s32 1, %s430_s12  }
  0x2f   : > { %p10_p4 = scmp.ge.s32.totalorder %s13_s12, 4  }
  0x31   :  { %12 = sbr.rel (!%p10_p4) target bundleno = 1 (0x1), region = 62 }

// kernel: double_conv.3
= control target key start
LH: loop header
LB: loop body
LE: loop exit
PB: predicated region body
PF: predicated region fallthrough
CT: control target
= control target key end

     0   :  { %s5524_s21 = smov 0   ;;  %s6663_s0 = inlined_call_operand.vmem [shape: f32[2,16,16,4], index: 0, kind: input, shape index: {}]   ;;  %s6664_s1 = inlined_call_operand.vmem [shape: f32[9,4,8], index: 1, kind: input, shape index: {}]   ;;  %s6665_s2 = inlined_call_operand.vmem [shape: f32[1,4], index: 2, kind: input, shape index: {}]   ;;  %s6666_s3 = inlined_call_operand.vmem [shape: f32[1,4], index: 3, kind: input, shape index: {}]   ;;  %s6667_s4 = inlined_call_operand.vmem [shape: f32[2,16,16,8], index: 4, kind: output, shape index: {0}]   ;;  %s6668_s5 = inlined_call_operand.vmem [shape: f32[2,1,8], index: 5, kind: output, shape index: {1}]   ;;  %s6669_s6 = inlined_call_operand.vmem [shape: f32[2,1,8], index: 6, kind: output, shape index: {2}]  }
   0x1 LB: > { %s4148_s2 = sadd.s32 4294967295, %s5486_s21   ;;  %p4152_p0 = scmp.ge.s32.totalorder %s5486_s21, 1  ;;  %s5486_s21 = sphi %s5524_s21, %s17_s21  }
   0x2   : > { %p217_p1 = scmp.lt.s32.totalorder %s5486_s21, 3 }
   0x4   : > { %p218_p2 = pnand %p4152_p0, %p217_p1 }
   0x6   : > { %221 = sbr.rel (%p218_p2) target bundleno = 569 (0x239), region = 36 }
   0xd   : > { %v5535_v0 = vld [vmem:[%s6664_s1 + $0x4] sm:$0xf]  ;;  %vm553_vm0 = vcmask 1043456   ;;  %vm301_vm1 = vcmask 31744   ;;  %vm304_vm2 = vcmask 25600   ;;  %v5488_v1 = vmov 0.0  }
   0xe   : > { %4763 = vmatprep.subr.msk.mxu1 %vm553_vm0, %v5535_v0  ;;  %302 = vst.msk [vmem:[#allocation2] sm:$0xff] %vm301_vm1, %v5488_v1  ;;  %303 = vst.msk [vmem:[#allocation2 + $0x8] sm:$0xff] %vm301_vm1, %v5488_v1  ;;  %v5596_v2 = vld [vmem:[%s6664_s1 + $0x10] sm:$0xf]  ;;  %p253_p3 = scmp.lt.s32.totalorder %s4148_s2, 1  ;;  %vm3837_vm3 = vcmask 64512  }
   0xf   : > { %306 = vst.msk [vmem:[#allocation2 + $0x18] sm:$0xff] %vm301_vm1, %v5488_v1  ;;  %307 = vst.msk [vmem:[#allocation2 + $0x20] sm:$0xff] %vm301_vm1, %v5488_v1  ;;  %v422_v3 = vld [vmem:[%s6664_s1] sm:$0xf]  ;;  %4764 = vmatpush3.msk.msra.mxu1 %vm553_vm0, %v5535_v0  ;;  %4963 = vmatprep.subr.msk.mxu0 %vm553_vm0, %v5596_v2  ;;  %v5610_v4 = vld [vmem:[%s6664_s1 + $0x14] sm:$0xf] }
  0x10   : > { %309 = vst.msk [vmem:[#allocation2 + $0x30] sm:$0xff] %vm301_vm1, %v5488_v1  ;;  %310 = vst.msk [vmem:[#allocation2 + $0x38] sm:$0xff] %vm301_vm1, %v5488_v1  ;;  %4964 = vmatpush3.msk.msra.mxu0 %vm553_vm0, %v5596_v2  ;;  %s6779_s2 = smov (!%p253_p3, %s4148_s2), 1  ;;  %4813 = vmatprep.subr.msk.mxu1 %vm553_vm0, %v422_v3  ;;  %v5635_v8 = vld [vmem:[%s6664_s1 + $0x8] sm:$0xf]  ;;  %vm3939_vm4 = vcmask 57344  }
  0x11   : > { %312 = vst.msk [vmem:[#allocation2 + $0x48] sm:$0xff] %vm301_vm1, %v5488_v1  ;;  %313 = vst.msk [vmem:[#allocation2 + $0x50] sm:$0xff] %vm301_vm1, %v5488_v1  ;;  %5013 = vmatprep.subr.msk.mxu0 %vm553_vm0, %v5610_v4  ;;  %s4464_s29 = sshll.u32 %s6779_s2, 8  ;;  %v5690_v33 = vld [vmem:[%s6664_s1 + $0x18] sm:$0xf]  ;;  %s265_s24 = scalar_lea.vmem %s6668_s5, %s6779_s2 }
  0x12   : > { %315 = vst.msk [vmem:[#allocation2 + $0x60] sm:$0xff] %vm301_vm1, %v5488_v1  ;;  %316 = vst.msk [vmem:[#allocation2 + $0x68] sm:$0xff] %vm301_vm1, %v5488_v1  ;;  %s5627_s8 = scalar_lea.vmem %s6663_s0, %s4464_s29  ;;  %v5819_v63 = vld [vmem:[%s6664_s1 + $0x1c] sm:$0xf]  ;;  %s6514_s3 = scalar_lea.vmem %s6667_s4, %s4464_s29 }
  0x13   : > { %318 = vst.msk [vmem:[#allocation2 + $0x78] sm:$0xff] %vm301_vm1, %v5488_v1  ;;  %319 = vst.msk [vmem:[#allocation2 + $0x80] sm:$0xff] %vm301_vm1, %v5488_v1  ;;  %v269_v5 = vld [vmem:[%s5627_s8] sm:$0xff]  ;;  %v270_v6 = vld [vmem:[%s5627_s8 + $0x8] sm:$0xff]  ;;  %s268_s27 = scalar_lea.vmem %s6669_s6, %s6779_s2 }
  0x14   : > { %321 = vst.msk [vmem:[#allocation2 + $0x90] sm:$0xff] %vm301_vm1, %v5488_v1  ;;  %322 = vst.msk [vmem:[#allocation2 + $0x98] sm:$0xff] %vm301_vm1, %v5488_v1  ;;  %v271_v7 = vld [vmem:[%s5627_s8 + $0x10] sm:$0xff]  ;;  %v272_v11 = vld [vmem:[%s5627_s8 + $0x18] sm:$0xff] }
  0x15   : > { %324 = vst.msk [vmem:[#allocation2 + $0xa8] sm:$0xff] %vm301_vm1, %v5488_v1  ;;  %325 = vst.msk [vmem:[#allocation2 + $0xb0] sm:$0xff] %vm301_vm1, %v5488_v1  ;;  %v423_v9 = vld [vmem:[#allocation2 + $0x1] sm:$0xff]  ;;  %v275_v14 = vld [vmem:[%s5627_s8 + $0x30] sm:$0xff] }
  0x16   : > { %327 = vst.msk [vmem:[#allocation2 + $0xc0] sm:$0xff] %vm301_vm1, %v5488_v1  ;;  %328 = vst.msk [vmem:[#allocation2 + $0xc8] sm:$0xff] %vm301_vm1, %v5488_v1  ;;  %4765 = vmatprep.mubr.msk.f32.mxu1 %vm301_vm1, %v423_v9  ;;  %v273_v12 = vld [vmem:[%s5627_s8 + $0x20] sm:$0xff]  ;;  %v274_v13 = vld [vmem:[%s5627_s8 + $0x28] sm:$0xff] }
  0x17   : > { %330 = vst.msk [vmem:[#allocation2 + $0xd8] sm:$0xff] %vm301_vm1, %v5488_v1  ;;  %331 = vst.msk [vmem:[#allocation2 + $0xe0] sm:$0xff] %vm301_vm1, %v5488_v1  ;;  %v276_v15 = vld [vmem:[%s5627_s8 + $0x38] sm:$0xff]  ;;  %v277_v16 = vld [vmem:[%s5627_s8 + $0x40] sm:$0xff] }
  0x18   : > { %333 = vst.msk [vmem:[#allocation2 + $0xf0] sm:$0xff] %vm301_vm1, %v5488_v1  ;;  %334 = vst.msk [vmem:[#allocation2 + $0xf8] sm:$0xff] %vm301_vm1, %v5488_v1  ;;  %v278_v17 = vld [vmem:[%s5627_s8 + $0x48] sm:$0xff]  ;;  %v279_v18 = vld [vmem:[%s5627_s8 + $0x50] sm:$0xff] }
  0x19   : > { %336 = vst.msk [vmem:[#allocation2 + $0x108] sm:$0xff] %vm301_vm1, %v5488_v1  ;;  %337 = vst.msk [vmem:[#allocation2 + $0x110] sm:$0xff] %vm301_vm1, %v5488_v1  ;;  %v280_v19 = vld [vmem:[%s5627_s8 + $0x58] sm:$0xff]  ;;  %v281_v20 = vld [vmem:[%s5627_s8 + $0x60] sm:$0xff] }
  0x1a   : > { %339 = vst.msk [vmem:[#allocation2 + $0x120] sm:$0xff] %vm301_vm1, %v5488_v1  ;;  %340 = vst.msk [vmem:[#allocation2 + $0x128] sm:$0xff] %vm301_vm1, %v5488_v1  ;;  %v282_v21 = vld [vmem:[%s5627_s8 + $0x68] sm:$0xff]  ;;  %v283_v22 = vld [vmem:[%s5627_s8 + $0x70] sm:$0xff] }
  0x1b   : > { %342 = vst.msk [vmem:[#allocation2 + $0x138] sm:$0xff] %vm301_vm1, %v5488_v1  ;;  %343 = vst.msk [vmem:[#allocation2 + $0x140] sm:$0xff] %vm301_vm1, %v5488_v1  ;;  %v284_v23 = vld [vmem:[%s5627_s8 + $0x78] sm:$0xff]  ;;  %v285_v24 = vld [vmem:[%s5627_s8 + $0x80] sm:$0xff] }
  0x1c   : > { %345 = vst.msk [vmem:[#allocation2 + $0x150] sm:$0xff] %vm301_vm1, %v5488_v1  ;;  %346 = vst.msk [vmem:[#allocation2 + $0x158] sm:$0xff] %vm301_vm1, %v5488_v1  ;;  %v286_v25 = vld [vmem:[%s5627_s8 + $0x88] sm:$0xff]  ;;  %v287_v26 = vld [vmem:[%s5627_s8 + $0x90] sm:$0xff] }
  0x1d   : > { %348 = vst.msk [vmem:[#allocation2 + $0x168] sm:$0xff] %vm301_vm1, %v5488_v1  ;;  %349 = vst.msk [vmem:[#allocation2 + $0x170] sm:$0xff] %vm301_vm1, %v5488_v1  ;;  %v288_v27 = vld [vmem:[%s5627_s8 + $0x98] sm:$0xff]  ;;  %v289_v28 = vld [vmem:[%s5627_s8 + $0xa0] sm:$0xff] }
  0x1e   : > { %351 = vst.msk [vmem:[#allocation2 + $0x180] sm:$0xff] %vm301_vm1, %v5488_v1  ;;  %352 = vst.msk [vmem:[#allocation2 + $0x188] sm:$0xff] %vm301_vm1, %v5488_v1  ;;  %v290_v29 = vld [vmem:[%s5627_s8 + $0xa8] sm:$0xff]  ;;  %v291_v38 = vld [vmem:[%s5627_s8 + $0xb0] sm:$0xff] }
  0x1f   : > { %354 = vst.msk [vmem:[#allocation2 + $0x198] sm:$0xff] %vm301_vm1, %v5488_v1  ;;  %355 = vst.msk [vmem:[#allocation2 + $0x1a0] sm:$0xff] %vm301_vm1, %v5488_v1  ;;  %v292_v39 = vld [vmem:[%s5627_s8 + $0xb8] sm:$0xff]  ;;  %v293_v40 = vld [vmem:[%s5627_s8 + $0xc0] sm:$0xff] }
  0x20   : > { %305 = vst.msk [vmem:[#allocation2 + $0x10] sm:$0x3] %vm304_vm2, %v5488_v1  ;;  %308 = vst.msk [vmem:[#allocation2 + $0x28] sm:$0x3] %vm304_vm2, %v5488_v1  ;;  %v294_v42 = vld [vmem:[%s5627_s8 + $0xc8] sm:$0xff]  ;;  %v295_v44 = vld [vmem:[%s5627_s8 + $0xd0] sm:$0xff] }
  0x21   : > { %311 = vst.msk [vmem:[#allocation2 + $0x40] sm:$0x3] %vm304_vm2, %v5488_v1  ;;  %314 = vst.msk [vmem:[#allocation2 + $0x58] sm:$0x3] %vm304_vm2, %v5488_v1  ;;  %v296_v45 = vld [vmem:[%s5627_s8 + $0xd8] sm:$0xff]  ;;  %v297_v46 = vld [vmem:[%s5627_s8 + $0xe0] sm:$0xff] }
  0x22   : > { %317 = vst.msk [vmem:[#allocation2 + $0x70] sm:$0x3] %vm304_vm2, %v5488_v1  ;;  %320 = vst.msk [vmem:[#allocation2 + $0x88] sm:$0x3] %vm304_vm2, %v5488_v1  ;;  %v298_v47 = vld [vmem:[%s5627_s8 + $0xe8] sm:$0xff]  ;;  %v299_v57 = vld [vmem:[%s5627_s8 + $0xf0] sm:$0xff] }
  0x23   : > { %323 = vst.msk [vmem:[#allocation2 + $0xa0] sm:$0x3] %vm304_vm2, %v5488_v1  ;;  %326 = vst.msk [vmem:[#allocation2 + $0xb8] sm:$0x3] %vm304_vm2, %v5488_v1  ;;  %v300_v58 = vld [vmem:[%s5627_s8 + $0xf8] sm:$0xff] }
  0x24   : > { %329 = vst.msk [vmem:[#allocation2 + $0xd0] sm:$0x3] %vm304_vm2, %v5488_v1  ;;  %332 = vst.msk [vmem:[#allocation2 + $0xe8] sm:$0x3] %vm304_vm2, %v5488_v1 }
  0x25   : > { %335 = vst.msk [vmem:[#allocation2 + $0x100] sm:$0x3] %vm304_vm2, %v5488_v1  ;;  %338 = vst.msk [vmem:[#allocation2 + $0x118] sm:$0x3] %vm304_vm2, %v5488_v1 }
  0x26   : > { %341 = vst.msk [vmem:[#allocation2 + $0x130] sm:$0x3] %vm304_vm2, %v5488_v1  ;;  %344 = vst.msk [vmem:[#allocation2 + $0x148] sm:$0x3] %vm304_vm2, %v5488_v1 }
  0x27   : > { %347 = vst.msk [vmem:[#allocation2 + $0x160] sm:$0x3] %vm304_vm2, %v5488_v1  ;;  %350 = vst.msk [vmem:[#allocation2 + $0x178] sm:$0x3] %vm304_vm2, %v5488_v1  ;;  %v424_v10 = vld [vmem:[#allocation2 + $0x9] sm:$0xff] }
  0x28   : > { %353 = vst.msk [vmem:[#allocation2 + $0x190] sm:$0x3] %vm304_vm2, %v5488_v1  ;;  %356 = vst.msk [vmem:[#allocation2 + $0x1a8] sm:$0x3] %vm304_vm2, %v5488_v1  ;;  %4766 = vmatmul.mubr.msk.f32.vlgmr.msra.gmra.mrb[0].mxu1 %vm301_vm1, %v424_v10 }
  0x29   : > { %358 = vst.msk [vmem:[#allocation2 + $0x19] sm:$0xff] %vm301_vm1, %v269_v5  ;;  %359 = vst.msk [vmem:[#allocation2 + $0x21] sm:$0xff] %vm301_vm1, %v270_v6  ;;  %4814 = vmatpush3.msk.msra.mxu1 %vm553_vm0, %v422_v3 }
  0x2a   : > { %360 = vst.msk [vmem:[#allocation2 + $0x31] sm:$0xff] %vm301_vm1, %v271_v7  ;;  %361 = vst.msk [vmem:[#allocation2 + $0x39] sm:$0xff] %vm301_vm1, %v272_v11  ;;  %4863 = vmatprep.subr.msk.mxu1 %vm553_vm0, %v5635_v8 }
  0x2b   : > { %362 = vst.msk [vmem:[#allocation2 + $0x49] sm:$0xff] %vm301_vm1, %v273_v12  ;;  %363 = vst.msk [vmem:[#allocation2 + $0x51] sm:$0xff] %vm301_vm1, %v274_v13 }
  0x2c   : > { %364 = vst.msk [vmem:[#allocation2 + $0x61] sm:$0xff] %vm301_vm1, %v275_v14  ;;  %365 = vst.msk [vmem:[#allocation2 + $0x69] sm:$0xff] %vm301_vm1, %v276_v15 }
  0x2d   : > { %366 = vst.msk [vmem:[#allocation2 + $0x79] sm:$0xff] %vm301_vm1, %v277_v16  ;;  %367 = vst.msk [vmem:[#allocation2 + $0x81] sm:$0xff] %vm301_vm1, %v278_v17 }
  0x2e   : > { %368 = vst.msk [vmem:[#allocation2 + $0x91] sm:$0xff] %vm301_vm1, %v279_v18  ;;  %369 = vst.msk [vmem:[#allocation2 + $0x99] sm:$0xff] %vm301_vm1, %v280_v19 }
  0x2f   : > { %370 = vst.msk [vmem:[#allocation2 + $0xa9] sm:$0xff] %vm301_vm1, %v281_v20  ;;  %371 = vst.msk [vmem:[#allocation2 + $0xb1] sm:$0xff] %vm301_vm1, %v282_v21 }
  0x30   : > { %372 = vst.msk [vmem:[#allocation2 + $0xc1] sm:$0xff] %vm301_vm1, %v283_v22  ;;  %373 = vst.msk [vmem:[#allocation2 + $0xc9] sm:$0xff] %vm301_vm1, %v284_v23  ;;  %v425_v30 = vld [vmem:[#allocation2 + $0x19] sm:$0xff]  ;;  %v426_v31 = vld [vmem:[#allocation2 + $0x21] sm:$0xff] }
  0x31   : > { %374 = vst.msk [vmem:[#allocation2 + $0xd9] sm:$0xff] %vm301_vm1, %v285_v24  ;;  %375 = vst.msk [vmem:[#allocation2 + $0xe1] sm:$0xff] %vm301_vm1, %v286_v25  ;;  %v5680_v32 = vld [vmem:[#allocation2 + $0x31] sm:$0xff]  ;;  %4768 = vmatprep.mubr.msk.f32.mxu1 %vm301_vm1, %v425_v30  ;;  %4965 = vmatprep.mubr.msk.f32.mxu0 %vm301_vm1, %v425_v30  ;;  %v5698_v34 = vld [vmem:[#allocation2 + $0x39] sm:$0xff] }
  0x32   : > { %376 = vst.msk [vmem:[#allocation2 + $0xf1] sm:$0xff] %vm301_vm1, %v287_v26  ;;  %377 = vst.msk [vmem:[#allocation2 + $0xf9] sm:$0xff] %vm301_vm1, %v288_v27  ;;  %4769 = vmatmul.mubr.msk.f32.gmra.mrb[2].mxu1 %vm301_vm1, %v426_v31  ;;  %4966 = vmatmul.mubr.msk.f32.vlgmr.msra.gmra.mrb[0].mxu0 %vm301_vm1, %v426_v31  ;;  %v5702_v35 = vld [vmem:[#allocation2 + $0x49] sm:$0xff]  ;;  %v5714_v36 = vld [vmem:[#allocation2 + $0x51] sm:$0xff] }
  0x33   : > { %378 = vst.msk [vmem:[#allocation2 + $0x109] sm:$0xff] %vm301_vm1, %v289_v28  ;;  %379 = vst.msk [vmem:[#allocation2 + $0x111] sm:$0xff] %vm301_vm1, %v290_v29  ;;  %5014 = vmatpush3.msk.msra.mxu0 %vm553_vm0, %v5610_v4  ;;  %4771 = vmatprep.mubr.msk.f32.mxu1 %vm301_vm1, %v5680_v32  ;;  %v5716_v37 = vld [vmem:[#allocation2 + $0x61] sm:$0xff]  ;;  %v5730_v41 = vld [vmem:[#allocation2 + $0x69] sm:$0xff] }
  0x34   : > { %4968 = vmatprep.mubr.msk.f32.mxu0 %vm301_vm1, %v5680_v32  ;;  %5063 = vmatprep.subr.msk.mxu0 %vm553_vm0, %v5690_v33  ;;  %380 = vst.msk [vmem:[#allocation2 + $0x121] sm:$0xff] %vm301_vm1, %v291_v38  ;;  %381 = vst.msk [vmem:[#allocation2 + $0x129] sm:$0xff] %vm301_vm1, %v292_v39  ;;  %v5735_v43 = vld [vmem:[#allocation2 + $0x79] sm:$0xff]  ;;  %v5753_v48 = vld [vmem:[#allocation2 + $0x81] sm:$0xff] }
  0x35   : > { %382 = vst.msk [vmem:[#allocation2 + $0x139] sm:$0xff] %vm301_vm1, %v293_v40  ;;  %383 = vst.msk [vmem:[#allocation2 + $0x141] sm:$0xff] %vm301_vm1, %v294_v42  ;;  %v5756_v49 = vld [vmem:[#allocation2 + $0x91] sm:$0xff]  ;;  %v5766_v50 = vld [vmem:[#allocation2 + $0x99] sm:$0xff] }
  0x36   : > { %4772 = vmatmul.mubr.msk.f32.gmra.mrb[4].mxu1 %vm301_vm1, %v5698_v34  ;;  %4969 = vmatmul.mubr.msk.f32.gmra.mrb[2].mxu0 %vm301_vm1, %v5698_v34  ;;  %384 = vst.msk [vmem:[#allocation2 + $0x151] sm:$0xff] %vm301_vm1, %v295_v44  ;;  %385 = vst.msk [vmem:[#allocation2 + $0x159] sm:$0xff] %vm301_vm1, %v296_v45  ;;  %v5768_v51 = vld [vmem:[#allocation2 + $0xa9] sm:$0xff]  ;;  %v5778_v52 = vld [vmem:[#allocation2 + $0xb1] sm:$0xff] }
  0x37   : > { %4774 = vmatprep.mubr.msk.f32.mxu1 %vm301_vm1, %v5702_v35  ;;  %4971 = vmatprep.mubr.msk.f32.mxu0 %vm301_vm1, %v5702_v35  ;;  %386 = vst.msk [vmem:[#allocation2 + $0x169] sm:$0xff] %vm301_vm1, %v297_v46  ;;  %387 = vst.msk [vmem:[#allocation2 + $0x171] sm:$0xff] %vm301_vm1, %v298_v47  ;;  %v5780_v53 = vld [vmem:[#allocation2 + $0xc1] sm:$0xff]  ;;  %v5790_v54 = vld [vmem:[#allocation2 + $0xc9] sm:$0xff] }
  0x38   : > { %6716 = vst [vmem:[#allocation3_spill] sm:$0xff] %v5790_v54  ;;  %v5792_v55 = vld [vmem:[#allocation2 + $0x1a] sm:$0xff]  ;;  %388 = vst.msk [vmem:[#allocation2 + $0x181] sm:$0xff] %vm301_vm1, %v299_v57  ;;  %v5810_v60 = vld [vmem:[#allocation2 + $0x22] sm:$0xff] }
  0x39   : > { %v5794_v56 = vld [vmem:[#allocation2 + $0xd9] sm:$0xff]  ;;  %389 = vst.msk [vmem:[#allocation2 + $0x189] sm:$0xff] %vm301_vm1, %v300_v58  ;;  %v5808_v59 = vld [vmem:[#allocation2 + $0xe1] sm:$0xff]  ;;  %v5812_v61 = vld [vmem:[#allocation2 + $0xf1] sm:$0xff] }
  0x3a   : > { %4775 = vmatmul.mubr.msk.f32.gmra.mrb[6].mxu1 %vm301_vm1, %v5714_v36  ;;  %4972 = vmatmul.mubr.msk.f32.gmra.mrb[4].mxu0 %vm301_vm1, %v5714_v36  ;;  %6717 = vst [vmem:[#allocation4_spill] sm:$0xff] %v5794_v56  ;;  %6718 = vst [vmem:[#allocation5_spill] sm:$0xff] %v5808_v59  ;;  %v5814_v62 = vld [vmem:[#allocation2 + $0x32] sm:$0xff]  ;;  %v5831_v1 = vld [vmem:[#allocation2 + $0x3a] sm:$0xff] }
  0x3b   : > { %4777 = vmatprep.mubr.msk.f32.mxu1 %vm301_vm1, %v5716_v37  ;;  %4974 = vmatprep.mubr.msk.f32.mxu0 %vm301_vm1, %v5716_v37  ;;  %6719 = vst [vmem:[#allocation6_spill] sm:$0xff] %v5812_v61  ;;  %v5829_v0 = vld [vmem:[#allocation2 + $0xf9] sm:$0xff]  ;;  %v5835_v3 = vld [vmem:[#allocation2 + $0x109] sm:$0xff]  ;;  %v5849_v5 = vld [vmem:[#allocation2 + $0x111] sm:$0xff] }
  0x3c   : > { %6720 = vst [vmem:[#allocation7_spill] sm:$0xff] %v5829_v0  ;;  %6721 = vst [vmem:[#allocation8_spill] sm:$0xff] %v5835_v3  ;;  %v5837_v4 = vld [vmem:[#allocation2 + $0x4a] sm:$0xff]  ;;  %v5851_v6 = vld [vmem:[#allocation2 + $0x52] sm:$0xff] }
  0x3d   : > { %6722 = vst [vmem:[#allocation9_spill] sm:$0xff] %v5849_v5  ;;  %v5853_v7 = vld [vmem:[#allocation2 + $0x121] sm:$0xff]  ;;  %v5865_v10 = vld [vmem:[#allocation2 + $0x129] sm:$0xff]  ;;  %v5869_v12 = vld [vmem:[#allocation2 + $0x139] sm:$0xff] }
  0x3e   : > { %4778 = vmatmul.mubr.msk.f32.gmra.mrb[8].mxu1 %vm301_vm1, %v5730_v41  ;;  %4975 = vmatmul.mubr.msk.f32.gmra.mrb[6].mxu0 %vm301_vm1, %v5730_v41  ;;  %6723 = vst [vmem:[#allocation10_spill] sm:$0xff] %v5853_v7  ;;  %v5855_v9 = vld [vmem:[#allocation2 + $0x62] sm:$0xff]  ;;  %6724 = vst [vmem:[#allocation11_spill] sm:$0xff] %v5865_v10  ;;  %v5867_v11 = vld [vmem:[#allocation2 + $0x6a] sm:$0xff] }
  0x3f   : > { %4780 = vmatprep.mubr.msk.f32.mxu1 %vm301_vm1, %v5735_v43  ;;  %4977 = vmatprep.mubr.msk.f32.mxu0 %vm301_vm1, %v5735_v43  ;;  %6725 = vst [vmem:[#allocation12_spill] sm:$0xff] %v5869_v12  ;;  %v5871_v13 = vld [vmem:[#allocation2 + $0x7a] sm:$0xff]  ;;  %v5883_v15 = vld [vmem:[#allocation2 + $0x82] sm:$0xff]  ;;  %v5885_v16 = vld [vmem:[#allocation2 + $0x151] sm:$0xff] }
  0x40   : > { %v5881_v14 = vld [vmem:[#allocation2 + $0x141] sm:$0xff]  ;;  %6727 = vst [vmem:[#allocation14_spill] sm:$0xff] %v5885_v16  ;;  %v5887_v17 = vld [vmem:[#allocation2 + $0x92] sm:$0xff]  ;;  %v5901_v20 = vld [vmem:[#allocation2 + $0x169] sm:$0xff] }
  0x41   : > { %6726 = vst [vmem:[#allocation13_spill] sm:$0xff] %v5881_v14  ;;  %v5897_v18 = vld [vmem:[#allocation2 + $0x159] sm:$0xff]  ;;  %6729 = vst [vmem:[#allocation16_spill] sm:$0xff] %v5901_v20  ;;  %v5903_v21 = vld [vmem:[#allocation2 + $0xaa] sm:$0xff] }
  0x42   : > { %4781 = vmatmul.mubr.msk.f32.gmra.mrb[10].mxu1 %vm301_vm1, %v5753_v48  ;;  %4978 = vmatmul.mubr.msk.f32.gmra.mrb[8].mxu0 %vm301_vm1, %v5753_v48  ;;  %6728 = vst [vmem:[#allocation15_spill] sm:$0xff] %v5897_v18  ;;  %v5899_v19 = vld [vmem:[#allocation2 + $0x9a] sm:$0xff]  ;;  %v5913_v22 = vld [vmem:[#allocation2 + $0x171] sm:$0xff]  ;;  %v5917_v25 = vld [vmem:[#allocation2 + $0xc2] sm:$0xff] }
  0x43   : > { %4783 = vmatprep.mubr.msk.f32.mxu1 %vm301_vm1, %v5756_v49  ;;  %4980 = vmatprep.mubr.msk.f32.mxu0 %vm301_vm1, %v5756_v49  ;;  %6730 = vst [vmem:[#allocation17_spill] sm:$0xff] %v5913_v22  ;;  %v5915_v23 = vld [vmem:[#allocation2 + $0xb2] sm:$0xff]  ;;  %v390_v24 = vld [vmem:[#allocation2] sm:$0xff]  ;;  %v391_v26 = vld [vmem:[#allocation2 + $0x8] sm:$0xff] }
  0x44   : > { %v5926_v27 = vld [vmem:[#allocation2 + $0xca] sm:$0xff]  ;;  %v5928_v28 = vld [vmem:[#allocation2 + $0x18] sm:$0xff]  ;;  %v5944_v31 = vld [vmem:[#allocation2 + $0x20] sm:$0xff] }
  0x45   : > { %6731 = vst [vmem:[#allocation18_spill] sm:$0xff] %v5928_v28  ;;  %v5930_v29 = vld [vmem:[#allocation2 + $0xda] sm:$0xff]  ;;  %v5938_v30 = vld [vmem:[%s6664_s1 + $0xc] sm:$0xf]  ;;  %6732 = vst [vmem:[#allocation19_spill] sm:$0xff] %v5944_v31 }
  0x46   : > { %4784 = vmatmul.mubr.msk.f32.gmra.mrb[12].mxu1 %vm301_vm1, %v5766_v50  ;;  %4981 = vmatmul.mubr.msk.f32.gmra.mrb[10].mxu0 %vm301_vm1, %v5766_v50  ;;  %v5950_v38 = vld [vmem:[#allocation2 + $0x30] sm:$0xff]  ;;  %v5966_v40 = vld [vmem:[#allocation2 + $0xfa] sm:$0xff]  ;;  %v5968_v42 = vld [vmem:[#allocation2 + $0x48] sm:$0xff] }
  0x47   : > { %4786 = vmatprep.mubr.msk.f32.mxu1 %vm301_vm1, %v5768_v51  ;;  %4983 = vmatprep.mubr.msk.f32.mxu0 %vm301_vm1, %v5768_v51  ;;  %6733 = vst [vmem:[#allocation20_spill] sm:$0xff] %v5950_v38  ;;  %v5952_v39 = vld [vmem:[#allocation2 + $0xf2] sm:$0xff]  ;;  %6735 = vst [vmem:[#allocation22_spill] sm:$0xff] %v5968_v42  ;;  %v5970_v44 = vld [vmem:[#allocation2 + $0x10a] sm:$0xff] }
  0x48   : > { %v5980_v45 = vld [vmem:[#allocation2 + $0x50] sm:$0xff]  ;;  %v5984_v47 = vld [vmem:[#allocation2 + $0x60] sm:$0xff]  ;;  %v5996_v58 = vld [vmem:[#allocation2 + $0x68] sm:$0xff] }
  0x49   : > { %6736 = vst [vmem:[#allocation23_spill] sm:$0xff] %v5980_v45  ;;  %v5982_v46 = vld [vmem:[#allocation2 + $0x112] sm:$0xff]  ;;  %6737 = vst [vmem:[#allocation24_spill] sm:$0xff] %v5984_v47  ;;  %v5986_v57 = vld [vmem:[#allocation2 + $0x122] sm:$0xff] }
  0x4a   : > { %4787 = vmatmul.mubr.msk.f32.gmra.mrb[14].mxu1 %vm301_vm1, %v5778_v52  ;;  %4984 = vmatmul.mubr.msk.f32.gmra.mrb[12].mxu0 %vm301_vm1, %v5778_v52  ;;  %6738 = vst [vmem:[#allocation25_spill] sm:$0xff] %v5996_v58 }
  0x4b   : > { %4789 = vmatprep.mubr.msk.f32.mxu1 %vm301_vm1, %v5780_v53  ;;  %4986 = vmatprep.mubr.msk.f32.mxu0 %vm301_vm1, %v5780_v53 }
  0x4e   : > { %4790 = vmatmul.mubr.msk.f32.gmra.mrb[16].mxu1 %vm301_vm1, %v5790_v54  ;;  %4987 = vmatmul.mubr.msk.f32.gmra.mrb[14].mxu0 %vm301_vm1, %v5790_v54  ;;  %v6074_v54 = vld [vmem:[#allocation2 + $0xe0] sm:$0xff] }
  0x4f   : > { %4792 = vmatprep.mubr.msk.f32.mxu1 %vm301_vm1, %v5794_v56  ;;  %5015 = vmatprep.mubr.msk.f32.mxu0 %vm301_vm1, %v5792_v55  ;;  %v6062_v56 = vld [vmem:[#allocation2 + $0x18a] sm:$0xff] }
  0x50   : > { %6746 = vst [vmem:[#allocation33_spill] sm:$0xff] %v6062_v56 }
  0x52   : > { %4793 = vmatmul.mubr.msk.f32.gmra.mrb[18].mxu1 %vm301_vm1, %v5808_v59  ;;  %5016 = vmatmul.mubr.msk.f32.vlgmr.msra.gmra.mrb[0].mxu0 %vm301_vm1, %v5810_v60  ;;  %v6050_v59 = vld [vmem:[#allocation2 + $0x182] sm:$0xff] }
  0x53   : > { %5064 = vmatpush3.msk.msra.mxu0 %vm553_vm0, %v5690_v33  ;;  %4795 = vmatprep.mubr.msk.f32.mxu1 %vm301_vm1, %v5812_v61  ;;  %v5946_v33 = vld [vmem:[#allocation2 + $0xe2] sm:$0xff]  ;;  %6745 = vst [vmem:[#allocation32_spill] sm:$0xff] %v6050_v59 }
  0x54   : > { %5018 = vmatprep.mubr.msk.f32.mxu0 %vm301_vm1, %v5814_v62  ;;  %5113 = vmatprep.subr.msk.mxu0 %vm553_vm0, %v5819_v63  ;;  %v6048_v61 = vld [vmem:[#allocation2 + $0xc0] sm:$0xff] }
  0x56   : > { %4796 = vmatmul.mubr.msk.f32.gmra.mrb[20].mxu1 %vm301_vm1, %v5829_v0  ;;  %5019 = vmatmul.mubr.msk.f32.gmra.mrb[2].mxu0 %vm301_vm1, %v5831_v1  ;;  %v6046_v0 = vld [vmem:[#allocation2 + $0x172] sm:$0xff] }
  0x57   : > { %4798 = vmatprep.mubr.msk.f32.mxu1 %vm301_vm1, %v5835_v3  ;;  %5021 = vmatprep.mubr.msk.f32.mxu0 %vm301_vm1, %v5837_v4  ;;  %v6044_v3 = vld [vmem:[#allocation2 + $0xb0] sm:$0xff]  ;;  %6744 = vst [vmem:[#allocation31_spill] sm:$0xff] %v6046_v0 }
  0x58   : > { %6743 = vst [vmem:[#allocation30_spill] sm:$0xff] %v6044_v3 }
  0x5a   : > { %4799 = vmatmul.mubr.msk.f32.gmra.mrb[22].mxu1 %vm301_vm1, %v5849_v5  ;;  %5022 = vmatmul.mubr.msk.f32.gmra.mrb[4].mxu0 %vm301_vm1, %v5851_v6  ;;  %v6034_v5 = vld [vmem:[#allocation2 + $0x16a] sm:$0xff] }
  0x5b   : > { %4801 = vmatprep.mubr.msk.f32.mxu1 %vm301_vm1, %v5853_v7  ;;  %5024 = vmatprep.mubr.msk.f32.mxu0 %vm301_vm1, %v5855_v9  ;;  %v6032_v7 = vld [vmem:[#allocation2 + $0xa8] sm:$0xff] }
  0x5e   : > { %4802 = vmatmul.mubr.msk.f32.gmra.mrb[24].mxu1 %vm301_vm1, %v5865_v10  ;;  %5025 = vmatmul.mubr.msk.f32.gmra.mrb[6].mxu0 %vm301_vm1, %v5867_v11  ;;  %v6030_v10 = vld [vmem:[#allocation2 + $0x15a] sm:$0xff] }
  0x5f   : > { %4804 = vmatprep.mubr.msk.f32.mxu1 %vm301_vm1, %v5869_v12  ;;  %5027 = vmatprep.mubr.msk.f32.mxu0 %vm301_vm1, %v5871_v13  ;;  %v6028_v12 = vld [vmem:[#allocation2 + $0x98] sm:$0xff] }
  0x60   : > { %6742 = vst [vmem:[#allocation29_spill] sm:$0xff] %v6028_v12 }
  0x62   : > { %4805 = vmatmul.mubr.msk.f32.gmra.mrb[26].mxu1 %vm301_vm1, %v5881_v14  ;;  %5028 = vmatmul.mubr.msk.f32.gmra.mrb[8].mxu0 %vm301_vm1, %v5883_v15  ;;  %v6018_v14 = vld [vmem:[#allocation2 + $0x152] sm:$0xff] }
  0x63   : > { %4807 = vmatprep.mubr.msk.f32.mxu1 %vm301_vm1, %v5885_v16  ;;  %5030 = vmatprep.mubr.msk.f32.mxu0 %vm301_vm1, %v5887_v17  ;;  %v6016_v16 = vld [vmem:[#allocation2 + $0x90] sm:$0xff] }
  0x64   : > { %6741 = vst [vmem:[#allocation28_spill] sm:$0xff] %v6016_v16 }
  0x66   : > { %4808 = vmatmul.mubr.msk.f32.gmra.mrb[28].mxu1 %vm301_vm1, %v5897_v18  ;;  %5031 = vmatmul.mubr.msk.f32.gmra.mrb[10].mxu0 %vm301_vm1, %v5899_v19  ;;  %v6014_v18 = vld [vmem:[#allocation2 + $0x142] sm:$0xff] }
  0x67   : > { %4810 = vmatprep.mubr.msk.f32.mxu1 %vm301_vm1, %v5901_v20  ;;  %5033 = vmatprep.mubr.msk.f32.mxu0 %vm301_vm1, %v5903_v21  ;;  %v6012_v20 = vld [vmem:[#allocation2 + $0x80] sm:$0xff] }
  0x68   : > { %6740 = vst [vmem:[#allocation27_spill] sm:$0xff] %v6012_v20 }
  0x6a   : > { %4811 = vmatmul.mubr.msk.f32.gmra.mrb[30].mxu1 %vm301_vm1, %v5913_v22  ;;  %5034 = vmatmul.mubr.msk.f32.gmra.mrb[12].mxu0 %vm301_vm1, %v5915_v23  ;;  %v6002_v22 = vld [vmem:[#allocation2 + $0x13a] sm:$0xff] }
  0x6b   : > { %4815 = vmatprep.mubr.msk.f32.mxu1 %vm301_vm1, %v390_v24  ;;  %5036 = vmatprep.mubr.msk.f32.mxu0 %vm301_vm1, %v5917_v25  ;;  %v5998_v24 = vld [vmem:[#allocation2 + $0x12a] sm:$0xff] }
  0x6e   : > { %4816 = vmatmul.mubr.msk.f32.vlgmr.msra.gmra.mrb[0].mxu1 %vm301_vm1, %v391_v26  ;;  %5037 = vmatmul.mubr.msk.f32.gmra.mrb[14].mxu0 %vm301_vm1, %v5926_v27  ;;  %v6000_v26 = vld [vmem:[#allocation2 + $0x78] sm:$0xff] }
  0x6f   : > { %4818 = vmatprep.mubr.msk.f32.mxu1 %vm301_vm1, %v5928_v28  ;;  %5039 = vmatprep.mubr.msk.f32.mxu0 %vm301_vm1, %v5930_v29  ;;  %6739 = vst [vmem:[#allocation26_spill] sm:$0xff] %v6000_v26  ;;  %v6064_v28 = vld [vmem:[#allocation2 + $0xd8] sm:$0xff] }
  0x70   : > { %4864 = vmatpush3.msk.msra.mxu1 %vm553_vm0, %v5635_v8  ;;  %v5964_v8 = vld [vmem:[#allocation2 + $0x38] sm:$0xff] }
  0x71   : > { %4913 = vmatprep.subr.msk.mxu1 %vm553_vm0, %v5938_v30  ;;  %6734 = vst [vmem:[#allocation21_spill] sm:$0xff] %v5964_v8 }
  0x72   : > { %4819 = vmatmul.mubr.msk.f32.gmra.mrb[2].mxu1 %vm301_vm1, %v5944_v31  ;;  %5040 = vmatmul.mubr.msk.f32.gmra.mrb[16].mxu0 %vm301_vm1, %v5946_v33  ;;  %v6060_v31 = vld [vmem:[#allocation2 + $0xc8] sm:$0xff] }
  0x73   : > { %4821 = vmatprep.mubr.msk.f32.mxu1 %vm301_vm1, %v5950_v38  ;;  %5042 = vmatprep.mubr.msk.f32.mxu0 %vm301_vm1, %v5952_v39 }
  0x76   : > { %4822 = vmatmul.mubr.msk.f32.gmra.mrb[4].mxu1 %vm301_vm1, %v5964_v8  ;;  %5043 = vmatmul.mubr.msk.f32.gmra.mrb[18].mxu0 %vm301_vm1, %v5966_v40 }
  0x77   : > { %4824 = vmatprep.mubr.msk.f32.mxu1 %vm301_vm1, %v5968_v42  ;;  %5045 = vmatprep.mubr.msk.f32.mxu0 %vm301_vm1, %v5970_v44 }
  0x7a   : > { %4825 = vmatmul.mubr.msk.f32.gmra.mrb[6].mxu1 %vm301_vm1, %v5980_v45  ;;  %5046 = vmatmul.mubr.msk.f32.gmra.mrb[20].mxu0 %vm301_vm1, %v5982_v46 }
  0x7b   : > { %4827 = vmatprep.mubr.msk.f32.mxu1 %vm301_vm1, %v5984_v47  ;;  %5048 = vmatprep.mubr.msk.f32.mxu0 %vm301_vm1, %v5986_v57 }
  0x7e   : > { %4828 = vmatmul.mubr.msk.f32.gmra.mrb[8].mxu1 %vm301_vm1, %v5996_v58  ;;  %5049 = vmatmul.mubr.msk.f32.gmra.mrb[22].mxu0 %vm301_vm1, %v5998_v24 }
  0x7f   : > { %4830 = vmatprep.mubr.msk.f32.mxu1 %vm301_vm1, %v6000_v26  ;;  %5051 = vmatprep.mubr.msk.f32.mxu0 %vm301_vm1, %v6002_v22 }
  0x82   : > { %4831 = vmatmul.mubr.msk.f32.gmra.mrb[10].mxu1 %vm301_vm1, %v6012_v20  ;;  %5052 = vmatmul.mubr.msk.f32.gmra.mrb[24].mxu0 %vm301_vm1, %v6014_v18 }
  0x83   : > { %4833 = vmatprep.mubr.msk.f32.mxu1 %vm301_vm1, %v6016_v16  ;;  %5054 = vmatprep.mubr.msk.f32.mxu0 %vm301_vm1, %v6018_v14 }
  0x86   : > { %4834 = vmatmul.mubr.msk.f32.gmra.mrb[12].mxu1 %vm301_vm1, %v6028_v12  ;;  %5055 = vmatmul.mubr.msk.f32.gmra.mrb[26].mxu0 %vm301_vm1, %v6030_v10 }
  0x87   : > { %4836 = vmatprep.mubr.msk.f32.mxu1 %vm301_vm1, %v6032_v7  ;;  %5057 = vmatprep.mubr.msk.f32.mxu0 %vm301_vm1, %v6034_v5 }
  0x8a   : > { %4837 = vmatmul.mubr.msk.f32.gmra.mrb[14].mxu1 %vm301_vm1, %v6044_v3  ;;  %5058 = vmatmul.mubr.msk.f32.gmra.mrb[28].mxu0 %vm301_vm1, %v6046_v0  ;;  %v6081_v0 = vld [vmem:[%s6664_s1 + $0x20] sm:$0xf] }
  0x8b   : > { %4839 = vmatprep.mubr.msk.f32.mxu1 %vm301_vm1, %v6048_v61  ;;  %5060 = vmatprep.mubr.msk.f32.mxu0 %vm301_vm1, %v6050_v59  ;;  %v6076_v59 = vld [vmem:[#allocation2 + $0xf0] sm:$0xff] }
  0x8e   : > { %4840 = vmatmul.mubr.msk.f32.gmra.mrb[16].mxu1 %vm301_vm1, %v6060_v31  ;;  %5061 = vmatmul.mubr.msk.f32.gmra.mrb[30].mxu0 %vm301_vm1, %v6062_v56  ;;  %v6091_v56 = vld [vmem:[#allocation2 + $0xf8] sm:$0xff] }
  0x8f   : > { %4842 = vmatprep.mubr.msk.f32.mxu1 %vm301_vm1, %v6064_v28  ;;  %5065 = vmatprep.mubr.msk.f32.mxu0 %vm301_vm1, %v5950_v38  ;;  %v6095_v38 = vld [vmem:[#allocation2 + $0x108] sm:$0xff] }
  0x92   : > { %4843 = vmatmul.mubr.msk.f32.gmra.mrb[18].mxu1 %vm301_vm1, %v6074_v54  ;;  %5066 = vmatmul.mubr.msk.f32.vlgmr.msra.gmra.mrb[0].mxu0 %vm301_vm1, %v5964_v8  ;;  %v6121_v8 = vld [vmem:[#allocation2 + $0x138] sm:$0xff] }
  0x93   : > { %5114 = vmatpush3.msk.msra.mxu0 %vm553_vm0, %v5819_v63  ;;  %4845 = vmatprep.mubr.msk.f32.mxu1 %vm301_vm1, %v6076_v59  ;;  %v6107_v63 = vld [vmem:[#allocation2 + $0x110] sm:$0xff] }
  0x94   : > { %5068 = vmatprep.mubr.msk.f32.mxu0 %vm301_vm1, %v5968_v42  ;;  %5163 = vmatprep.subr.msk.mxu0 %vm553_vm0, %v6081_v0  ;;  %v6109_v42 = vld [vmem:[#allocation2 + $0x120] sm:$0xff] }
  0x96   : > { %4846 = vmatmul.mubr.msk.f32.gmra.mrb[20].mxu1 %vm301_vm1, %v6091_v56  ;;  %5069 = vmatmul.mubr.msk.f32.gmra.mrb[2].mxu0 %vm301_vm1, %v5980_v45  ;;  %v6119_v45 = vld [vmem:[#allocation2 + $0x128] sm:$0xff] }
  0x97   : > { %4848 = vmatprep.mubr.msk.f32.mxu1 %vm301_vm1, %v6095_v38  ;;  %5071 = vmatprep.mubr.msk.f32.mxu0 %vm301_vm1, %v5984_v47  ;;  %v6133_v47 = vld [vmem:[#allocation2 + $0x150] sm:$0xff] }
  0x9a   : > { %4849 = vmatmul.mubr.msk.f32.gmra.mrb[22].mxu1 %vm301_vm1, %v6107_v63  ;;  %5072 = vmatmul.mubr.msk.f32.gmra.mrb[4].mxu0 %vm301_vm1, %v5996_v58  ;;  %v6131_v58 = vld [vmem:[#allocation2 + $0x140] sm:$0xff] }
  0x9b   : > { %4851 = vmatprep.mubr.msk.f32.mxu1 %vm301_vm1, %v6109_v42  ;;  %5074 = vmatprep.mubr.msk.f32.mxu0 %vm301_vm1, %v6000_v26  ;;  %v6145_v26 = vld [vmem:[#allocation2 + $0x168] sm:$0xff] }
  0x9e   : > { %4852 = vmatmul.mubr.msk.f32.gmra.mrb[24].mxu1 %vm301_vm1, %v6119_v45  ;;  %5075 = vmatmul.mubr.msk.f32.gmra.mrb[6].mxu0 %vm301_vm1, %v6012_v20  ;;  %v6143_v20 = vld [vmem:[#allocation2 + $0x158] sm:$0xff] }
  0x9f   : > { %4854 = vmatprep.mubr.msk.f32.mxu1 %vm301_vm1, %v6121_v8  ;;  %5077 = vmatprep.mubr.msk.f32.mxu0 %vm301_vm1, %v6016_v16  ;;  %v1106_v16 = vld [vmem:[#allocation2 + $0x2] sm:$0xff] }
  0xa2   : > { %4855 = vmatmul.mubr.msk.f32.gmra.mrb[26].mxu1 %vm301_vm1, %v6131_v58  ;;  %5078 = vmatmul.mubr.msk.f32.gmra.mrb[8].mxu0 %vm301_vm1, %v6028_v12  ;;  %v6155_v12 = vld [vmem:[#allocation2 + $0x170] sm:$0xff] }
  0xa3   : > { %4857 = vmatprep.mubr.msk.f32.mxu1 %vm301_vm1, %v6133_v47  ;;  %5080 = vmatprep.mubr.msk.f32.mxu0 %vm301_vm1, %v6032_v7 }
  0xa6   : > { %4858 = vmatmul.mubr.msk.f32.gmra.mrb[28].mxu1 %vm301_vm1, %v6143_v20  ;;  %5081 = vmatmul.mubr.msk.f32.gmra.mrb[10].mxu0 %vm301_vm1, %v6044_v3  ;;  %v1107_v3 = vld [vmem:[#allocation2 + $0xa] sm:$0xff] }
  0xa7   : > { %4860 = vmatprep.mubr.msk.f32.mxu1 %vm301_vm1, %v6145_v26  ;;  %5083 = vmatprep.mubr.msk.f32.mxu0 %vm301_vm1, %v6048_v61 }
  0xaa   : > { %4861 = vmatmul.mubr.msk.f32.gmra.mrb[30].mxu1 %vm301_vm1, %v6155_v12  ;;  %5084 = vmatmul.mubr.msk.f32.gmra.mrb[12].mxu0 %vm301_vm1, %v6060_v31 }
  0xab   : > { %4865 = vmatprep.mubr.msk.f32.mxu1 %vm301_vm1, %v1106_v16  ;;  %5086 = vmatprep.mubr.msk.f32.mxu0 %vm301_vm1, %v6064_v28  ;;  %v2698_v16 = vld [vmem:[#allocation2 + $0x1a0] sm:$0xff] }
  0xae   : > { %4866 = vmatmul.mubr.msk.f32.vlgmr.msra.gmra.mrb[0].mxu1 %vm301_vm1, %v1107_v3  ;;  %5087 = vmatmul.mubr.msk.f32.gmra.mrb[14].mxu0 %vm301_vm1, %v6074_v54  ;;  %v2697_v3 = vld [vmem:[#allocation2 + $0x198] sm:$0xff] }
  0xaf   : > { %4868 = vmatprep.mubr.msk.f32.mxu1 %vm301_vm1, %v5792_v55  ;;  %5089 = vmatprep.mubr.msk.f32.mxu0 %vm301_vm1, %v6076_v59  ;;  %v6215_v55 = vld [vmem:[#allocation2 + $0x180] sm:$0xff] }
  0xb0   : > { %4914 = vmatpush3.msk.msra.mxu1 %vm553_vm0, %v5938_v30  ;;  %v6761_v30 = vld [vmem:[#allocation24_spill] sm:$0xff] }
  0xb1   : > { %5213 = vmatprep.subr.msk.mxu1 %vm553_vm0, %v5596_v2 }
  0xb2   : > { %4869 = vmatmul.mubr.msk.f32.gmra.mrb[2].mxu1 %vm301_vm1, %v5810_v60  ;;  %5090 = vmatmul.mubr.msk.f32.gmra.mrb[16].mxu0 %vm301_vm1, %v6091_v56  ;;  %v6225_v60 = vld [vmem:[#allocation2 + $0x188] sm:$0xff] }
  0xb3   : > { %4871 = vmatprep.mubr.msk.f32.mxu1 %vm301_vm1, %v5814_v62  ;;  %5092 = vmatprep.mubr.msk.f32.mxu0 %vm301_vm1, %v6095_v38 }
  0xb6   : > { %4872 = vmatmul.mubr.msk.f32.gmra.mrb[4].mxu1 %vm301_vm1, %v5831_v1  ;;  %5093 = vmatmul.mubr.msk.f32.gmra.mrb[18].mxu0 %vm301_vm1, %v6107_v63 }
  0xb7   : > { %4874 = vmatprep.mubr.msk.f32.mxu1 %vm301_vm1, %v5837_v4  ;;  %5095 = vmatprep.mubr.msk.f32.mxu0 %vm301_vm1, %v6109_v42 }
  0xba   : > { %4875 = vmatmul.mubr.msk.f32.gmra.mrb[6].mxu1 %vm301_vm1, %v5851_v6  ;;  %5096 = vmatmul.mubr.msk.f32.gmra.mrb[20].mxu0 %vm301_vm1, %v6119_v45 }
  0xbb   : > { %4877 = vmatprep.mubr.msk.f32.mxu1 %vm301_vm1, %v5855_v9  ;;  %5098 = vmatprep.mubr.msk.f32.mxu0 %vm301_vm1, %v6121_v8 }
  0xbe   : > { %4878 = vmatmul.mubr.msk.f32.gmra.mrb[8].mxu1 %vm301_vm1, %v5867_v11  ;;  %5099 = vmatmul.mubr.msk.f32.gmra.mrb[22].mxu0 %vm301_vm1, %v6131_v58 }
  0xbf   : > { %4880 = vmatprep.mubr.msk.f32.mxu1 %vm301_vm1, %v5871_v13  ;;  %5101 = vmatprep.mubr.msk.f32.mxu0 %vm301_vm1, %v6133_v47 }
  0xc2   : > { %4881 = vmatmul.mubr.msk.f32.gmra.mrb[10].mxu1 %vm301_vm1, %v5883_v15  ;;  %5102 = vmatmul.mubr.msk.f32.gmra.mrb[24].mxu0 %vm301_vm1, %v6143_v20 }
  0xc3   : > { %4883 = vmatprep.mubr.msk.f32.mxu1 %vm301_vm1, %v5887_v17  ;;  %5104 = vmatprep.mubr.msk.f32.mxu0 %vm301_vm1, %v6145_v26 }
  0xc6   : > { %4884 = vmatmul.mubr.msk.f32.gmra.mrb[12].mxu1 %vm301_vm1, %v5899_v19  ;;  %5105 = vmatmul.mubr.msk.f32.gmra.mrb[26].mxu0 %vm301_vm1, %v6155_v12 }
  0xc7   : > { %4886 = vmatprep.mubr.msk.f32.mxu1 %vm301_vm1, %v5903_v21  ;;  %5107 = vmatprep.mubr.msk.f32.mxu0 %vm301_vm1, %v6215_v55 }
  0xca   : > { %4887 = vmatmul.mubr.msk.f32.gmra.mrb[14].mxu1 %vm301_vm1, %v5915_v23  ;;  %5108 = vmatmul.mubr.msk.f32.gmra.mrb[28].mxu0 %vm301_vm1, %v6225_v60 }
  0xcb   : > { %4889 = vmatprep.mubr.msk.f32.mxu1 %vm301_vm1, %v5917_v25  ;;  %5110 = vmatprep.mubr.msk.f32.mxu0 %vm301_vm1, %v2697_v3  ;;  %v6763_v3 = vld [vmem:[#allocation25_spill] sm:$0xff] }
  0xce   : > { %4890 = vmatmul.mubr.msk.f32.gmra.mrb[16].mxu1 %vm301_vm1, %v5926_v27  ;;  %5111 = vmatmul.mubr.msk.f32.gmra.mrb[30].mxu0 %vm301_vm1, %v2698_v16  ;;  %v6764_v16 = vld [vmem:[#allocation11_spill] sm:$0xff] }
  0xcf   : > { %4892 = vmatprep.mubr.msk.f32.mxu1 %vm301_vm1, %v5930_v29  ;;  %5115 = vmatprep.mubr.msk.f32.mxu0 %vm301_vm1, %v5680_v32  ;;  %v6747_v32 = vld [vmem:[#allocation31_spill] sm:$0xff] }
  0xd2   : > { %4893 = vmatmul.mubr.msk.f32.gmra.mrb[18].mxu1 %vm301_vm1, %v5946_v33  ;;  %5116 = vmatmul.mubr.msk.f32.vlgmr.msra.gmra.mrb[0].mxu0 %vm301_vm1, %v5698_v34  ;;  %v6748_v34 = vld [vmem:[#allocation3_spill] sm:$0xff] }
  0xd3   : > { %5164 = vmatpush3.msk.msra.mxu0 %vm553_vm0, %v6081_v0  ;;  %4895 = vmatprep.mubr.msk.f32.mxu1 %vm301_vm1, %v5952_v39  ;;  %v6760_v0 = vld [vmem:[#allocation9_spill] sm:$0xff] }
  0xd4   : > { %5118 = vmatprep.mubr.msk.f32.mxu0 %vm301_vm1, %v5702_v35  ;;  %v6749_v35 = vld [vmem:[#allocation18_spill] sm:$0xff] }
  0xd6   : > { %4896 = vmatmul.mubr.msk.f32.gmra.mrb[20].mxu1 %vm301_vm1, %v5966_v40  ;;  %5119 = vmatmul.mubr.msk.f32.gmra.mrb[2].mxu0 %vm301_vm1, %v5714_v36  ;;  %v6750_v36 = vld [vmem:[#allocation4_spill] sm:$0xff] }
  0xd7   : > { %4898 = vmatprep.mubr.msk.f32.mxu1 %vm301_vm1, %v5970_v44  ;;  %5121 = vmatprep.mubr.msk.f32.mxu0 %vm301_vm1, %v5716_v37  ;;  %v6751_v37 = vld [vmem:[#allocation19_spill] sm:$0xff] }
  0xda   : > { %4899 = vmatmul.mubr.msk.f32.gmra.mrb[22].mxu1 %vm301_vm1, %v5982_v46  ;;  %5122 = vmatmul.mubr.msk.f32.gmra.mrb[4].mxu0 %vm301_vm1, %v5730_v41  ;;  %v6752_v41 = vld [vmem:[#allocation5_spill] sm:$0xff] }
  0xdb   : > { %4901 = vmatprep.mubr.msk.f32.mxu1 %vm301_vm1, %v5986_v57  ;;  %5124 = vmatprep.mubr.msk.f32.mxu0 %vm301_vm1, %v5735_v43  ;;  %v6753_v43 = vld [vmem:[#allocation20_spill] sm:$0xff] }
  0xde   : > { %4902 = vmatmul.mubr.msk.f32.gmra.mrb[24].mxu1 %vm301_vm1, %v5998_v24  ;;  %5125 = vmatmul.mubr.msk.f32.gmra.mrb[6].mxu0 %vm301_vm1, %v5753_v48  ;;  %v6754_v48 = vld [vmem:[#allocation6_spill] sm:$0xff] }
  0xdf   : > { %4904 = vmatprep.mubr.msk.f32.mxu1 %vm301_vm1, %v6002_v22  ;;  %5127 = vmatprep.mubr.msk.f32.mxu0 %vm301_vm1, %v5756_v49  ;;  %v6755_v49 = vld [vmem:[#allocation21_spill] sm:$0xff] }
  0xe2   : > { %4905 = vmatmul.mubr.msk.f32.gmra.mrb[26].mxu1 %vm301_vm1, %v6014_v18  ;;  %5128 = vmatmul.mubr.msk.f32.gmra.mrb[8].mxu0 %vm301_vm1, %v5766_v50  ;;  %v6756_v50 = vld [vmem:[#allocation7_spill] sm:$0xff] }
  0xe3   : > { %4907 = vmatprep.mubr.msk.f32.mxu1 %vm301_vm1, %v6018_v14  ;;  %5130 = vmatprep.mubr.msk.f32.mxu0 %vm301_vm1, %v5768_v51  ;;  %v6757_v51 = vld [vmem:[#allocation22_spill] sm:$0xff] }
  0xe6   : > { %4908 = vmatmul.mubr.msk.f32.gmra.mrb[28].mxu1 %vm301_vm1, %v6030_v10  ;;  %5131 = vmatmul.mubr.msk.f32.gmra.mrb[10].mxu0 %vm301_vm1, %v5778_v52  ;;  %v6758_v52 = vld [vmem:[#allocation8_spill] sm:$0xff] }
  0xe7   : > { %4910 = vmatprep.mubr.msk.f32.mxu1 %vm301_vm1, %v6034_v5  ;;  %5133 = vmatprep.mubr.msk.f32.mxu0 %vm301_vm1, %v5780_v53  ;;  %v6759_v53 = vld [vmem:[#allocation23_spill] sm:$0xff] }
  0xea   : > { %4911 = vmatmul.mubr.msk.f32.gmra.mrb[30].mxu1 %vm301_vm1, %v6747_v32  ;;  %5134 = vmatmul.mubr.msk.f32.gmra.mrb[12].mxu0 %vm301_vm1, %v6748_v34  ;;  %v6765_v34 = vld [vmem:[#allocation26_spill] sm:$0xff] }
  0xeb   : > { %4915 = vmatprep.mubr.msk.f32.mxu1 %vm301_vm1, %v6749_v35  ;;  %5136 = vmatprep.mubr.msk.f32.mxu0 %vm301_vm1, %v6750_v36  ;;  %v6766_v35 = vld [vmem:[#allocation12_spill] sm:$0xff] }
  0xee   : > { %4916 = vmatmul.mubr.msk.f32.vlgmr.msra.gmra.mrb[0].mxu1 %vm301_vm1, %v6751_v37  ;;  %5137 = vmatmul.mubr.msk.f32.gmra.mrb[14].mxu0 %vm301_vm1, %v6752_v41  ;;  %v6767_v37 = vld [vmem:[#allocation27_spill] sm:$0xff] }
  0xef   : > { %4918 = vmatprep.mubr.msk.f32.mxu1 %vm301_vm1, %v6753_v43  ;;  %5139 = vmatprep.mubr.msk.f32.mxu0 %vm301_vm1, %v6754_v48  ;;  %v6768_v43 = vld [vmem:[#allocation13_spill] sm:$0xff] }
  0xf0   : > { %5214 = vmatpush3.msk.msra.mxu1 %vm553_vm0, %v5596_v2  ;;  %v6762_v2 = vld [vmem:[#allocation10_spill] sm:$0xff] }
  0xf2   : > { %4919 = vmatmul.mubr.msk.f32.gmra.mrb[2].mxu1 %vm301_vm1, %v6755_v49  ;;  %5140 = vmatmul.mubr.msk.f32.gmra.mrb[16].mxu0 %vm301_vm1, %v6756_v50  ;;  %v6769_v49 = vld [vmem:[#allocation28_spill] sm:$0xff] }
  0xf3   : > { %4921 = vmatprep.mubr.msk.f32.mxu1 %vm301_vm1, %v6757_v51  ;;  %5142 = vmatprep.mubr.msk.f32.mxu0 %vm301_vm1, %v6758_v52  ;;  %v6770_v51 = vld [vmem:[#allocation14_spill] sm:$0xff] }
  0xf6   : > { %4922 = vmatmul.mubr.msk.f32.gmra.mrb[4].mxu1 %vm301_vm1, %v6759_v53  ;;  %5143 = vmatmul.mubr.msk.f32.gmra.mrb[18].mxu0 %vm301_vm1, %v6760_v0  ;;  %v6771_v53 = vld [vmem:[#allocation29_spill] sm:$0xff] }
  0xf7   : > { %4924 = vmatprep.mubr.msk.f32.mxu1 %vm301_vm1, %v6761_v30  ;;  %5145 = vmatprep.mubr.msk.f32.mxu0 %vm301_vm1, %v6762_v2  ;;  %v6772_v30 = vld [vmem:[#allocation15_spill] sm:$0xff] }
  0xfa   : > { %4925 = vmatmul.mubr.msk.f32.gmra.mrb[6].mxu1 %vm301_vm1, %v6763_v3  ;;  %5146 = vmatmul.mubr.msk.f32.gmra.mrb[20].mxu0 %vm301_vm1, %v6764_v16  ;;  %v6773_v3 = vld [vmem:[#allocation16_spill] sm:$0xff] }
  0xfb   : > { %4927 = vmatprep.mubr.msk.f32.mxu1 %vm301_vm1, %v6765_v34  ;;  %5148 = vmatprep.mubr.msk.f32.mxu0 %vm301_vm1, %v6766_v35  ;;  %v6349_v34 = vld [vmem:[#allocation2 + $0x181] sm:$0xff] }
  0xfe   : > { %4928 = vmatmul.mubr.msk.f32.gmra.mrb[8].mxu1 %vm301_vm1, %v6767_v37  ;;  %5149 = vmatmul.mubr.msk.f32.gmra.mrb[22].mxu0 %vm301_vm1, %v6768_v43  ;;  %v6774_v37 = vld [vmem:[#allocation30_spill] sm:$0xff] }
  0xff   : > { %4930 = vmatprep.mubr.msk.f32.mxu1 %vm301_vm1, %v6769_v49  ;;  %5151 = vmatprep.mubr.msk.f32.mxu0 %vm301_vm1, %v6770_v51  ;;  %v6775_v49 = vld [vmem:[#allocation17_spill] sm:$0xff] }
 0x102   : > { %4931 = vmatmul.mubr.msk.f32.gmra.mrb[10].mxu1 %vm301_vm1, %v6771_v53  ;;  %5152 = vmatmul.mubr.msk.f32.gmra.mrb[24].mxu0 %vm301_vm1, %v6772_v30  ;;  %v6359_v53 = vld [vmem:[#allocation2 + $0x189] sm:$0xff] }
 0x103   : > { %4933 = vmatprep.mubr.msk.f32.mxu1 %vm301_vm1, %v6032_v7  ;;  %5154 = vmatprep.mubr.msk.f32.mxu0 %vm301_vm1, %v6773_v3  ;;  %v3087_v7 = vld [vmem:[#allocation2 + $0x199] sm:$0xff] }
 0x106   : > { %4934 = vmatmul.mubr.msk.f32.gmra.mrb[12].mxu1 %vm301_vm1, %v6774_v37  ;;  %5155 = vmatmul.mubr.msk.f32.gmra.mrb[26].mxu0 %vm301_vm1, %v6775_v49  ;;  %v3088_v37 = vld [vmem:[#allocation2 + $0x1a1] sm:$0xff] }
 0x107   : > { %4936 = vmatprep.mubr.msk.f32.mxu1 %vm301_vm1, %v6048_v61  ;;  %5157 = vmatprep.mubr.msk.f32.mxu0 %vm301_vm1, %v6349_v34  ;;  %v3478_v61 = vld [vmem:[#allocation2 + $0x1a2] sm:$0xff] }
 0x10a   : > { %4937 = vmatmul.mubr.msk.f32.gmra.mrb[14].mxu1 %vm301_vm1, %v6060_v31  ;;  %5158 = vmatmul.mubr.msk.f32.gmra.mrb[28].mxu0 %vm301_vm1, %v6359_v53 }
 0x10b   : > { %4939 = vmatprep.mubr.msk.f32.mxu1 %vm301_vm1, %v6064_v28  ;;  %5160 = vmatprep.mubr.msk.f32.mxu0 %vm301_vm1, %v3087_v7 }
 0x10e   : > { %4940 = vmatmul.mubr.msk.f32.gmra.mrb[16].mxu1 %vm301_vm1, %v6074_v54  ;;  %5161 = vmatmul.mubr.msk.f32.gmra.mrb[30].mxu0 %vm301_vm1, %v3088_v37  ;;  %v6776_v54 = vld [vmem:[#allocation32_spill] sm:$0xff] }
 0x10f   : > { %4942 = vmatprep.mubr.msk.f32.mxu1 %vm301_vm1, %v6076_v59  ;;  %5165 = vmatprep.mubr.msk.f32.mxu0 %vm301_vm1, %v5814_v62  ;;  %v6777_v59 = vld [vmem:[#allocation33_spill] sm:$0xff] }
 0x112   : > { %4943 = vmatmul.mubr.msk.f32.gmra.mrb[18].mxu1 %vm301_vm1, %v6091_v56  ;;  %5166 = vmatmul.mubr.msk.f32.vlgmr.msra.gmra.mrb[0].mxu0 %vm301_vm1, %v5831_v1  ;;  %v3477_v56 = vld [vmem:[#allocation2 + $0x19a] sm:$0xff] }
 0x113   : > { %4945 = vmatprep.mubr.msk.f32.mxu1 %vm301_vm1, %v6095_v38  ;;  %5168 = vmatprep.mubr.msk.f32.mxu0 %vm301_vm1, %v5837_v4 }
 0x116   : > { %4946 = vmatmul.mubr.msk.f32.gmra.mrb[20].mxu1 %vm301_vm1, %v6107_v63  ;;  %5169 = vmatmul.mubr.msk.f32.gmra.mrb[2].mxu0 %vm301_vm1, %v5851_v6 }
 0x117   : > { %4948 = vmatprep.mubr.msk.f32.mxu1 %vm301_vm1, %v6109_v42  ;;  %5171 = vmatprep.mubr.msk.f32.mxu0 %vm301_vm1, %v5855_v9 }
 0x11a   : > { %4949 = vmatmul.mubr.msk.f32.gmra.mrb[22].mxu1 %vm301_vm1, %v6119_v45  ;;  %5172 = vmatmul.mubr.msk.f32.gmra.mrb[4].mxu0 %vm301_vm1, %v5867_v11 }
 0x11b   : > { %4951 = vmatprep.mubr.msk.f32.mxu1 %vm301_vm1, %v6121_v8  ;;  %5174 = vmatprep.mubr.msk.f32.mxu0 %vm301_vm1, %v5871_v13 }
 0x11e   : > { %4952 = vmatmul.mubr.msk.f32.gmra.mrb[24].mxu1 %vm301_vm1, %v6131_v58  ;;  %5175 = vmatmul.mubr.msk.f32.gmra.mrb[6].mxu0 %vm301_vm1, %v5883_v15 }
 0x11f   : > { %4954 = vmatprep.mubr.msk.f32.mxu1 %vm301_vm1, %v6133_v47  ;;  %5177 = vmatprep.mubr.msk.f32.mxu0 %vm301_vm1, %v5887_v17 }
 0x122   : > { %4955 = vmatmul.mubr.msk.f32.gmra.mrb[26].mxu1 %vm301_vm1, %v6143_v20  ;;  %5178 = vmatmul.mubr.msk.f32.gmra.mrb[8].mxu0 %vm301_vm1, %v5899_v19 }
 0x123   : > { %4957 = vmatprep.mubr.msk.f32.mxu1 %vm301_vm1, %v6145_v26  ;;  %5180 = vmatprep.mubr.msk.f32.mxu0 %vm301_vm1, %v5903_v21 }
 0x126   : > { %4958 = vmatmul.mubr.msk.f32.gmra.mrb[28].mxu1 %vm301_vm1, %v6155_v12  ;;  %5181 = vmatmul.mubr.msk.f32.gmra.mrb[10].mxu0 %vm301_vm1, %v5915_v23 }
 0x127   : > { %4960 = vmatprep.mubr.msk.f32.mxu1 %vm301_vm1, %v6215_v55  ;;  %5183 = vmatprep.mubr.msk.f32.mxu0 %vm301_vm1, %v5917_v25 }
 0x12a   : > { %4961 = vmatmul.mubr.msk.f32.gmra.mrb[30].mxu1 %vm301_vm1, %v6225_v60  ;;  %5184 = vmatmul.mubr.msk.f32.gmra.mrb[12].mxu0 %vm301_vm1, %v5926_v27 }
 0x12b   : > { %4989 = vmatprep.mubr.msk.f32.mxu1 %vm301_vm1, %v6750_v36  ;;  %5186 = vmatprep.mubr.msk.f32.mxu0 %vm301_vm1, %v5930_v29 }
 0x12e   : > { %4990 = vmatmul.mubr.msk.f32.vlgmr.msra.gmra.mrb[16].mxu1 %vm301_vm1, %v6752_v41  ;;  %5187 = vmatmul.mubr.msk.f32.gmra.mrb[14].mxu0 %vm301_vm1, %v5946_v33 }
 0x12f   : > { %4992 = vmatprep.mubr.msk.f32.mxu1 %vm301_vm1, %v6754_v48  ;;  %5189 = vmatprep.mubr.msk.f32.mxu0 %vm301_vm1, %v5952_v39 }
 0x132   : > { %4993 = vmatmul.mubr.msk.f32.gmra.mrb[18].mxu1 %vm301_vm1, %v6756_v50  ;;  %5190 = vmatmul.mubr.msk.f32.gmra.mrb[16].mxu0 %vm301_vm1, %v5966_v40 }
 0x133   : > { %4995 = vmatprep.mubr.msk.f32.mxu1 %vm301_vm1, %v6758_v52  ;;  %5192 = vmatprep.mubr.msk.f32.mxu0 %vm301_vm1, %v5970_v44 }
 0x136   : > { %4996 = vmatmul.mubr.msk.f32.gmra.mrb[20].mxu1 %vm301_vm1, %v6760_v0  ;;  %5193 = vmatmul.mubr.msk.f32.gmra.mrb[18].mxu0 %vm301_vm1, %v5982_v46 }
 0x137   : > { %4998 = vmatprep.mubr.msk.f32.mxu1 %vm301_vm1, %v6762_v2  ;;  %5195 = vmatprep.mubr.msk.f32.mxu0 %vm301_vm1, %v5986_v57 }
 0x13a   : > { %4999 = vmatmul.mubr.msk.f32.gmra.mrb[22].mxu1 %vm301_vm1, %v6764_v16  ;;  %5196 = vmatmul.mubr.msk.f32.gmra.mrb[20].mxu0 %vm301_vm1, %v5998_v24 }
 0x13b   : > { %5001 = vmatprep.mubr.msk.f32.mxu1 %vm301_vm1, %v6766_v35  ;;  %5198 = vmatprep.mubr.msk.f32.mxu0 %vm301_vm1, %v6002_v22 }
 0x13e   : > { %5002 = vmatmul.mubr.msk.f32.gmra.mrb[24].mxu1 %vm301_vm1, %v6768_v43  ;;  %5199 = vmatmul.mubr.msk.f32.gmra.mrb[22].mxu0 %vm301_vm1, %v6014_v18 }
 0x13f   : > { %5004 = vmatprep.mubr.msk.f32.mxu1 %vm301_vm1, %v6770_v51  ;;  %5201 = vmatprep.mubr.msk.f32.mxu0 %vm301_vm1, %v6018_v14 }
 0x142   : > { %5005 = vmatmul.mubr.msk.f32.gmra.mrb[26].mxu1 %vm301_vm1, %v6772_v30  ;;  %5202 = vmatmul.mubr.msk.f32.gmra.mrb[24].mxu0 %vm301_vm1, %v6030_v10 }
 0x143   : > { %5007 = vmatprep.mubr.msk.f32.mxu1 %vm301_vm1, %v6773_v3  ;;  %5204 = vmatprep.mubr.msk.f32.mxu0 %vm301_vm1, %v6034_v5 }
 0x146   : > { %5008 = vmatmul.mubr.msk.f32.gmra.mrb[28].mxu1 %vm301_vm1, %v6775_v49  ;;  %5205 = vmatmul.mubr.msk.f32.gmra.mrb[26].mxu0 %vm301_vm1, %v6747_v32 }
 0x147   : > { %5010 = vmatprep.mubr.msk.f32.mxu1 %vm301_vm1, %v6349_v34  ;;  %5207 = vmatprep.mubr.msk.f32.mxu0 %vm301_vm1, %v6776_v54 }
 0x14a   : > { %5011 = vmatmul.mubr.msk.f32.gmra.mrb[30].mxu1 %vm301_vm1, %v6359_v53  ;;  %5208 = vmatmul.mubr.msk.f32.gmra.mrb[28].mxu0 %vm301_vm1, %v6777_v59 }
 0x14b   : > { %5210 = vmatprep.mubr.msk.f32.mxu0 %vm301_vm1, %v3477_v56 }
 0x14e   : > { %5211 = vmatmul.mubr.msk.f32.gmra.mrb[30].mxu0 %vm301_vm1, %v3478_v61 }
 0x1c1   : > { %v4917_v62 = vpop.f32.mrb[0].mxu1 }
 0x1c2   : > { %v1695_v1 = vpop.f32.mrb[1].mxu1 }
 0x1c5   : > { %v4920_v4 = vpop.f32.mrb[2].mxu1 }
 0x1c6   : > { %v1705_v5 = vpop.f32.mrb[3].mxu1 }
 0x1c9   : > { %v4923_v6 = vpop.f32.mrb[4].mxu1 }
 0x1ca   : > { %v1715_v9 = vpop.f32.mrb[5].mxu1 }
 0x1cd   : > { %v4926_v10 = vpop.f32.mrb[6].mxu1 }
 0x1ce   : > { %v1725_v11 = vpop.f32.mrb[7].mxu1 }
 0x1d1   : > { %v6493_v12 = vpop.f32.mrb[8].mxu1 }
 0x1d2   : > { %v6495_v13 = vpop.f32.mrb[9].mxu1 }
 0x1d5   : > { %v6497_v14 = vpop.f32.mrb[10].mxu1 }
 0x1d6   : > { %v6499_v15 = vpop.f32.mrb[11].mxu1 }
 0x1d9   : > { %v6501_v17 = vpop.f32.mrb[12].mxu1 }
 0x1da   : > { %v6503_v18 = vpop.f32.mrb[13].mxu1 }
 0x1dd   : > { %v6505_v19 = vpop.f32.mrb[14].mxu1 }
 0x1de   : > { %v6507_v20 = vpop.f32.mrb[15].mxu1 }
 0x1e5   : > { %v5167_v21 = vpop.f32.mrb[0].mxu0 }
 0x1e6   : > { %v5215_v22 = vadd.f32 %v5167_v21, %v4917_v62  ;;  %v3646_v23 = vpop.f32.mrb[1].mxu0 }
 0x1e7   : > { %v5216_v25 = vadd.f32 %v3646_v23, %v1695_v1 }
 0x1e8   : > { %3839 = vst.msk [vmem:[%s6514_s3 + $0x8] sm:$0xff] %vm3837_vm3, %v5215_v22  ;;  %v3871_v27 = vsel %vm3837_vm3, %v5215_v22, 0.0  ;;  %v3942_v28 = vmul.f32 %v5215_v22, %v5215_v22 }
 0x1e9   : > { %3838 = vst.msk [vmem:[%s6514_s3] sm:$0xff] %vm3837_vm3, %v5216_v25  ;;  %v3870_v29 = vsel %vm3837_vm3, %v5216_v25, 0.0  ;;  %v3941_v31 = vmul.f32 %v5216_v25, %v5216_v25  ;;  %v5170_v33 = vpop.f32.mrb[2].mxu0 }
 0x1ea   : > { %v3974_v38 = vsel %vm3837_vm3, %v3942_v28, 0.0  ;;  %v3872_v39 = vadd.f32 %v3871_v27, %v3870_v29  ;;  %v5217_v8 = vadd.f32 %v5170_v33, %v4920_v4  ;;  %v3656_v40 = vpop.f32.mrb[3].mxu0 }
 0x1eb   : > { %v3973_v42 = vsel %vm3837_vm3, %v3941_v31, 0.0  ;;  %v5218_v44 = vadd.f32 %v3656_v40, %v1705_v5 }
 0x1ec   : > { %v3975_v45 = vadd.f32 %v3974_v38, %v3973_v42  ;;  %3841 = vst.msk [vmem:[%s6514_s3 + $0x18] sm:$0xff] %vm3837_vm3, %v5217_v8  ;;  %v3944_v46 = vmul.f32 %v5217_v8, %v5217_v8  ;;  %v3875_v55 = vsel %vm3837_vm3, %v5217_v8, 0.0 }
 0x1ed   : > { %3840 = vst.msk [vmem:[%s6514_s3 + $0x10] sm:$0xff] %vm3837_vm3, %v5218_v44  ;;  %v3873_v47 = vsel %vm3837_vm3, %v5218_v44, 0.0  ;;  %v3943_v57 = vmul.f32 %v5218_v44, %v5218_v44  ;;  %v5173_v58 = vpop.f32.mrb[4].mxu0 }
 0x1ee   : > { %v3874_v24 = vadd.f32 %v3873_v47, %v3872_v39  ;;  %v5219_v26 = vadd.f32 %v5173_v58, %v4923_v6  ;;  %v3666_v63 = vpop.f32.mrb[5].mxu0  ;;  %v3978_v48 = vsel %vm3837_vm3, %v3944_v46, 0.0 }
 0x1ef   : > { %v3976_v60 = vsel %vm3837_vm3, %v3943_v57, 0.0  ;;  %v5220_v32 = vadd.f32 %v3666_v63, %v1715_v9 }
 0x1f0   : > { %v3977_v36 = vadd.f32 %v3976_v60, %v3975_v45  ;;  %3843 = vst.msk [vmem:[%s6514_s3 + $0x28] sm:$0xff] %vm3837_vm3, %v5219_v26  ;;  %v3876_v41 = vadd.f32 %v3875_v55, %v3874_v24  ;;  %v3946_v50 = vmul.f32 %v5219_v26, %v5219_v26  ;;  %v3879_v30 = vsel %vm3837_vm3, %v5219_v26, 0.0 }
 0x1f1   : > { %3842 = vst.msk [vmem:[%s6514_s3 + $0x20] sm:$0xff] %vm3837_vm3, %v5220_v32  ;;  %v3877_v52 = vsel %vm3837_vm3, %v5220_v32, 0.0  ;;  %v3945_v0 = vmul.f32 %v5220_v32, %v5220_v32  ;;  %v5176_v2 = vpop.f32.mrb[6].mxu0 }
 0x1f2   : > { %v3878_v16 = vadd.f32 %v3877_v52, %v3876_v41  ;;  %v3979_v35 = vadd.f32 %v3978_v48, %v3977_v36  ;;  %v5221_v43 = vadd.f32 %v5176_v2, %v4926_v10  ;;  %v3676_v51 = vpop.f32.mrb[7].mxu0  ;;  %v3982_v7 = vsel %vm3837_vm3, %v3946_v50, 0.0 }
 0x1f3   : > { %v3980_v3 = vsel %vm3837_vm3, %v3945_v0, 0.0  ;;  %v5222_v34 = vadd.f32 %v3676_v51, %v1725_v11 }
 0x1f4   : > { %v3981_v49 = vadd.f32 %v3980_v3, %v3979_v35  ;;  %3845 = vst.msk [vmem:[%s6514_s3 + $0x38] sm:$0xff] %vm3837_vm3, %v5221_v43  ;;  %v3880_v53 = vadd.f32 %v3879_v30, %v3878_v16  ;;  %v3948_v37 = vmul.f32 %v5221_v43, %v5221_v43  ;;  %v3883_v5 = vsel %vm3837_vm3, %v5221_v43, 0.0 }
 0x1f5   : > { %3844 = vst.msk [vmem:[%s6514_s3 + $0x30] sm:$0xff] %vm3837_vm3, %v5222_v34  ;;  %v3881_v54 = vsel %vm3837_vm3, %v5222_v34, 0.0  ;;  %v3947_v56 = vmul.f32 %v5222_v34, %v5222_v34  ;;  %v5179_v59 = vpop.f32.mrb[8].mxu0 }
 0x1f6   : > { %v3882_v61 = vadd.f32 %v3881_v54, %v3880_v53  ;;  %v3983_v62 = vadd.f32 %v3982_v7, %v3981_v49  ;;  %v5223_v1 = vadd.f32 %v5179_v59, %v6493_v12  ;;  %v3686_v4 = vpop.f32.mrb[9].mxu0  ;;  %v3986_v21 = vsel %vm3837_vm3, %v3948_v37, 0.0 }
 0x1f7   : > { %v3984_v6 = vsel %vm3837_vm3, %v3947_v56, 0.0  ;;  %v5224_v9 = vadd.f32 %v3686_v4, %v6495_v13 }
 0x1f8   : > { %v3985_v10 = vadd.f32 %v3984_v6, %v3983_v62  ;;  %3847 = vst.msk [vmem:[%s6514_s3 + $0x48] sm:$0xff] %vm3837_vm3, %v5223_v1  ;;  %v3884_v11 = vadd.f32 %v3883_v5, %v3882_v61  ;;  %v3950_v22 = vmul.f32 %v5223_v1, %v5223_v1  ;;  %v3887_v31 = vsel %vm3837_vm3, %v5223_v1, 0.0 }
 0x1f9   : > { %3846 = vst.msk [vmem:[%s6514_s3 + $0x40] sm:$0xff] %vm3837_vm3, %v5224_v9  ;;  %v3885_v12 = vsel %vm3837_vm3, %v5224_v9, 0.0  ;;  %v3949_v23 = vmul.f32 %v5224_v9, %v5224_v9  ;;  %v5182_v25 = vpop.f32.mrb[10].mxu0 }
 0x1fa   : > { %v3886_v27 = vadd.f32 %v3885_v12, %v3884_v11  ;;  %v3987_v28 = vadd.f32 %v3986_v21, %v3985_v10  ;;  %v5225_v29 = vadd.f32 %v5182_v25, %v6497_v14  ;;  %v3696_v13 = vpop.f32.mrb[11].mxu0  ;;  %v3990_v40 = vsel %vm3837_vm3, %v3950_v22, 0.0 }
 0x1fb   : > { %v3988_v33 = vsel %vm3837_vm3, %v3949_v23, 0.0  ;;  %v5226_v38 = vadd.f32 %v3696_v13, %v6499_v15 }
 0x1fc   : > { %v3989_v39 = vadd.f32 %v3988_v33, %v3987_v28  ;;  %3849 = vst.msk [vmem:[%s6514_s3 + $0x58] sm:$0xff] %vm3837_vm3, %v5225_v29  ;;  %v3888_v8 = vadd.f32 %v3887_v31, %v3886_v27  ;;  %v3952_v42 = vmul.f32 %v5225_v29, %v5225_v29  ;;  %v3891_v58 = vsel %vm3837_vm3, %v5225_v29, 0.0 }
 0x1fd   : > { %3848 = vst.msk [vmem:[%s6514_s3 + $0x50] sm:$0xff] %vm3837_vm3, %v5226_v38  ;;  %v3889_v14 = vsel %vm3837_vm3, %v5226_v38, 0.0  ;;  %v3951_v44 = vmul.f32 %v5226_v38, %v5226_v38  ;;  %v5185_v45 = vpop.f32.mrb[12].mxu0 }
 0x1fe   : > { %v3890_v46 = vadd.f32 %v3889_v14, %v3888_v8  ;;  %v3991_v47 = vadd.f32 %v3990_v40, %v3989_v39  ;;  %v5227_v57 = vadd.f32 %v5185_v45, %v6501_v17  ;;  %v3706_v15 = vpop.f32.mrb[13].mxu0  ;;  %v3994_v60 = vsel %vm3837_vm3, %v3952_v42, 0.0 }
 0x1ff   : > { %v3992_v24 = vsel %vm3837_vm3, %v3951_v44, 0.0  ;;  %v5228_v26 = vadd.f32 %v3706_v15, %v6503_v18 }
 0x200   : > { %v3993_v63 = vadd.f32 %v3992_v24, %v3991_v47  ;;  %3851 = vst.msk [vmem:[%s6514_s3 + $0x68] sm:$0xff] %vm3837_vm3, %v5227_v57  ;;  %v3892_v55 = vadd.f32 %v3891_v58, %v3890_v46  ;;  %v3954_v32 = vmul.f32 %v5227_v57, %v5227_v57  ;;  %v3895_v16 = vsel %vm3837_vm3, %v5227_v57, 0.0 }
 0x201   : > { %3850 = vst.msk [vmem:[%s6514_s3 + $0x60] sm:$0xff] %vm3837_vm3, %v5228_v26  ;;  %v3893_v36 = vsel %vm3837_vm3, %v5228_v26, 0.0  ;;  %v3953_v17 = vmul.f32 %v5228_v26, %v5228_v26  ;;  %v4991_v41 = vpop.f32.mrb[16].mxu1  ;;  %v5188_v48 = vpop.f32.mrb[14].mxu0 }
 0x202   : > { %v3894_v50 = vadd.f32 %v3893_v36, %v3892_v55  ;;  %v3995_v52 = vadd.f32 %v3994_v60, %v3993_v63  ;;  %v5229_v18 = vadd.f32 %v5188_v48, %v6505_v19  ;;  %v2165_v0 = vpop.f32.mrb[17].mxu1  ;;  %v3716_v2 = vpop.f32.mrb[15].mxu0  ;;  %v3998_v3 = vsel %vm3837_vm3, %v3954_v32, 0.0 }
 0x203   : > { %v3996_v35 = vsel %vm3837_vm3, %v3953_v17, 0.0  ;;  %v5230_v43 = vadd.f32 %v3716_v2, %v6507_v20 }
 0x204   : > { %v3997_v51 = vadd.f32 %v3996_v35, %v3995_v52  ;;  %3853 = vst.msk [vmem:[%s6514_s3 + $0x78] sm:$0xff] %vm3837_vm3, %v5229_v18  ;;  %v3896_v30 = vadd.f32 %v3895_v16, %v3894_v50  ;;  %v3956_v34 = vmul.f32 %v5229_v18, %v5229_v18  ;;  %v3899_v61 = vsel %vm3837_vm3, %v5229_v18, 0.0 }
 0x205   : > { %3852 = vst.msk [vmem:[%s6514_s3 + $0x70] sm:$0xff] %vm3837_vm3, %v5230_v43  ;;  %v3897_v19 = vsel %vm3837_vm3, %v5230_v43, 0.0  ;;  %v3955_v49 = vmul.f32 %v5230_v43, %v5230_v43  ;;  %v4994_v53 = vpop.f32.mrb[18].mxu1  ;;  %v5191_v7 = vpop.f32.mrb[16].mxu0 }
 0x206   : > { %v3898_v37 = vadd.f32 %v3897_v19, %v3896_v30  ;;  %v3999_v54 = vadd.f32 %v3998_v3, %v3997_v51  ;;  %v5231_v56 = vadd.f32 %v5191_v7, %v4991_v41  ;;  %v2175_v20 = vpop.f32.mrb[19].mxu1  ;;  %v3726_v59 = vpop.f32.mrb[17].mxu0  ;;  %v4002_v6 = vsel %vm3837_vm3, %v3956_v34, 0.0 }
 0x207   : > { %v4000_v62 = vsel %vm3837_vm3, %v3955_v49, 0.0  ;;  %v5232_v1 = vadd.f32 %v3726_v59, %v2165_v0 }
 0x208   : > { %v4001_v4 = vadd.f32 %v4000_v62, %v3999_v54  ;;  %3855 = vst.msk [vmem:[%s6514_s3 + $0x88] sm:$0xff] %vm3837_vm3, %v5231_v56  ;;  %v3900_v5 = vadd.f32 %v3899_v61, %v3898_v37  ;;  %v3958_v9 = vmul.f32 %v5231_v56, %v5231_v56  ;;  %v3903_v29 = vsel %vm3837_vm3, %v5231_v56, 0.0 }
 0x209   : > { %3854 = vst.msk [vmem:[%s6514_s3 + $0x80] sm:$0xff] %vm3837_vm3, %v5232_v1  ;;  %v3901_v10 = vsel %vm3837_vm3, %v5232_v1, 0.0  ;;  %v3957_v11 = vmul.f32 %v5232_v1, %v5232_v1  ;;  %v4997_v21 = vpop.f32.mrb[20].mxu1  ;;  %v5194_v22 = vpop.f32.mrb[18].mxu0 }
 0x20a   : > { %v3902_v12 = vadd.f32 %v3901_v10, %v3900_v5  ;;  %v4003_v23 = vadd.f32 %v4002_v6, %v4001_v4  ;;  %v5233_v25 = vadd.f32 %v5194_v22, %v4994_v53  ;;  %v2185_v27 = vpop.f32.mrb[21].mxu1  ;;  %v3736_v28 = vpop.f32.mrb[19].mxu0  ;;  %v4006_v39 = vsel %vm3837_vm3, %v3958_v9, 0.0 }
 0x20b   : > { %v4004_v13 = vsel %vm3837_vm3, %v3957_v11, 0.0  ;;  %v5234_v31 = vadd.f32 %v3736_v28, %v2175_v20 }
 0x20c   : > { %v4005_v33 = vadd.f32 %v4004_v13, %v4003_v23  ;;  %3857 = vst.msk [vmem:[%s6514_s3 + $0x98] sm:$0xff] %vm3837_vm3, %v5233_v25  ;;  %v3904_v38 = vadd.f32 %v3903_v29, %v3902_v12  ;;  %v3960_v8 = vmul.f32 %v5233_v25, %v5233_v25  ;;  %v3907_v58 = vsel %vm3837_vm3, %v5233_v25, 0.0 }
 0x20d   : > { %3856 = vst.msk [vmem:[%s6514_s3 + $0x90] sm:$0xff] %vm3837_vm3, %v5234_v31  ;;  %v3905_v40 = vsel %vm3837_vm3, %v5234_v31, 0.0  ;;  %v3959_v42 = vmul.f32 %v5234_v31, %v5234_v31  ;;  %v5000_v14 = vpop.f32.mrb[22].mxu1  ;;  %v5197_v44 = vpop.f32.mrb[20].mxu0 }
 0x20e   : > { %v3906_v45 = vadd.f32 %v3905_v40, %v3904_v38  ;;  %v4007_v46 = vadd.f32 %v4006_v39, %v4005_v33  ;;  %v5235_v47 = vadd.f32 %v5197_v44, %v4997_v21  ;;  %v2195_v57 = vpop.f32.mrb[23].mxu1  ;;  %v3746_v15 = vpop.f32.mrb[21].mxu0  ;;  %v4010_v60 = vsel %vm3837_vm3, %v3960_v8, 0.0 }
 0x20f   : > { %v4008_v24 = vsel %vm3837_vm3, %v3959_v42, 0.0  ;;  %v5236_v26 = vadd.f32 %v3746_v15, %v2185_v27 }
 0x210   : > { %v4009_v63 = vadd.f32 %v4008_v24, %v4007_v46  ;;  %3859 = vst.msk [vmem:[%s6514_s3 + $0xa8] sm:$0xff] %vm3837_vm3, %v5235_v47  ;;  %v3908_v55 = vadd.f32 %v3907_v58, %v3906_v45  ;;  %v3962_v32 = vmul.f32 %v5235_v47, %v5235_v47  ;;  %v3911_v16 = vsel %vm3837_vm3, %v5235_v47, 0.0 }
 0x211   : > { %3858 = vst.msk [vmem:[%s6514_s3 + $0xa0] sm:$0xff] %vm3837_vm3, %v5236_v26  ;;  %v3909_v36 = vsel %vm3837_vm3, %v5236_v26, 0.0  ;;  %v3961_v17 = vmul.f32 %v5236_v26, %v5236_v26  ;;  %v5003_v41 = vpop.f32.mrb[24].mxu1  ;;  %v5200_v48 = vpop.f32.mrb[22].mxu0 }
 0x212   : > { %v3910_v50 = vadd.f32 %v3909_v36, %v3908_v55  ;;  %v4011_v52 = vadd.f32 %v4010_v60, %v4009_v63  ;;  %v5237_v18 = vadd.f32 %v5200_v48, %v5000_v14  ;;  %v2205_v0 = vpop.f32.mrb[25].mxu1  ;;  %v3756_v2 = vpop.f32.mrb[23].mxu0  ;;  %v4014_v3 = vsel %vm3837_vm3, %v3962_v32, 0.0 }
 0x213   : > { %v4012_v35 = vsel %vm3837_vm3, %v3961_v17, 0.0  ;;  %v5238_v43 = vadd.f32 %v3756_v2, %v2195_v57 }
 0x214   : > { %v4013_v51 = vadd.f32 %v4012_v35, %v4011_v52  ;;  %3861 = vst.msk [vmem:[%s6514_s3 + $0xb8] sm:$0xff] %vm3837_vm3, %v5237_v18  ;;  %v3912_v30 = vadd.f32 %v3911_v16, %v3910_v50  ;;  %v3964_v34 = vmul.f32 %v5237_v18, %v5237_v18  ;;  %v3915_v61 = vsel %vm3837_vm3, %v5237_v18, 0.0 }
 0x215   : > { %3860 = vst.msk [vmem:[%s6514_s3 + $0xb0] sm:$0xff] %vm3837_vm3, %v5238_v43  ;;  %v3913_v19 = vsel %vm3837_vm3, %v5238_v43, 0.0  ;;  %v3963_v49 = vmul.f32 %v5238_v43, %v5238_v43  ;;  %v5006_v53 = vpop.f32.mrb[26].mxu1  ;;  %v5203_v7 = vpop.f32.mrb[24].mxu0 }
 0x216   : > { %v3914_v37 = vadd.f32 %v3913_v19, %v3912_v30  ;;  %v4015_v54 = vadd.f32 %v4014_v3, %v4013_v51  ;;  %v5239_v56 = vadd.f32 %v5203_v7, %v5003_v41  ;;  %v2215_v20 = vpop.f32.mrb[27].mxu1  ;;  %v3766_v59 = vpop.f32.mrb[25].mxu0  ;;  %v4018_v6 = vsel %vm3837_vm3, %v3964_v34, 0.0 }
 0x217   : > { %v4016_v62 = vsel %vm3837_vm3, %v3963_v49, 0.0  ;;  %v5240_v1 = vadd.f32 %v3766_v59, %v2205_v0 }
 0x218   : > { %v4017_v4 = vadd.f32 %v4016_v62, %v4015_v54  ;;  %3863 = vst.msk [vmem:[%s6514_s3 + $0xc8] sm:$0xff] %vm3837_vm3, %v5239_v56  ;;  %v3916_v5 = vadd.f32 %v3915_v61, %v3914_v37  ;;  %v3966_v9 = vmul.f32 %v5239_v56, %v5239_v56  ;;  %v3919_v29 = vsel %vm3837_vm3, %v5239_v56, 0.0 }
 0x219   : > { %3862 = vst.msk [vmem:[%s6514_s3 + $0xc0] sm:$0xff] %vm3837_vm3, %v5240_v1  ;;  %v3917_v10 = vsel %vm3837_vm3, %v5240_v1, 0.0  ;;  %v3965_v11 = vmul.f32 %v5240_v1, %v5240_v1  ;;  %v5009_v21 = vpop.f32.mrb[28].mxu1  ;;  %v5206_v22 = vpop.f32.mrb[26].mxu0 }
 0x21a   : > { %v3918_v12 = vadd.f32 %v3917_v10, %v3916_v5  ;;  %v4019_v23 = vadd.f32 %v4018_v6, %v4017_v4  ;;  %v5241_v25 = vadd.f32 %v5206_v22, %v5006_v53  ;;  %v2225_v27 = vpop.f32.mrb[29].mxu1  ;;  %v3776_v28 = vpop.f32.mrb[27].mxu0  ;;  %v4022_v39 = vsel %vm3837_vm3, %v3966_v9, 0.0 }
 0x21b   : > { %v4020_v13 = vsel %vm3837_vm3, %v3965_v11, 0.0  ;;  %v5242_v31 = vadd.f32 %v3776_v28, %v2215_v20 }
 0x21c   : > { %v4021_v33 = vadd.f32 %v4020_v13, %v4019_v23  ;;  %3865 = vst.msk [vmem:[%s6514_s3 + $0xd8] sm:$0xff] %vm3837_vm3, %v5241_v25  ;;  %v3920_v38 = vadd.f32 %v3919_v29, %v3918_v12  ;;  %v3968_v8 = vmul.f32 %v5241_v25, %v5241_v25  ;;  %v3923_v58 = vsel %vm3837_vm3, %v5241_v25, 0.0 }
 0x21d   : > { %3864 = vst.msk [vmem:[%s6514_s3 + $0xd0] sm:$0xff] %vm3837_vm3, %v5242_v31  ;;  %v3921_v40 = vsel %vm3837_vm3, %v5242_v31, 0.0  ;;  %v3967_v42 = vmul.f32 %v5242_v31, %v5242_v31  ;;  %v5012_v14 = vpop.f32.mrb[30].mxu1  ;;  %v5209_v44 = vpop.f32.mrb[28].mxu0 }
 0x21e   : > { %v3922_v45 = vadd.f32 %v3921_v40, %v3920_v38  ;;  %v4023_v46 = vadd.f32 %v4022_v39, %v4021_v33  ;;  %v5243_v47 = vadd.f32 %v5209_v44, %v5009_v21  ;;  %v2235_v57 = vpop.f32.mrb[31].mxu1  ;;  %v3786_v15 = vpop.f32.mrb[29].mxu0  ;;  %v4026_v60 = vsel %vm3837_vm3, %v3968_v8, 0.0 }
 0x21f   : > { %v4024_v24 = vsel %vm3837_vm3, %v3967_v42, 0.0  ;;  %v5244_v26 = vadd.f32 %v3786_v15, %v2225_v27 }
 0x220   : > { %v4025_v63 = vadd.f32 %v4024_v24, %v4023_v46  ;;  %3867 = vst.msk [vmem:[%s6514_s3 + $0xe8] sm:$0xff] %vm3837_vm3, %v5243_v47  ;;  %v3924_v55 = vadd.f32 %v3923_v58, %v3922_v45  ;;  %v3970_v32 = vmul.f32 %v5243_v47, %v5243_v47  ;;  %v3927_v0 = vsel %vm3837_vm3, %v5243_v47, 0.0 }
 0x221   : > { %3866 = vst.msk [vmem:[%s6514_s3 + $0xe0] sm:$0xff] %vm3837_vm3, %v5244_v26  ;;  %v3925_v36 = vsel %vm3837_vm3, %v5244_v26, 0.0  ;;  %v3969_v17 = vmul.f32 %v5244_v26, %v5244_v26  ;;  %v5212_v41 = vpop.f32.mrb[30].mxu0 }
 0x222   : > { %v3926_v48 = vadd.f32 %v3925_v36, %v3924_v55  ;;  %v4027_v50 = vadd.f32 %v4026_v60, %v4025_v63  ;;  %v5245_v52 = vadd.f32 %v5212_v41, %v5012_v14  ;;  %v3796_v18 = vpop.f32.mrb[31].mxu0  ;;  %v4030_v30 = vsel %vm3837_vm3, %v3970_v32, 0.0 }
 0x223   : > { %v4028_v2 = vsel %vm3837_vm3, %v3969_v17, 0.0  ;;  %v5246_v16 = vadd.f32 %v3796_v18, %v2235_v57 }
 0x224   : > { %v4029_v35 = vadd.f32 %v4028_v2, %v4027_v50  ;;  %3869 = vst.msk [vmem:[%s6514_s3 + $0xf8] sm:$0xff] %vm3837_vm3, %v5245_v52  ;;  %v3972_v43 = vmul.f32 %v5245_v52, %v5245_v52  ;;  %v3928_v51 = vadd.f32 %v3927_v0, %v3926_v48  ;;  %v3931_v7 = vsel %vm3837_vm3, %v5245_v52, 0.0 }
 0x225   : > { %3868 = vst.msk [vmem:[%s6514_s3 + $0xf0] sm:$0xff] %vm3837_vm3, %v5246_v16  ;;  %v3929_v3 = vsel %vm3837_vm3, %v5246_v16, 0.0  ;;  %v3971_v34 = vmul.f32 %v5246_v16, %v5246_v16 }
 0x226   : > { %v4034_v19 = vsel %vm3837_vm3, %v3972_v43, 0.0  ;;  %v3930_v49 = vadd.f32 %v3929_v3, %v3928_v51  ;;  %v4031_v53 = vadd.f32 %v4030_v30, %v4029_v35 }
 0x227   : > { %v4032_v37 = vsel %vm3837_vm3, %v3971_v34, 0.0 }
 0x228   : > { %v3932_v54 = vadd.f32 %v3931_v7, %v3930_v49  ;;  %v4033_v56 = vadd.f32 %v4032_v37, %v4031_v53 }
 0x22a   : > { %v3933_v20 = vrot.slane %v3932_v54, 4  ;;  %v4035_v59 = vadd.f32 %v4034_v19, %v4033_v56 }
 0x22c   : > { %v3934_v61 = vadd.f32 %v3933_v20, %v3932_v54  ;;  %v4036_v62 = vrot.slane %v4035_v59, 4 }
 0x22e   : > { %v3935_v1 = vrot.slane %v3934_v61, 2  ;;  %v4037_v4 = vadd.f32 %v4036_v62, %v4035_v59 }
 0x230   : > { %v3936_v5 = vadd.f32 %v3935_v1, %v3934_v61  ;;  %v4038_v6 = vrot.slane %v4037_v4, 2 }
 0x232   : > { %v3937_v9 = vrot.slane %v3936_v5, 1  ;;  %v4039_v10 = vadd.f32 %v4038_v6, %v4037_v4 }
 0x234   : > { %v3938_v11 = vadd.f32 %v3937_v9, %v3936_v5  ;;  %v4040_v21 = vrot.slane %v4039_v10, 1 }
 0x236   : > { %3940 = vst.msk [vmem:[%s265_s24] sm:$0x1] %vm3939_vm4, %v3938_v11  ;;  %v4041_v22 = vadd.f32 %v4040_v21, %v4039_v10 }
 0x238   : > { %4042 = vst.msk [vmem:[%s268_s27] sm:$0x1] %vm3939_vm4, %v4041_v22 }
 0x239 PF: > { %s17_s21 = sadd.s32 1, %s5486_s21  }
 0x23a   : > { %p14_p4 = scmp.ge.s32.totalorder %s17_s21, 4  }
 0x23c   :  { %16 = sbr.rel (!%p14_p4) target bundleno = 1 (0x1), region = 100 }

// kernel: double_conv.4
= control target key start
LH: loop header
LB: loop body
LE: loop exit
PB: predicated region body
PF: predicated region fallthrough
CT: control target
= control target key end

     0   :  { %s5599_s21 = smov 0   ;;  %s6792_s0 = inlined_call_operand.vmem [shape: f32[2,16,16,8], index: 0, kind: input, shape index: {}]   ;;  %s6793_s1 = inlined_call_operand.vmem [shape: f32[9,8,8], index: 1, kind: input, shape index: {}]   ;;  %s6794_s2 = inlined_call_operand.vmem [shape: f32[1,8], index: 2, kind: input, shape index: {}]   ;;  %s6795_s3 = inlined_call_operand.vmem [shape: f32[1,8], index: 3, kind: input, shape index: {}]   ;;  %s6796_s4 = inlined_call_operand.vmem [shape: f32[2,16,16,8], index: 4, kind: output, shape index: {0}]   ;;  %s6797_s5 = inlined_call_operand.vmem [shape: f32[2,1,8], index: 5, kind: output, shape index: {1}]   ;;  %s6798_s6 = inlined_call_operand.vmem [shape: f32[2,1,8], index: 6, kind: output, shape index: {2}]  }
   0x1 LB: > { %s4229_s22 = sadd.s32 4294967295, %s5561_s21   ;;  %p4233_p0 = scmp.ge.s32.totalorder %s5561_s21, 1  ;;  %s5561_s21 = sphi %s5599_s21, %s17_s21  }
   0x2   : > { %p217_p1 = scmp.lt.s32.totalorder %s5561_s21, 3 }
   0x4   : > { %p218_p2 = pnand %p4233_p0, %p217_p1 }
   0x6   : > { %221 = sbr.rel (%p218_p2) target bundleno = 569 (0x239), region = 36 }
   0xd   : > { %v4240_v0 = vld [vmem:[%s6793_s1 + $0x8] sm:$0xff]  ;;  %vm411_vm0 = vcmask 64512   ;;  %vm414_vm1 = vcmask 58368   ;;  %v5613_v1 = vld [vmem:[%s6793_s1 + $0x20] sm:$0xff]  ;;  %p5617_p3 = scmp.lt.s32.totalorder %s4229_s22, 1  ;;  %v5563_v2 = vmov 0.0  }
   0xe   : > { %4837 = vmatprep.subr.mxu1 %v4240_v0  ;;  %412 = vst.msk [vmem:[#allocation2] sm:$0xff] %vm411_vm0, %v5563_v2  ;;  %413 = vst.msk [vmem:[#allocation2 + $0x8] sm:$0xff] %vm411_vm0, %v5563_v2  ;;  %5037 = vmatprep.subr.mxu0 %v5613_v1  ;;  %v532_v3 = vld [vmem:[%s6793_s1] sm:$0xff]  ;;  %v5689_v4 = vld [vmem:[%s6793_s1 + $0x28] sm:$0xff]  ;;  %vm4020_vm2 = vcmask 57344  }
   0xf   : > { %416 = vst.msk [vmem:[#allocation2 + $0x18] sm:$0xff] %vm411_vm0, %v5563_v2  ;;  %417 = vst.msk [vmem:[#allocation2 + $0x20] sm:$0xff] %vm411_vm0, %v5563_v2  ;;  %4838 = vmatpush3.msra.mxu1 %v4240_v0  ;;  %5038 = vmatpush3.msra.mxu0 %v5613_v1  ;;  %s6905_s22 = smov (!%p5617_p3, %s4229_s22), 1  ;;  %v5696_v5 = vld [vmem:[%s6794_s2] ss:$0 sm:$0xff]  ;;  %v5732_v27 = vld [vmem:[%s6793_s1 + $0x10] sm:$0xff] }
  0x10   : > { %419 = vst.msk [vmem:[#allocation2 + $0x30] sm:$0xff] %vm411_vm0, %v5563_v2  ;;  %420 = vst.msk [vmem:[#allocation2 + $0x38] sm:$0xff] %vm411_vm0, %v5563_v2  ;;  %4887 = vmatprep.subr.mxu1 %v532_v3  ;;  %5087 = vmatprep.subr.mxu0 %v5689_v4  ;;  %s4538_s8 = sshll.u32 %s6905_s22, 8  ;;  %v5708_v6 = vld [vmem:[%s6795_s3] ss:$0 sm:$0xff]  ;;  %s265_s11 = scalar_lea.vmem %s6797_s5, %s6905_s22 }
  0x11   : > { %422 = vst.msk [vmem:[#allocation2 + $0x48] sm:$0xff] %vm411_vm0, %v5563_v2  ;;  %423 = vst.msk [vmem:[#allocation2 + $0x50] sm:$0xff] %vm411_vm0, %v5563_v2  ;;  %s5703_s13 = scalar_lea.vmem %s6792_s0, %s4538_s8  ;;  %s6643_s9 = scalar_lea.vmem %s6796_s4, %s4538_s8 }
  0x12   : > { %425 = vst.msk [vmem:[#allocation2 + $0x60] sm:$0xff] %vm411_vm0, %v5563_v2  ;;  %426 = vst.msk [vmem:[#allocation2 + $0x68] sm:$0xff] %vm411_vm0, %v5563_v2  ;;  %v269_v7 = vld [vmem:[%s5703_s13] sm:$0xff]  ;;  %v270_v8 = vld [vmem:[%s5703_s13 + $0x8] sm:$0xff]  ;;  %s268_s14 = scalar_lea.vmem %s6798_s6, %s6905_s22 }
  0x13   : > { %428 = vst.msk [vmem:[#allocation2 + $0x78] sm:$0xff] %vm411_vm0, %v5563_v2  ;;  %429 = vst.msk [vmem:[#allocation2 + $0x80] sm:$0xff] %vm411_vm0, %v5563_v2  ;;  %v271_v9 = vld [vmem:[%s5703_s13 + $0x10] sm:$0xff]  ;;  %v308_v10 = vmul.f32 %v5696_v5, %v269_v7  ;;  %v309_v11 = vmul.f32 %v5696_v5, %v270_v8  ;;  %v272_v13 = vld [vmem:[%s5703_s13 + $0x18] sm:$0xff] }
  0x14   : > { %431 = vst.msk [vmem:[#allocation2 + $0x90] sm:$0xff] %vm411_vm0, %v5563_v2  ;;  %432 = vst.msk [vmem:[#allocation2 + $0x98] sm:$0xff] %vm411_vm0, %v5563_v2  ;;  %v310_v12 = vmul.f32 %v5696_v5, %v271_v9  ;;  %v273_v14 = vld [vmem:[%s5703_s13 + $0x20] sm:$0xff]  ;;  %v274_v15 = vld [vmem:[%s5703_s13 + $0x28] sm:$0xff]  ;;  %v311_v18 = vmul.f32 %v5696_v5, %v272_v13 }
  0x15   : > { %434 = vst.msk [vmem:[#allocation2 + $0xa8] sm:$0xff] %vm411_vm0, %v5563_v2  ;;  %435 = vst.msk [vmem:[#allocation2 + $0xb0] sm:$0xff] %vm411_vm0, %v5563_v2  ;;  %v533_v16 = vld [vmem:[#allocation2 + $0x1] sm:$0xff]  ;;  %v312_v19 = vmul.f32 %v5696_v5, %v273_v14  ;;  %v313_v20 = vmul.f32 %v5696_v5, %v274_v15  ;;  %v275_v21 = vld [vmem:[%s5703_s13 + $0x30] sm:$0xff]  ;;  %v347_v22 = vadd.f32 %v5708_v6, %v308_v10 }
  0x16   : > { %437 = vst.msk [vmem:[#allocation2 + $0xc0] sm:$0xff] %vm411_vm0, %v5563_v2  ;;  %438 = vst.msk [vmem:[#allocation2 + $0xc8] sm:$0xff] %vm411_vm0, %v5563_v2  ;;  %4839 = vmatprep.mubr.msk.f32.mxu1 %vm411_vm0, %v533_v16  ;;  %v348_v23 = vadd.f32 %v5708_v6, %v309_v11  ;;  %v349_v24 = vadd.f32 %v5708_v6, %v310_v12  ;;  %v314_v25 = vmul.f32 %v5696_v5, %v275_v21  ;;  %v276_v26 = vld [vmem:[%s5703_s13 + $0x38] sm:$0xff]  ;;  %v277_v32 = vld [vmem:[%s5703_s13 + $0x40] sm:$0xff] }
  0x17   : > { %440 = vst.msk [vmem:[#allocation2 + $0xd8] sm:$0xff] %vm411_vm0, %v5563_v2  ;;  %441 = vst.msk [vmem:[#allocation2 + $0xe0] sm:$0xff] %vm411_vm0, %v5563_v2  ;;  %v350_v28 = vadd.f32 %v5708_v6, %v311_v18  ;;  %v351_v29 = vadd.f32 %v5708_v6, %v312_v19  ;;  %v352_v30 = vadd.f32 %v5708_v6, %v313_v20  ;;  %v278_v33 = vld [vmem:[%s5703_s13 + $0x48] sm:$0xff]  ;;  %v279_v34 = vld [vmem:[%s5703_s13 + $0x50] sm:$0xff]  ;;  %v379_v35 = vmax.f32 %v347_v22, 0.0 }
  0x18   : > { %443 = vst.msk [vmem:[#allocation2 + $0xf0] sm:$0xff] %vm411_vm0, %v5563_v2  ;;  %444 = vst.msk [vmem:[#allocation2 + $0xf8] sm:$0xff] %vm411_vm0, %v5563_v2  ;;  %v315_v31 = vmul.f32 %v5696_v5, %v276_v26  ;;  %v380_v36 = vmax.f32 %v348_v23, 0.0  ;;  %v381_v37 = vmax.f32 %v349_v24, 0.0  ;;  %v353_v38 = vadd.f32 %v5708_v6, %v314_v25  ;;  %v280_v39 = vld [vmem:[%s5703_s13 + $0x58] sm:$0xff]  ;;  %v281_v40 = vld [vmem:[%s5703_s13 + $0x60] sm:$0xff] }
  0x19   : > { %446 = vst.msk [vmem:[#allocation2 + $0x108] sm:$0xff] %vm411_vm0, %v5563_v2  ;;  %447 = vst.msk [vmem:[#allocation2 + $0x110] sm:$0xff] %vm411_vm0, %v5563_v2  ;;  %v282_v41 = vld [vmem:[%s5703_s13 + $0x68] sm:$0xff]  ;;  %v382_v42 = vmax.f32 %v350_v28, 0.0  ;;  %v383_v43 = vmax.f32 %v351_v29, 0.0  ;;  %v384_v44 = vmax.f32 %v352_v30, 0.0  ;;  %v316_v48 = vmul.f32 %v5696_v5, %v277_v32 }
  0x1a   : > { %449 = vst.msk [vmem:[#allocation2 + $0x120] sm:$0xff] %vm411_vm0, %v5563_v2  ;;  %450 = vst.msk [vmem:[#allocation2 + $0x128] sm:$0xff] %vm411_vm0, %v5563_v2  ;;  %v354_v45 = vadd.f32 %v5708_v6, %v315_v31  ;;  %v283_v46 = vld [vmem:[%s5703_s13 + $0x70] sm:$0xff]  ;;  %v385_v47 = vmax.f32 %v353_v38, 0.0  ;;  %v317_v49 = vmul.f32 %v5696_v5, %v278_v33  ;;  %v318_v50 = vmul.f32 %v5696_v5, %v279_v34  ;;  %v284_v51 = vld [vmem:[%s5703_s13 + $0x78] sm:$0xff] }
  0x1b   : > { %452 = vst.msk [vmem:[#allocation2 + $0x138] sm:$0xff] %vm411_vm0, %v5563_v2  ;;  %453 = vst.msk [vmem:[#allocation2 + $0x140] sm:$0xff] %vm411_vm0, %v5563_v2  ;;  %v319_v53 = vmul.f32 %v5696_v5, %v280_v39  ;;  %v320_v54 = vmul.f32 %v5696_v5, %v281_v40  ;;  %v321_v55 = vmul.f32 %v5696_v5, %v282_v41  ;;  %v285_v0 = vld [vmem:[%s5703_s13 + $0x80] sm:$0xff]  ;;  %v288_v11 = vld [vmem:[%s5703_s13 + $0x98] sm:$0xff] }
  0x1c   : > { %455 = vst.msk [vmem:[#allocation2 + $0x150] sm:$0xff] %vm411_vm0, %v5563_v2  ;;  %456 = vst.msk [vmem:[#allocation2 + $0x158] sm:$0xff] %vm411_vm0, %v5563_v2  ;;  %v386_v52 = vmax.f32 %v354_v45, 0.0  ;;  %v355_v56 = vadd.f32 %v5708_v6, %v316_v48  ;;  %v356_v57 = vadd.f32 %v5708_v6, %v317_v49  ;;  %v357_v58 = vadd.f32 %v5708_v6, %v318_v50  ;;  %v289_v12 = vld [vmem:[%s5703_s13 + $0xa0] sm:$0xff]  ;;  %v290_v13 = vld [vmem:[%s5703_s13 + $0xa8] sm:$0xff] }
  0x1d   : > { %458 = vst.msk [vmem:[#allocation2 + $0x168] sm:$0xff] %vm411_vm0, %v5563_v2  ;;  %459 = vst.msk [vmem:[#allocation2 + $0x170] sm:$0xff] %vm411_vm0, %v5563_v2  ;;  %v322_v59 = vmul.f32 %v5696_v5, %v283_v46  ;;  %v358_v60 = vadd.f32 %v5708_v6, %v319_v53  ;;  %v359_v61 = vadd.f32 %v5708_v6, %v320_v54  ;;  %v291_v22 = vld [vmem:[%s5703_s13 + $0xb0] sm:$0xff]  ;;  %v293_v39 = vld [vmem:[%s5703_s13 + $0xc0] sm:$0xff] }
  0x1e   : > { %461 = vst.msk [vmem:[#allocation2 + $0x180] sm:$0xff] %vm411_vm0, %v5563_v2  ;;  %462 = vst.msk [vmem:[#allocation2 + $0x188] sm:$0xff] %vm411_vm0, %v5563_v2  ;;  %v360_v62 = vadd.f32 %v5708_v6, %v321_v55  ;;  %v323_v63 = vmul.f32 %v5696_v5, %v284_v51  ;;  %v387_v7 = vmax.f32 %v355_v56, 0.0  ;;  %v388_v8 = vmax.f32 %v356_v57, 0.0  ;;  %v5802_v32 = vld [vmem:[%s6793_s1 + $0x30] sm:$0xff]  ;;  %v294_v40 = vld [vmem:[%s5703_s13 + $0xc8] sm:$0xff] }
  0x1f   : > { %464 = vst.msk [vmem:[#allocation2 + $0x198] sm:$0xff] %vm411_vm0, %v5563_v2  ;;  %465 = vst.msk [vmem:[#allocation2 + $0x1a0] sm:$0xff] %vm411_vm0, %v5563_v2  ;;  %v389_v9 = vmax.f32 %v357_v58, 0.0  ;;  %v361_v10 = vadd.f32 %v5708_v6, %v322_v59  ;;  %v390_v14 = vmax.f32 %v358_v60, 0.0  ;;  %v391_v15 = vmax.f32 %v359_v61, 0.0  ;;  %v295_v41 = vld [vmem:[%s5703_s13 + $0xd0] sm:$0xff] }
  0x20   : > { %415 = vst.msk [vmem:[#allocation2 + $0x10] sm:$0x3] %vm414_vm1, %v5563_v2  ;;  %418 = vst.msk [vmem:[#allocation2 + $0x28] sm:$0x3] %vm414_vm1, %v5563_v2  ;;  %v392_v16 = vmax.f32 %v360_v62, 0.0  ;;  %v324_v19 = vmul.f32 %v5696_v5, %v285_v0  ;;  %v327_v28 = vmul.f32 %v5696_v5, %v288_v11  ;;  %v328_v29 = vmul.f32 %v5696_v5, %v289_v12  ;;  %v297_v48 = vld [vmem:[%s5703_s13 + $0xe0] sm:$0xff] }
  0x21   : > { %421 = vst.msk [vmem:[#allocation2 + $0x40] sm:$0x3] %vm414_vm1, %v5563_v2  ;;  %424 = vst.msk [vmem:[#allocation2 + $0x58] sm:$0x3] %vm414_vm1, %v5563_v2  ;;  %v393_v18 = vmax.f32 %v361_v10, 0.0  ;;  %v329_v30 = vmul.f32 %v5696_v5, %v290_v13  ;;  %v330_v46 = vmul.f32 %v5696_v5, %v291_v22  ;;  %v332_v54 = vmul.f32 %v5696_v5, %v293_v39  ;;  %v298_v57 = vld [vmem:[%s5703_s13 + $0xe8] sm:$0xff] }
  0x22   : > { %427 = vst.msk [vmem:[#allocation2 + $0x70] sm:$0x3] %vm414_vm1, %v5563_v2  ;;  %430 = vst.msk [vmem:[#allocation2 + $0x88] sm:$0x3] %vm414_vm1, %v5563_v2  ;;  %v363_v31 = vadd.f32 %v5708_v6, %v324_v19  ;;  %v333_v55 = vmul.f32 %v5696_v5, %v294_v40  ;;  %v334_v56 = vmul.f32 %v5696_v5, %v295_v41  ;;  %v299_v61 = vld [vmem:[%s5703_s13 + $0xf0] sm:$0xff] }
  0x23   : > { %433 = vst.msk [vmem:[#allocation2 + $0xa0] sm:$0x3] %vm414_vm1, %v5563_v2  ;;  %436 = vst.msk [vmem:[#allocation2 + $0xb8] sm:$0x3] %vm414_vm1, %v5563_v2  ;;  %v368_v38 = vadd.f32 %v5708_v6, %v329_v30  ;;  %v369_v53 = vadd.f32 %v5708_v6, %v330_v46  ;;  %v336_v60 = vmul.f32 %v5696_v5, %v297_v48 }
  0x24   : > { %439 = vst.msk [vmem:[#allocation2 + $0xd0] sm:$0x3] %vm414_vm1, %v5563_v2  ;;  %442 = vst.msk [vmem:[#allocation2 + $0xe8] sm:$0x3] %vm414_vm1, %v5563_v2  ;;  %v371_v0 = vadd.f32 %v5708_v6, %v332_v54  ;;  %v337_v12 = vmul.f32 %v5696_v5, %v298_v57 }
  0x25   : > { %445 = vst.msk [vmem:[#allocation2 + $0x100] sm:$0x3] %vm414_vm1, %v5563_v2  ;;  %448 = vst.msk [vmem:[#allocation2 + $0x118] sm:$0x3] %vm414_vm1, %v5563_v2  ;;  %v400_v51 = vmax.f32 %v368_v38, 0.0  ;;  %v375_v11 = vadd.f32 %v5708_v6, %v336_v60 }
  0x26   : > { %451 = vst.msk [vmem:[#allocation2 + $0x130] sm:$0x3] %vm414_vm1, %v5563_v2  ;;  %454 = vst.msk [vmem:[#allocation2 + $0x148] sm:$0x3] %vm414_vm1, %v5563_v2  ;;  %v403_v13 = vmax.f32 %v371_v0, 0.0  ;;  %v376_v19 = vadd.f32 %v5708_v6, %v337_v12 }
  0x27   : > { %457 = vst.msk [vmem:[#allocation2 + $0x160] sm:$0x3] %vm414_vm1, %v5563_v2  ;;  %460 = vst.msk [vmem:[#allocation2 + $0x178] sm:$0x3] %vm414_vm1, %v5563_v2  ;;  %v534_v17 = vld [vmem:[#allocation2 + $0x9] sm:$0xff] }
  0x28   : > { %463 = vst.msk [vmem:[#allocation2 + $0x190] sm:$0x3] %vm414_vm1, %v5563_v2  ;;  %466 = vst.msk [vmem:[#allocation2 + $0x1a8] sm:$0x3] %vm414_vm1, %v5563_v2  ;;  %4840 = vmatmul.mubr.msk.f32.vlgmr.msra.gmra.mrb[0].mxu1 %vm411_vm0, %v534_v17  ;;  %v286_v2 = vld [vmem:[%s5703_s13 + $0x88] sm:$0xff]  ;;  %v362_v17 = vadd.f32 %v5708_v6, %v323_v63  ;;  %v401_v63 = vmax.f32 %v369_v53, 0.0 }
  0x29   : > { %4888 = vmatpush3.msra.mxu1 %v532_v3  ;;  %468 = vst.msk [vmem:[#allocation2 + $0x19] sm:$0xff] %vm411_vm0, %v379_v35  ;;  %469 = vst.msk [vmem:[#allocation2 + $0x21] sm:$0xff] %vm411_vm0, %v380_v36  ;;  %v287_v3 = vld [vmem:[%s5703_s13 + $0x90] sm:$0xff]  ;;  %v325_v20 = vmul.f32 %v5696_v5, %v286_v2  ;;  %v292_v35 = vld [vmem:[%s5703_s13 + $0xb8] sm:$0xff]  ;;  %v366_v36 = vadd.f32 %v5708_v6, %v327_v28  ;;  %v372_v2 = vadd.f32 %v5708_v6, %v333_v55 }
  0x2a   : > { %4937 = vmatprep.subr.mxu1 %v5732_v27  ;;  %470 = vst.msk [vmem:[#allocation2 + $0x31] sm:$0xff] %vm411_vm0, %v381_v37  ;;  %471 = vst.msk [vmem:[#allocation2 + $0x39] sm:$0xff] %vm411_vm0, %v382_v42  ;;  %v326_v21 = vmul.f32 %v5696_v5, %v287_v3  ;;  %v394_v26 = vmax.f32 %v362_v17, 0.0  ;;  %v367_v37 = vadd.f32 %v5708_v6, %v328_v29 }
  0x2b   : > { %472 = vst.msk [vmem:[#allocation2 + $0x49] sm:$0xff] %vm411_vm0, %v383_v43  ;;  %473 = vst.msk [vmem:[#allocation2 + $0x51] sm:$0xff] %vm411_vm0, %v384_v44  ;;  %v364_v33 = vadd.f32 %v5708_v6, %v325_v20  ;;  %v395_v43 = vmax.f32 %v363_v31, 0.0  ;;  %v373_v3 = vadd.f32 %v5708_v6, %v334_v56 }
  0x2c   : > { %474 = vst.msk [vmem:[#allocation2 + $0x61] sm:$0xff] %vm411_vm0, %v385_v47  ;;  %475 = vst.msk [vmem:[#allocation2 + $0x69] sm:$0xff] %vm411_vm0, %v386_v52  ;;  %v365_v34 = vadd.f32 %v5708_v6, %v326_v21  ;;  %v296_v47 = vld [vmem:[%s5703_s13 + $0xd8] sm:$0xff]  ;;  %v399_v50 = vmax.f32 %v367_v37, 0.0  ;;  %v331_v52 = vmul.f32 %v5696_v5, %v292_v35 }
  0x2d   : > { %476 = vst.msk [vmem:[#allocation2 + $0x79] sm:$0xff] %vm411_vm0, %v387_v7  ;;  %477 = vst.msk [vmem:[#allocation2 + $0x81] sm:$0xff] %vm411_vm0, %v388_v8  ;;  %v396_v44 = vmax.f32 %v364_v33, 0.0  ;;  %v335_v59 = vmul.f32 %v5696_v5, %v296_v47  ;;  %v300_v7 = vld [vmem:[%s5703_s13 + $0xf8] sm:$0xff] }
  0x2e   : > { %478 = vst.msk [vmem:[#allocation2 + $0x91] sm:$0xff] %vm411_vm0, %v389_v9  ;;  %479 = vst.msk [vmem:[#allocation2 + $0x99] sm:$0xff] %vm411_vm0, %v390_v14  ;;  %v397_v45 = vmax.f32 %v365_v34, 0.0  ;;  %v370_v58 = vadd.f32 %v5708_v6, %v331_v52  ;;  %v404_v14 = vmax.f32 %v372_v2, 0.0  ;;  %v339_v20 = vmul.f32 %v5696_v5, %v300_v7 }
  0x2f   : > { %480 = vst.msk [vmem:[#allocation2 + $0xa9] sm:$0xff] %vm411_vm0, %v391_v15  ;;  %481 = vst.msk [vmem:[#allocation2 + $0xb1] sm:$0xff] %vm411_vm0, %v392_v16  ;;  %v374_v10 = vadd.f32 %v5708_v6, %v335_v59  ;;  %v405_v15 = vmax.f32 %v373_v3, 0.0  ;;  %v338_v16 = vmul.f32 %v5696_v5, %v299_v61  ;;  %v408_v5 = vmax.f32 %v376_v19, 0.0  ;;  %v500_v3 = vld [vmem:[#allocation2] sm:$0xff] }
  0x30   : > { %v535_v23 = vld [vmem:[#allocation2 + $0x19] sm:$0xff]  ;;  %v536_v24 = vld [vmem:[#allocation2 + $0x21] sm:$0xff]  ;;  %482 = vst.msk [vmem:[#allocation2 + $0xc1] sm:$0xff] %vm411_vm0, %v393_v18  ;;  %483 = vst.msk [vmem:[#allocation2 + $0xc9] sm:$0xff] %vm411_vm0, %v394_v26  ;;  %v402_v9 = vmax.f32 %v370_v58, 0.0  ;;  %v407_v18 = vmax.f32 %v375_v11, 0.0 }
  0x31   : > { %v5787_v25 = vld [vmem:[#allocation2 + $0x31] sm:$0xff]  ;;  %4842 = vmatprep.mubr.msk.f32.mxu1 %vm411_vm0, %v535_v23  ;;  %5039 = vmatprep.mubr.msk.f32.mxu0 %vm411_vm0, %v535_v23  ;;  %v5819_v42 = vld [vmem:[#allocation2 + $0x39] sm:$0xff]  ;;  %484 = vst.msk [vmem:[#allocation2 + $0xd9] sm:$0xff] %vm411_vm0, %v395_v43  ;;  %485 = vst.msk [vmem:[#allocation2 + $0xe1] sm:$0xff] %vm411_vm0, %v396_v44  ;;  %v406_v17 = vmax.f32 %v374_v10, 0.0  ;;  %v377_v22 = vadd.f32 %v5708_v6, %v338_v16 }
  0x32   : > { %4843 = vmatmul.mubr.msk.f32.gmra.mrb[2].mxu1 %vm411_vm0, %v536_v24  ;;  %5040 = vmatmul.mubr.msk.f32.vlgmr.msra.gmra.mrb[0].mxu0 %vm411_vm0, %v536_v24  ;;  %v5826_v49 = vld [vmem:[#allocation2 + $0x49] sm:$0xff]  ;;  %486 = vst.msk [vmem:[#allocation2 + $0xf1] sm:$0xff] %vm411_vm0, %v397_v45  ;;  %488 = vst.msk [vmem:[#allocation2 + $0x109] sm:$0xff] %vm411_vm0, %v399_v50  ;;  %v5853_v62 = vld [vmem:[#allocation2 + $0x51] sm:$0xff]  ;;  %v378_v24 = vadd.f32 %v5708_v6, %v339_v20 }
  0x33   : > { %5088 = vmatpush3.msra.mxu0 %v5689_v4  ;;  %4845 = vmatprep.mubr.msk.f32.mxu1 %vm411_vm0, %v5787_v25  ;;  %v398_v4 = vmax.f32 %v366_v36, 0.0  ;;  %489 = vst.msk [vmem:[#allocation2 + $0x111] sm:$0xff] %vm411_vm0, %v400_v51  ;;  %v5859_v8 = vld [vmem:[#allocation2 + $0x61] sm:$0xff]  ;;  %490 = vst.msk [vmem:[#allocation2 + $0x121] sm:$0xff] %vm411_vm0, %v401_v63  ;;  %v5877_v21 = vld [vmem:[#allocation2 + $0x69] sm:$0xff]  ;;  %v409_v26 = vmax.f32 %v377_v22, 0.0 }
  0x34   : > { %5042 = vmatprep.mubr.msk.f32.mxu0 %vm411_vm0, %v5787_v25  ;;  %5137 = vmatprep.subr.mxu0 %v5802_v32  ;;  %491 = vst.msk [vmem:[#allocation2 + $0x129] sm:$0xff] %vm411_vm0, %v402_v9  ;;  %492 = vst.msk [vmem:[#allocation2 + $0x139] sm:$0xff] %vm411_vm0, %v403_v13  ;;  %v5883_v23 = vld [vmem:[#allocation2 + $0x79] sm:$0xff]  ;;  %v410_v28 = vmax.f32 %v378_v24, 0.0  ;;  %v5897_v29 = vld [vmem:[#allocation2 + $0x81] sm:$0xff] }
  0x35   : > { %487 = vst.msk [vmem:[#allocation2 + $0xf9] sm:$0xff] %vm411_vm0, %v398_v4  ;;  %493 = vst.msk [vmem:[#allocation2 + $0x141] sm:$0xff] %vm411_vm0, %v404_v14  ;;  %v5900_v6 = vld [vmem:[#allocation2 + $0x91] sm:$0xff]  ;;  %v5911_v30 = vld [vmem:[#allocation2 + $0x99] sm:$0xff] }
  0x36   : > { %4846 = vmatmul.mubr.msk.f32.gmra.mrb[4].mxu1 %vm411_vm0, %v5819_v42  ;;  %5043 = vmatmul.mubr.msk.f32.gmra.mrb[2].mxu0 %vm411_vm0, %v5819_v42  ;;  %494 = vst.msk [vmem:[#allocation2 + $0x151] sm:$0xff] %vm411_vm0, %v405_v15  ;;  %495 = vst.msk [vmem:[#allocation2 + $0x159] sm:$0xff] %vm411_vm0, %v406_v17  ;;  %v5913_v31 = vld [vmem:[#allocation2 + $0xa9] sm:$0xff]  ;;  %v5923_v33 = vld [vmem:[#allocation2 + $0xb1] sm:$0xff] }
  0x37   : > { %4848 = vmatprep.mubr.msk.f32.mxu1 %vm411_vm0, %v5826_v49  ;;  %5045 = vmatprep.mubr.msk.f32.mxu0 %vm411_vm0, %v5826_v49  ;;  %496 = vst.msk [vmem:[#allocation2 + $0x169] sm:$0xff] %vm411_vm0, %v407_v18  ;;  %497 = vst.msk [vmem:[#allocation2 + $0x171] sm:$0xff] %vm411_vm0, %v408_v5  ;;  %v5925_v34 = vld [vmem:[#allocation2 + $0xc1] sm:$0xff]  ;;  %v5935_v35 = vld [vmem:[#allocation2 + $0xc9] sm:$0xff] }
  0x38   : > { %498 = vst.msk [vmem:[#allocation2 + $0x181] sm:$0xff] %vm411_vm0, %v409_v26  ;;  %499 = vst.msk [vmem:[#allocation2 + $0x189] sm:$0xff] %vm411_vm0, %v410_v28  ;;  %v5937_v36 = vld [vmem:[#allocation2 + $0xd9] sm:$0xff]  ;;  %v5949_v38 = vld [vmem:[#allocation2 + $0xe1] sm:$0xff] }
  0x39   : > { %6842 = vst [vmem:[#allocation3_spill] sm:$0xff] %v5935_v35  ;;  %6843 = vst [vmem:[#allocation4_spill] sm:$0xff] %v5937_v36  ;;  %v5939_v37 = vld [vmem:[#allocation2 + $0x1a] sm:$0xff]  ;;  %v5951_v39 = vld [vmem:[#allocation2 + $0x22] sm:$0xff] }
  0x3a   : > { %4849 = vmatmul.mubr.msk.f32.gmra.mrb[6].mxu1 %vm411_vm0, %v5853_v62  ;;  %5046 = vmatmul.mubr.msk.f32.gmra.mrb[4].mxu0 %vm411_vm0, %v5853_v62  ;;  %6844 = vst [vmem:[#allocation5_spill] sm:$0xff] %v5949_v38  ;;  %v5953_v40 = vld [vmem:[#allocation2 + $0xf1] sm:$0xff]  ;;  %v5971_v45 = vld [vmem:[#allocation2 + $0x3a] sm:$0xff]  ;;  %v5975_v46 = vld [vmem:[#allocation2 + $0x109] sm:$0xff] }
  0x3b   : > { %4851 = vmatprep.mubr.msk.f32.mxu1 %vm411_vm0, %v5859_v8  ;;  %5048 = vmatprep.mubr.msk.f32.mxu0 %vm411_vm0, %v5859_v8  ;;  %6845 = vst [vmem:[#allocation6_spill] sm:$0xff] %v5953_v40  ;;  %v5955_v41 = vld [vmem:[#allocation2 + $0x32] sm:$0xff]  ;;  %6847 = vst [vmem:[#allocation8_spill] sm:$0xff] %v5975_v46  ;;  %v5977_v47 = vld [vmem:[#allocation2 + $0x4a] sm:$0xff] }
  0x3c   : > { %v5960_v43 = vld [vmem:[%s6793_s1 + $0x38] sm:$0xff]  ;;  %v5992_v4 = vld [vmem:[#allocation2 + $0x121] sm:$0xff]  ;;  %v6004_v51 = vld [vmem:[#allocation2 + $0x129] sm:$0xff] }
  0x3d   : > { %v5969_v44 = vld [vmem:[#allocation2 + $0xf9] sm:$0xff]  ;;  %6849 = vst [vmem:[#allocation10_spill] sm:$0xff] %v5992_v4  ;;  %v5994_v50 = vld [vmem:[#allocation2 + $0x62] sm:$0xff]  ;;  %6850 = vst [vmem:[#allocation11_spill] sm:$0xff] %v6004_v51 }
  0x3e   : > { %4852 = vmatmul.mubr.msk.f32.gmra.mrb[8].mxu1 %vm411_vm0, %v5877_v21  ;;  %5049 = vmatmul.mubr.msk.f32.gmra.mrb[6].mxu0 %vm411_vm0, %v5877_v21  ;;  %6846 = vst [vmem:[#allocation7_spill] sm:$0xff] %v5969_v44  ;;  %v5990_v48 = vld [vmem:[#allocation2 + $0x52] sm:$0xff]  ;;  %v6006_v52 = vld [vmem:[#allocation2 + $0x6a] sm:$0xff]  ;;  %v6010_v54 = vld [vmem:[#allocation2 + $0x7a] sm:$0xff] }
  0x3f   : > { %4854 = vmatprep.mubr.msk.f32.mxu1 %vm411_vm0, %v5883_v23  ;;  %5051 = vmatprep.mubr.msk.f32.mxu0 %vm411_vm0, %v5883_v23  ;;  %v6008_v53 = vld [vmem:[#allocation2 + $0x139] sm:$0xff]  ;;  %v6020_v55 = vld [vmem:[#allocation2 + $0x141] sm:$0xff]  ;;  %v6024_v57 = vld [vmem:[#allocation2 + $0x151] sm:$0xff] }
  0x40   : > { %6851 = vst [vmem:[#allocation12_spill] sm:$0xff] %v6008_v53  ;;  %6852 = vst [vmem:[#allocation13_spill] sm:$0xff] %v6020_v55  ;;  %v6022_v56 = vld [vmem:[#allocation2 + $0x82] sm:$0xff]  ;;  %v6026_v58 = vld [vmem:[#allocation2 + $0x92] sm:$0xff] }
  0x41   : > { %6853 = vst [vmem:[#allocation14_spill] sm:$0xff] %v6024_v57  ;;  %v6036_v59 = vld [vmem:[#allocation2 + $0x159] sm:$0xff]  ;;  %v6040_v61 = vld [vmem:[#allocation2 + $0x169] sm:$0xff]  ;;  %v6052_v0 = vld [vmem:[#allocation2 + $0x171] sm:$0xff] }
  0x42   : > { %4855 = vmatmul.mubr.msk.f32.gmra.mrb[10].mxu1 %vm411_vm0, %v5897_v29  ;;  %5052 = vmatmul.mubr.msk.f32.gmra.mrb[8].mxu0 %vm411_vm0, %v5897_v29  ;;  %6854 = vst [vmem:[#allocation15_spill] sm:$0xff] %v6036_v59  ;;  %v6038_v60 = vld [vmem:[#allocation2 + $0x9a] sm:$0xff]  ;;  %6855 = vst [vmem:[#allocation16_spill] sm:$0xff] %v6040_v61  ;;  %v6042_v63 = vld [vmem:[#allocation2 + $0xaa] sm:$0xff] }
  0x43   : > { %4857 = vmatprep.mubr.msk.f32.mxu1 %vm411_vm0, %v5900_v6  ;;  %5054 = vmatprep.mubr.msk.f32.mxu0 %vm411_vm0, %v5900_v6  ;;  %6856 = vst [vmem:[#allocation17_spill] sm:$0xff] %v6052_v0  ;;  %v6054_v2 = vld [vmem:[#allocation2 + $0xb2] sm:$0xff]  ;;  %v6056_v7 = vld [vmem:[#allocation2 + $0xc2] sm:$0xff]  ;;  %v6065_v10 = vld [vmem:[#allocation2 + $0xca] sm:$0xff] }
  0x44   : > { %v501_v9 = vld [vmem:[#allocation2 + $0x8] sm:$0xff]  ;;  %v6067_v11 = vld [vmem:[#allocation2 + $0x18] sm:$0xff]  ;;  %v6083_v14 = vld [vmem:[#allocation2 + $0x20] sm:$0xff] }
  0x45   : > { %6857 = vst [vmem:[#allocation18_spill] sm:$0xff] %v6067_v11  ;;  %v6069_v12 = vld [vmem:[#allocation2 + $0xda] sm:$0xff]  ;;  %6858 = vst [vmem:[#allocation19_spill] sm:$0xff] %v6083_v14  ;;  %v6085_v15 = vld [vmem:[#allocation2 + $0xe2] sm:$0xff] }
  0x46   : > { %4858 = vmatmul.mubr.msk.f32.gmra.mrb[12].mxu1 %vm411_vm0, %v5911_v30  ;;  %5055 = vmatmul.mubr.msk.f32.gmra.mrb[10].mxu0 %vm411_vm0, %v5911_v30  ;;  %v6077_v13 = vld [vmem:[%s6793_s1 + $0x18] sm:$0xff]  ;;  %v6088_v16 = vld [vmem:[#allocation2 + $0x30] sm:$0xff]  ;;  %v6105_v19 = vld [vmem:[#allocation2 + $0x48] sm:$0xff] }
  0x47   : > { %4860 = vmatprep.mubr.msk.f32.mxu1 %vm411_vm0, %v5913_v31  ;;  %5057 = vmatprep.mubr.msk.f32.mxu0 %vm411_vm0, %v5913_v31  ;;  %6859 = vst [vmem:[#allocation20_spill] sm:$0xff] %v6088_v16  ;;  %v6090_v17 = vld [vmem:[#allocation2 + $0xf2] sm:$0xff]  ;;  %6861 = vst [vmem:[#allocation22_spill] sm:$0xff] %v6105_v19  ;;  %v6107_v20 = vld [vmem:[#allocation2 + $0x10a] sm:$0xff] }
  0x48   : > { %v6101_v18 = vld [vmem:[#allocation2 + $0x38] sm:$0xff]  ;;  %v6117_v22 = vld [vmem:[#allocation2 + $0x50] sm:$0xff]  ;;  %v6121_v24 = vld [vmem:[#allocation2 + $0x60] sm:$0xff] }
  0x49   : > { %6860 = vst [vmem:[#allocation21_spill] sm:$0xff] %v6101_v18  ;;  %6862 = vst [vmem:[#allocation23_spill] sm:$0xff] %v6117_v22  ;;  %v6119_v5 = vld [vmem:[#allocation2 + $0x112] sm:$0xff]  ;;  %v6123_v26 = vld [vmem:[#allocation2 + $0x122] sm:$0xff] }
  0x4a   : > { %4861 = vmatmul.mubr.msk.f32.gmra.mrb[14].mxu1 %vm411_vm0, %v5923_v33  ;;  %5058 = vmatmul.mubr.msk.f32.gmra.mrb[12].mxu0 %vm411_vm0, %v5923_v33  ;;  %6863 = vst [vmem:[#allocation24_spill] sm:$0xff] %v6121_v24  ;;  %v6133_v28 = vld [vmem:[#allocation2 + $0x68] sm:$0xff] }
  0x4b   : > { %4863 = vmatprep.mubr.msk.f32.mxu1 %vm411_vm0, %v5925_v34  ;;  %5060 = vmatprep.mubr.msk.f32.mxu0 %vm411_vm0, %v5925_v34  ;;  %6864 = vst [vmem:[#allocation25_spill] sm:$0xff] %v6133_v28 }
  0x4e   : > { %4864 = vmatmul.mubr.msk.f32.gmra.mrb[16].mxu1 %vm411_vm0, %v5935_v35  ;;  %5061 = vmatmul.mubr.msk.f32.gmra.mrb[14].mxu0 %vm411_vm0, %v5935_v35  ;;  %v6211_v35 = vld [vmem:[#allocation2 + $0xe0] sm:$0xff] }
  0x4f   : > { %4866 = vmatprep.mubr.msk.f32.mxu1 %vm411_vm0, %v5937_v36  ;;  %5089 = vmatprep.mubr.msk.f32.mxu0 %vm411_vm0, %v5939_v37  ;;  %v6199_v36 = vld [vmem:[#allocation2 + $0x18a] sm:$0xff] }
  0x50   : > { %6872 = vst [vmem:[#allocation33_spill] sm:$0xff] %v6199_v36 }
  0x52   : > { %4867 = vmatmul.mubr.msk.f32.gmra.mrb[18].mxu1 %vm411_vm0, %v5949_v38  ;;  %5090 = vmatmul.mubr.msk.f32.vlgmr.msra.gmra.mrb[0].mxu0 %vm411_vm0, %v5951_v39  ;;  %v6187_v38 = vld [vmem:[#allocation2 + $0x182] sm:$0xff] }
  0x53   : > { %5138 = vmatpush3.msra.mxu0 %v5802_v32  ;;  %4869 = vmatprep.mubr.msk.f32.mxu1 %vm411_vm0, %v5953_v40  ;;  %v5988_v32 = vld [vmem:[#allocation2 + $0x111] sm:$0xff]  ;;  %v6185_v40 = vld [vmem:[#allocation2 + $0xc0] sm:$0xff]  ;;  %6871 = vst [vmem:[#allocation32_spill] sm:$0xff] %v6187_v38 }
  0x54   : > { %5092 = vmatprep.mubr.msk.f32.mxu0 %vm411_vm0, %v5955_v41  ;;  %5187 = vmatprep.subr.mxu0 %v5960_v43  ;;  %6848 = vst [vmem:[#allocation9_spill] sm:$0xff] %v5988_v32 }
  0x56   : > { %4870 = vmatmul.mubr.msk.f32.gmra.mrb[20].mxu1 %vm411_vm0, %v5969_v44  ;;  %5093 = vmatmul.mubr.msk.f32.gmra.mrb[2].mxu0 %vm411_vm0, %v5971_v45  ;;  %v6183_v44 = vld [vmem:[#allocation2 + $0x172] sm:$0xff] }
  0x57   : > { %4872 = vmatprep.mubr.msk.f32.mxu1 %vm411_vm0, %v5975_v46  ;;  %5095 = vmatprep.mubr.msk.f32.mxu0 %vm411_vm0, %v5977_v47  ;;  %v6181_v46 = vld [vmem:[#allocation2 + $0xb0] sm:$0xff]  ;;  %6870 = vst [vmem:[#allocation31_spill] sm:$0xff] %v6183_v44 }
  0x58   : > { %6869 = vst [vmem:[#allocation30_spill] sm:$0xff] %v6181_v46 }
  0x5a   : > { %4873 = vmatmul.mubr.msk.f32.gmra.mrb[22].mxu1 %vm411_vm0, %v5988_v32  ;;  %5096 = vmatmul.mubr.msk.f32.gmra.mrb[4].mxu0 %vm411_vm0, %v5990_v48  ;;  %v6171_v32 = vld [vmem:[#allocation2 + $0x16a] sm:$0xff] }
  0x5b   : > { %4875 = vmatprep.mubr.msk.f32.mxu1 %vm411_vm0, %v5992_v4  ;;  %5098 = vmatprep.mubr.msk.f32.mxu0 %vm411_vm0, %v5994_v50  ;;  %v6169_v4 = vld [vmem:[#allocation2 + $0xa8] sm:$0xff] }
  0x5e   : > { %4876 = vmatmul.mubr.msk.f32.gmra.mrb[24].mxu1 %vm411_vm0, %v6004_v51  ;;  %5099 = vmatmul.mubr.msk.f32.gmra.mrb[6].mxu0 %vm411_vm0, %v6006_v52  ;;  %v6167_v51 = vld [vmem:[#allocation2 + $0x15a] sm:$0xff] }
  0x5f   : > { %4878 = vmatprep.mubr.msk.f32.mxu1 %vm411_vm0, %v6008_v53  ;;  %5101 = vmatprep.mubr.msk.f32.mxu0 %vm411_vm0, %v6010_v54  ;;  %v6165_v53 = vld [vmem:[#allocation2 + $0x98] sm:$0xff] }
  0x60   : > { %6868 = vst [vmem:[#allocation29_spill] sm:$0xff] %v6165_v53 }
  0x62   : > { %4879 = vmatmul.mubr.msk.f32.gmra.mrb[26].mxu1 %vm411_vm0, %v6020_v55  ;;  %5102 = vmatmul.mubr.msk.f32.gmra.mrb[8].mxu0 %vm411_vm0, %v6022_v56  ;;  %v6155_v55 = vld [vmem:[#allocation2 + $0x152] sm:$0xff] }
  0x63   : > { %4881 = vmatprep.mubr.msk.f32.mxu1 %vm411_vm0, %v6024_v57  ;;  %5104 = vmatprep.mubr.msk.f32.mxu0 %vm411_vm0, %v6026_v58  ;;  %v6153_v57 = vld [vmem:[#allocation2 + $0x90] sm:$0xff] }
  0x64   : > { %6867 = vst [vmem:[#allocation28_spill] sm:$0xff] %v6153_v57 }
  0x66   : > { %4882 = vmatmul.mubr.msk.f32.gmra.mrb[28].mxu1 %vm411_vm0, %v6036_v59  ;;  %5105 = vmatmul.mubr.msk.f32.gmra.mrb[10].mxu0 %vm411_vm0, %v6038_v60  ;;  %v6151_v59 = vld [vmem:[#allocation2 + $0x142] sm:$0xff] }
  0x67   : > { %4884 = vmatprep.mubr.msk.f32.mxu1 %vm411_vm0, %v6040_v61  ;;  %5107 = vmatprep.mubr.msk.f32.mxu0 %vm411_vm0, %v6042_v63  ;;  %v6149_v61 = vld [vmem:[#allocation2 + $0x80] sm:$0xff] }
  0x68   : > { %6866 = vst [vmem:[#allocation27_spill] sm:$0xff] %v6149_v61 }
  0x6a   : > { %4885 = vmatmul.mubr.msk.f32.gmra.mrb[30].mxu1 %vm411_vm0, %v6052_v0  ;;  %5108 = vmatmul.mubr.msk.f32.gmra.mrb[12].mxu0 %vm411_vm0, %v6054_v2  ;;  %v6139_v0 = vld [vmem:[#allocation2 + $0x13a] sm:$0xff] }
  0x6b   : > { %4889 = vmatprep.mubr.msk.f32.mxu1 %vm411_vm0, %v500_v3  ;;  %5110 = vmatprep.mubr.msk.f32.mxu0 %vm411_vm0, %v6056_v7  ;;  %v6135_v3 = vld [vmem:[#allocation2 + $0x12a] sm:$0xff] }
  0x6e   : > { %4890 = vmatmul.mubr.msk.f32.vlgmr.msra.gmra.mrb[0].mxu1 %vm411_vm0, %v501_v9  ;;  %5111 = vmatmul.mubr.msk.f32.gmra.mrb[14].mxu0 %vm411_vm0, %v6065_v10  ;;  %v6137_v9 = vld [vmem:[#allocation2 + $0x78] sm:$0xff] }
  0x6f   : > { %4892 = vmatprep.mubr.msk.f32.mxu1 %vm411_vm0, %v6067_v11  ;;  %5113 = vmatprep.mubr.msk.f32.mxu0 %vm411_vm0, %v6069_v12  ;;  %6865 = vst [vmem:[#allocation26_spill] sm:$0xff] %v6137_v9  ;;  %v6201_v11 = vld [vmem:[#allocation2 + $0xd8] sm:$0xff] }
  0x70   : > { %4938 = vmatpush3.msra.mxu1 %v5732_v27  ;;  %v6103_v27 = vld [vmem:[#allocation2 + $0xfa] sm:$0xff] }
  0x71   : > { %4987 = vmatprep.subr.mxu1 %v6077_v13 }
  0x72   : > { %4893 = vmatmul.mubr.msk.f32.gmra.mrb[2].mxu1 %vm411_vm0, %v6083_v14  ;;  %5114 = vmatmul.mubr.msk.f32.gmra.mrb[16].mxu0 %vm411_vm0, %v6085_v15  ;;  %v6197_v14 = vld [vmem:[#allocation2 + $0xc8] sm:$0xff] }
  0x73   : > { %4895 = vmatprep.mubr.msk.f32.mxu1 %vm411_vm0, %v6088_v16  ;;  %5116 = vmatprep.mubr.msk.f32.mxu0 %vm411_vm0, %v6090_v17 }
  0x76   : > { %4896 = vmatmul.mubr.msk.f32.gmra.mrb[4].mxu1 %vm411_vm0, %v6101_v18  ;;  %5117 = vmatmul.mubr.msk.f32.gmra.mrb[18].mxu0 %vm411_vm0, %v6103_v27 }
  0x77   : > { %4898 = vmatprep.mubr.msk.f32.mxu1 %vm411_vm0, %v6105_v19  ;;  %5119 = vmatprep.mubr.msk.f32.mxu0 %vm411_vm0, %v6107_v20 }
  0x7a   : > { %4899 = vmatmul.mubr.msk.f32.gmra.mrb[6].mxu1 %vm411_vm0, %v6117_v22  ;;  %5120 = vmatmul.mubr.msk.f32.gmra.mrb[20].mxu0 %vm411_vm0, %v6119_v5 }
  0x7b   : > { %4901 = vmatprep.mubr.msk.f32.mxu1 %vm411_vm0, %v6121_v24  ;;  %5122 = vmatprep.mubr.msk.f32.mxu0 %vm411_vm0, %v6123_v26 }
  0x7e   : > { %4902 = vmatmul.mubr.msk.f32.gmra.mrb[8].mxu1 %vm411_vm0, %v6133_v28  ;;  %5123 = vmatmul.mubr.msk.f32.gmra.mrb[22].mxu0 %vm411_vm0, %v6135_v3 }
  0x7f   : > { %4904 = vmatprep.mubr.msk.f32.mxu1 %vm411_vm0, %v6137_v9  ;;  %5125 = vmatprep.mubr.msk.f32.mxu0 %vm411_vm0, %v6139_v0 }
  0x82   : > { %4905 = vmatmul.mubr.msk.f32.gmra.mrb[10].mxu1 %vm411_vm0, %v6149_v61  ;;  %5126 = vmatmul.mubr.msk.f32.gmra.mrb[24].mxu0 %vm411_vm0, %v6151_v59 }
  0x83   : > { %4907 = vmatprep.mubr.msk.f32.mxu1 %vm411_vm0, %v6153_v57  ;;  %5128 = vmatprep.mubr.msk.f32.mxu0 %vm411_vm0, %v6155_v55 }
  0x86   : > { %4908 = vmatmul.mubr.msk.f32.gmra.mrb[12].mxu1 %vm411_vm0, %v6165_v53  ;;  %5129 = vmatmul.mubr.msk.f32.gmra.mrb[26].mxu0 %vm411_vm0, %v6167_v51 }
  0x87   : > { %4910 = vmatprep.mubr.msk.f32.mxu1 %vm411_vm0, %v6169_v4  ;;  %5131 = vmatprep.mubr.msk.f32.mxu0 %vm411_vm0, %v6171_v32 }
  0x8a   : > { %4911 = vmatmul.mubr.msk.f32.gmra.mrb[14].mxu1 %vm411_vm0, %v6181_v46  ;;  %5132 = vmatmul.mubr.msk.f32.gmra.mrb[28].mxu0 %vm411_vm0, %v6183_v44  ;;  %v6218_v44 = vld [vmem:[%s6793_s1 + $0x40] sm:$0xff] }
  0x8b   : > { %4913 = vmatprep.mubr.msk.f32.mxu1 %vm411_vm0, %v6185_v40  ;;  %5134 = vmatprep.mubr.msk.f32.mxu0 %vm411_vm0, %v6187_v38  ;;  %v6213_v38 = vld [vmem:[#allocation2 + $0xf0] sm:$0xff] }
  0x8e   : > { %4914 = vmatmul.mubr.msk.f32.gmra.mrb[16].mxu1 %vm411_vm0, %v6197_v14  ;;  %5135 = vmatmul.mubr.msk.f32.gmra.mrb[30].mxu0 %vm411_vm0, %v6199_v36  ;;  %v6227_v36 = vld [vmem:[#allocation2 + $0xf8] sm:$0xff] }
  0x8f   : > { %4916 = vmatprep.mubr.msk.f32.mxu1 %vm411_vm0, %v6201_v11  ;;  %5139 = vmatprep.mubr.msk.f32.mxu0 %vm411_vm0, %v6088_v16  ;;  %v6231_v16 = vld [vmem:[#allocation2 + $0x108] sm:$0xff] }
  0x92   : > { %4917 = vmatmul.mubr.msk.f32.gmra.mrb[18].mxu1 %vm411_vm0, %v6211_v35  ;;  %5140 = vmatmul.mubr.msk.f32.vlgmr.msra.gmra.mrb[0].mxu0 %vm411_vm0, %v6101_v18  ;;  %v6244_v18 = vld [vmem:[#allocation2 + $0x120] sm:$0xff] }
  0x93   : > { %5188 = vmatpush3.msra.mxu0 %v5960_v43  ;;  %4919 = vmatprep.mubr.msk.f32.mxu1 %vm411_vm0, %v6213_v38  ;;  %v6242_v43 = vld [vmem:[#allocation2 + $0x110] sm:$0xff] }
  0x94   : > { %5142 = vmatprep.mubr.msk.f32.mxu0 %vm411_vm0, %v6105_v19  ;;  %5237 = vmatprep.subr.mxu0 %v6218_v44  ;;  %v6256_v19 = vld [vmem:[#allocation2 + $0x138] sm:$0xff] }
  0x96   : > { %4920 = vmatmul.mubr.msk.f32.gmra.mrb[20].mxu1 %vm411_vm0, %v6227_v36  ;;  %5143 = vmatmul.mubr.msk.f32.gmra.mrb[2].mxu0 %vm411_vm0, %v6117_v22  ;;  %v6254_v22 = vld [vmem:[#allocation2 + $0x128] sm:$0xff] }
  0x97   : > { %4922 = vmatprep.mubr.msk.f32.mxu1 %vm411_vm0, %v6231_v16  ;;  %5145 = vmatprep.mubr.msk.f32.mxu0 %vm411_vm0, %v6121_v24  ;;  %v6268_v24 = vld [vmem:[#allocation2 + $0x150] sm:$0xff] }
  0x9a   : > { %4923 = vmatmul.mubr.msk.f32.gmra.mrb[22].mxu1 %vm411_vm0, %v6242_v43  ;;  %5146 = vmatmul.mubr.msk.f32.gmra.mrb[4].mxu0 %vm411_vm0, %v6133_v28  ;;  %v6266_v28 = vld [vmem:[#allocation2 + $0x140] sm:$0xff] }
  0x9b   : > { %4925 = vmatprep.mubr.msk.f32.mxu1 %vm411_vm0, %v6244_v18  ;;  %5148 = vmatprep.mubr.msk.f32.mxu0 %vm411_vm0, %v6137_v9  ;;  %v6280_v9 = vld [vmem:[#allocation2 + $0x168] sm:$0xff] }
  0x9e   : > { %4926 = vmatmul.mubr.msk.f32.gmra.mrb[24].mxu1 %vm411_vm0, %v6254_v22  ;;  %5149 = vmatmul.mubr.msk.f32.gmra.mrb[6].mxu0 %vm411_vm0, %v6149_v61  ;;  %v6278_v61 = vld [vmem:[#allocation2 + $0x158] sm:$0xff] }
  0x9f   : > { %4928 = vmatprep.mubr.msk.f32.mxu1 %vm411_vm0, %v6256_v19  ;;  %5151 = vmatprep.mubr.msk.f32.mxu0 %vm411_vm0, %v6153_v57  ;;  %v1209_v57 = vld [vmem:[#allocation2 + $0x2] sm:$0xff] }
  0xa2   : > { %4929 = vmatmul.mubr.msk.f32.gmra.mrb[26].mxu1 %vm411_vm0, %v6266_v28  ;;  %5152 = vmatmul.mubr.msk.f32.gmra.mrb[8].mxu0 %vm411_vm0, %v6165_v53  ;;  %v6290_v53 = vld [vmem:[#allocation2 + $0x170] sm:$0xff] }
  0xa3   : > { %4931 = vmatprep.mubr.msk.f32.mxu1 %vm411_vm0, %v6268_v24  ;;  %5154 = vmatprep.mubr.msk.f32.mxu0 %vm411_vm0, %v6169_v4 }
  0xa6   : > { %4932 = vmatmul.mubr.msk.f32.gmra.mrb[28].mxu1 %vm411_vm0, %v6278_v61  ;;  %5155 = vmatmul.mubr.msk.f32.gmra.mrb[10].mxu0 %vm411_vm0, %v6181_v46  ;;  %v1210_v46 = vld [vmem:[#allocation2 + $0xa] sm:$0xff] }
  0xa7   : > { %4934 = vmatprep.mubr.msk.f32.mxu1 %vm411_vm0, %v6280_v9  ;;  %5157 = vmatprep.mubr.msk.f32.mxu0 %vm411_vm0, %v6185_v40 }
  0xaa   : > { %4935 = vmatmul.mubr.msk.f32.gmra.mrb[30].mxu1 %vm411_vm0, %v6290_v53  ;;  %5158 = vmatmul.mubr.msk.f32.gmra.mrb[12].mxu0 %vm411_vm0, %v6197_v14 }
  0xab   : > { %4939 = vmatprep.mubr.msk.f32.mxu1 %vm411_vm0, %v1209_v57  ;;  %5160 = vmatprep.mubr.msk.f32.mxu0 %vm411_vm0, %v6201_v11  ;;  %v6886_v57 = vld [vmem:[#allocation9_spill] sm:$0xff] }
  0xae   : > { %4940 = vmatmul.mubr.msk.f32.vlgmr.msra.gmra.mrb[0].mxu1 %vm411_vm0, %v1210_v46  ;;  %5161 = vmatmul.mubr.msk.f32.gmra.mrb[14].mxu0 %vm411_vm0, %v6211_v35  ;;  %v2789_v46 = vld [vmem:[#allocation2 + $0x1a0] sm:$0xff] }
  0xaf   : > { %4942 = vmatprep.mubr.msk.f32.mxu1 %vm411_vm0, %v5939_v37  ;;  %5163 = vmatprep.mubr.msk.f32.mxu0 %vm411_vm0, %v6213_v38  ;;  %v6358_v37 = vld [vmem:[#allocation2 + $0x188] sm:$0xff] }
  0xb0   : > { %4988 = vmatpush3.msra.mxu1 %v6077_v13  ;;  %v6887_v13 = vld [vmem:[#allocation24_spill] sm:$0xff] }
  0xb1   : > { %5287 = vmatprep.subr.mxu1 %v5613_v1  ;;  %v6348_v1 = vld [vmem:[#allocation2 + $0x180] sm:$0xff] }
  0xb2   : > { %4943 = vmatmul.mubr.msk.f32.gmra.mrb[2].mxu1 %vm411_vm0, %v5951_v39  ;;  %5164 = vmatmul.mubr.msk.f32.gmra.mrb[16].mxu0 %vm411_vm0, %v6227_v36  ;;  %v2788_v39 = vld [vmem:[#allocation2 + $0x198] sm:$0xff] }
  0xb3   : > { %4945 = vmatprep.mubr.msk.f32.mxu1 %vm411_vm0, %v5955_v41  ;;  %5166 = vmatprep.mubr.msk.f32.mxu0 %vm411_vm0, %v6231_v16 }
  0xb6   : > { %4946 = vmatmul.mubr.msk.f32.gmra.mrb[4].mxu1 %vm411_vm0, %v5971_v45  ;;  %5167 = vmatmul.mubr.msk.f32.gmra.mrb[18].mxu0 %vm411_vm0, %v6242_v43 }
  0xb7   : > { %4948 = vmatprep.mubr.msk.f32.mxu1 %vm411_vm0, %v5977_v47  ;;  %5169 = vmatprep.mubr.msk.f32.mxu0 %vm411_vm0, %v6244_v18 }
  0xba   : > { %4949 = vmatmul.mubr.msk.f32.gmra.mrb[6].mxu1 %vm411_vm0, %v5990_v48  ;;  %5170 = vmatmul.mubr.msk.f32.gmra.mrb[20].mxu0 %vm411_vm0, %v6254_v22 }
  0xbb   : > { %4951 = vmatprep.mubr.msk.f32.mxu1 %vm411_vm0, %v5994_v50  ;;  %5172 = vmatprep.mubr.msk.f32.mxu0 %vm411_vm0, %v6256_v19 }
  0xbe   : > { %4952 = vmatmul.mubr.msk.f32.gmra.mrb[8].mxu1 %vm411_vm0, %v6006_v52  ;;  %5173 = vmatmul.mubr.msk.f32.gmra.mrb[22].mxu0 %vm411_vm0, %v6266_v28 }
  0xbf   : > { %4954 = vmatprep.mubr.msk.f32.mxu1 %vm411_vm0, %v6010_v54  ;;  %5175 = vmatprep.mubr.msk.f32.mxu0 %vm411_vm0, %v6268_v24 }
  0xc2   : > { %4955 = vmatmul.mubr.msk.f32.gmra.mrb[10].mxu1 %vm411_vm0, %v6022_v56  ;;  %5176 = vmatmul.mubr.msk.f32.gmra.mrb[24].mxu0 %vm411_vm0, %v6278_v61 }
  0xc3   : > { %4957 = vmatprep.mubr.msk.f32.mxu1 %vm411_vm0, %v6026_v58  ;;  %5178 = vmatprep.mubr.msk.f32.mxu0 %vm411_vm0, %v6280_v9 }
  0xc6   : > { %4958 = vmatmul.mubr.msk.f32.gmra.mrb[12].mxu1 %vm411_vm0, %v6038_v60  ;;  %5179 = vmatmul.mubr.msk.f32.gmra.mrb[26].mxu0 %vm411_vm0, %v6290_v53 }
  0xc7   : > { %4960 = vmatprep.mubr.msk.f32.mxu1 %vm411_vm0, %v6042_v63  ;;  %5181 = vmatprep.mubr.msk.f32.mxu0 %vm411_vm0, %v6348_v1 }
  0xca   : > { %4961 = vmatmul.mubr.msk.f32.gmra.mrb[14].mxu1 %vm411_vm0, %v6054_v2  ;;  %5182 = vmatmul.mubr.msk.f32.gmra.mrb[28].mxu0 %vm411_vm0, %v6358_v37 }
  0xcb   : > { %4963 = vmatprep.mubr.msk.f32.mxu1 %vm411_vm0, %v6056_v7  ;;  %5184 = vmatprep.mubr.msk.f32.mxu0 %vm411_vm0, %v2788_v39  ;;  %v6888_v39 = vld [vmem:[#allocation10_spill] sm:$0xff] }
  0xce   : > { %4964 = vmatmul.mubr.msk.f32.gmra.mrb[16].mxu1 %vm411_vm0, %v6065_v10  ;;  %5185 = vmatmul.mubr.msk.f32.gmra.mrb[30].mxu0 %vm411_vm0, %v2789_v46  ;;  %v6889_v46 = vld [vmem:[#allocation25_spill] sm:$0xff] }
  0xcf   : > { %4966 = vmatprep.mubr.msk.f32.mxu1 %vm411_vm0, %v6069_v12  ;;  %5189 = vmatprep.mubr.msk.f32.mxu0 %vm411_vm0, %v5787_v25  ;;  %v6873_v25 = vld [vmem:[#allocation31_spill] sm:$0xff] }
  0xd2   : > { %4967 = vmatmul.mubr.msk.f32.gmra.mrb[18].mxu1 %vm411_vm0, %v6085_v15  ;;  %5190 = vmatmul.mubr.msk.f32.vlgmr.msra.gmra.mrb[0].mxu0 %vm411_vm0, %v5819_v42  ;;  %v6874_v42 = vld [vmem:[#allocation3_spill] sm:$0xff] }
  0xd3   : > { %5238 = vmatpush3.msra.mxu0 %v6218_v44  ;;  %4969 = vmatprep.mubr.msk.f32.mxu1 %vm411_vm0, %v6090_v17  ;;  %v6885_v44 = vld [vmem:[#allocation23_spill] sm:$0xff] }
  0xd4   : > { %5192 = vmatprep.mubr.msk.f32.mxu0 %vm411_vm0, %v5826_v49  ;;  %v6875_v49 = vld [vmem:[#allocation18_spill] sm:$0xff] }
  0xd6   : > { %4970 = vmatmul.mubr.msk.f32.gmra.mrb[20].mxu1 %vm411_vm0, %v6103_v27  ;;  %5193 = vmatmul.mubr.msk.f32.gmra.mrb[2].mxu0 %vm411_vm0, %v5853_v62  ;;  %v6876_v62 = vld [vmem:[#allocation4_spill] sm:$0xff] }
  0xd7   : > { %4972 = vmatprep.mubr.msk.f32.mxu1 %vm411_vm0, %v6107_v20  ;;  %5195 = vmatprep.mubr.msk.f32.mxu0 %vm411_vm0, %v5859_v8  ;;  %v6877_v8 = vld [vmem:[#allocation19_spill] sm:$0xff] }
  0xda   : > { %4973 = vmatmul.mubr.msk.f32.gmra.mrb[22].mxu1 %vm411_vm0, %v6119_v5  ;;  %5196 = vmatmul.mubr.msk.f32.gmra.mrb[4].mxu0 %vm411_vm0, %v5877_v21  ;;  %v6878_v21 = vld [vmem:[#allocation5_spill] sm:$0xff] }
  0xdb   : > { %4975 = vmatprep.mubr.msk.f32.mxu1 %vm411_vm0, %v6123_v26  ;;  %5198 = vmatprep.mubr.msk.f32.mxu0 %vm411_vm0, %v5883_v23  ;;  %v6879_v23 = vld [vmem:[#allocation20_spill] sm:$0xff] }
  0xde   : > { %4976 = vmatmul.mubr.msk.f32.gmra.mrb[24].mxu1 %vm411_vm0, %v6135_v3  ;;  %5199 = vmatmul.mubr.msk.f32.gmra.mrb[6].mxu0 %vm411_vm0, %v5897_v29  ;;  %v6880_v29 = vld [vmem:[#allocation6_spill] sm:$0xff] }
  0xdf   : > { %4978 = vmatprep.mubr.msk.f32.mxu1 %vm411_vm0, %v6139_v0  ;;  %5201 = vmatprep.mubr.msk.f32.mxu0 %vm411_vm0, %v5900_v6  ;;  %v5554_v6 = vld [vmem:[%s6793_s1 + $0x20] sm:$0xff] }
  0xe2   : > { %4979 = vmatmul.mubr.msk.f32.gmra.mrb[26].mxu1 %vm411_vm0, %v6151_v59  ;;  %5202 = vmatmul.mubr.msk.f32.gmra.mrb[8].mxu0 %vm411_vm0, %v5911_v30  ;;  %v6881_v30 = vld [vmem:[#allocation21_spill] sm:$0xff] }
  0xe3   : > { %4981 = vmatprep.mubr.msk.f32.mxu1 %vm411_vm0, %v6155_v55  ;;  %5204 = vmatprep.mubr.msk.f32.mxu0 %vm411_vm0, %v5913_v31  ;;  %v6882_v31 = vld [vmem:[#allocation7_spill] sm:$0xff] }
  0xe6   : > { %4982 = vmatmul.mubr.msk.f32.gmra.mrb[28].mxu1 %vm411_vm0, %v6167_v51  ;;  %5205 = vmatmul.mubr.msk.f32.gmra.mrb[10].mxu0 %vm411_vm0, %v5923_v33  ;;  %v6883_v33 = vld [vmem:[#allocation22_spill] sm:$0xff] }
  0xe7   : > { %4984 = vmatprep.mubr.msk.f32.mxu1 %vm411_vm0, %v6171_v32  ;;  %5207 = vmatprep.mubr.msk.f32.mxu0 %vm411_vm0, %v5925_v34  ;;  %v6884_v34 = vld [vmem:[#allocation8_spill] sm:$0xff] }
  0xea   : > { %4985 = vmatmul.mubr.msk.f32.gmra.mrb[30].mxu1 %vm411_vm0, %v6873_v25  ;;  %5208 = vmatmul.mubr.msk.f32.gmra.mrb[12].mxu0 %vm411_vm0, %v6874_v42  ;;  %v6890_v42 = vld [vmem:[#allocation11_spill] sm:$0xff] }
  0xeb   : > { %4989 = vmatprep.mubr.msk.f32.mxu1 %vm411_vm0, %v6875_v49  ;;  %5210 = vmatprep.mubr.msk.f32.mxu0 %vm411_vm0, %v6876_v62  ;;  %v6891_v49 = vld [vmem:[#allocation26_spill] sm:$0xff]  ;;  %v6892_v62 = vld [vmem:[#allocation12_spill] sm:$0xff] }
  0xee   : > { %4990 = vmatmul.mubr.msk.f32.vlgmr.msra.gmra.mrb[0].mxu1 %vm411_vm0, %v6877_v8  ;;  %5211 = vmatmul.mubr.msk.f32.gmra.mrb[14].mxu0 %vm411_vm0, %v6878_v21  ;;  %v6893_v8 = vld [vmem:[#allocation27_spill] sm:$0xff]  ;;  %v6894_v21 = vld [vmem:[#allocation13_spill] sm:$0xff] }
  0xef   : > { %4992 = vmatprep.mubr.msk.f32.mxu1 %vm411_vm0, %v6879_v23  ;;  %5213 = vmatprep.mubr.msk.f32.mxu0 %vm411_vm0, %v6880_v29  ;;  %v6895_v23 = vld [vmem:[#allocation28_spill] sm:$0xff]  ;;  %v6896_v29 = vld [vmem:[#allocation14_spill] sm:$0xff] }
  0xf0   : > { %5288 = vmatpush3.msra.mxu1 %v5554_v6  ;;  %v6897_v6 = vld [vmem:[#allocation29_spill] sm:$0xff] }
  0xf2   : > { %4993 = vmatmul.mubr.msk.f32.gmra.mrb[2].mxu1 %vm411_vm0, %v6881_v30  ;;  %5214 = vmatmul.mubr.msk.f32.gmra.mrb[16].mxu0 %vm411_vm0, %v6882_v31  ;;  %v6898_v30 = vld [vmem:[#allocation15_spill] sm:$0xff]  ;;  %v6899_v31 = vld [vmem:[#allocation16_spill] sm:$0xff] }
  0xf3   : > { %4995 = vmatprep.mubr.msk.f32.mxu1 %vm411_vm0, %v6883_v33  ;;  %5216 = vmatprep.mubr.msk.f32.mxu0 %vm411_vm0, %v6884_v34  ;;  %v6482_v33 = vld [vmem:[#allocation2 + $0x181] sm:$0xff] }
  0xf6   : > { %4996 = vmatmul.mubr.msk.f32.gmra.mrb[4].mxu1 %vm411_vm0, %v6885_v44  ;;  %5217 = vmatmul.mubr.msk.f32.gmra.mrb[18].mxu0 %vm411_vm0, %v6886_v57  ;;  %v6900_v44 = vld [vmem:[#allocation30_spill] sm:$0xff] }
  0xf7   : > { %4998 = vmatprep.mubr.msk.f32.mxu1 %vm411_vm0, %v6887_v13  ;;  %5219 = vmatprep.mubr.msk.f32.mxu0 %vm411_vm0, %v6888_v39  ;;  %v6901_v13 = vld [vmem:[#allocation17_spill] sm:$0xff] }
  0xfa   : > { %4999 = vmatmul.mubr.msk.f32.gmra.mrb[6].mxu1 %vm411_vm0, %v6889_v46  ;;  %5220 = vmatmul.mubr.msk.f32.gmra.mrb[20].mxu0 %vm411_vm0, %v6890_v42  ;;  %v6492_v46 = vld [vmem:[#allocation2 + $0x189] sm:$0xff] }
  0xfb   : > { %5001 = vmatprep.mubr.msk.f32.mxu1 %vm411_vm0, %v6891_v49  ;;  %5222 = vmatprep.mubr.msk.f32.mxu0 %vm411_vm0, %v6892_v62  ;;  %v3176_v49 = vld [vmem:[#allocation2 + $0x1a1] sm:$0xff] }
  0xfe   : > { %5002 = vmatmul.mubr.msk.f32.gmra.mrb[8].mxu1 %vm411_vm0, %v6893_v8  ;;  %5223 = vmatmul.mubr.msk.f32.gmra.mrb[22].mxu0 %vm411_vm0, %v6894_v21 }
  0xff   : > { %5004 = vmatprep.mubr.msk.f32.mxu1 %vm411_vm0, %v6895_v23  ;;  %5225 = vmatprep.mubr.msk.f32.mxu0 %vm411_vm0, %v6896_v29 }
 0x102   : > { %5005 = vmatmul.mubr.msk.f32.gmra.mrb[10].mxu1 %vm411_vm0, %v6897_v6  ;;  %5226 = vmatmul.mubr.msk.f32.gmra.mrb[24].mxu0 %vm411_vm0, %v6898_v30 }
 0x103   : > { %5007 = vmatprep.mubr.msk.f32.mxu1 %vm411_vm0, %v6169_v4  ;;  %5228 = vmatprep.mubr.msk.f32.mxu0 %vm411_vm0, %v6899_v31  ;;  %v3175_v4 = vld [vmem:[#allocation2 + $0x199] sm:$0xff] }
 0x106   : > { %5008 = vmatmul.mubr.msk.f32.gmra.mrb[12].mxu1 %vm411_vm0, %v6900_v44  ;;  %5229 = vmatmul.mubr.msk.f32.gmra.mrb[26].mxu0 %vm411_vm0, %v6901_v13 }
 0x107   : > { %5010 = vmatprep.mubr.msk.f32.mxu1 %vm411_vm0, %v6185_v40  ;;  %5231 = vmatprep.mubr.msk.f32.mxu0 %vm411_vm0, %v6482_v33  ;;  %v2002_v40 = vld [vmem:[#allocation2 + $0xf9] sm:$0xff] }
 0x10a   : > { %5011 = vmatmul.mubr.msk.f32.gmra.mrb[14].mxu1 %vm411_vm0, %v6197_v14  ;;  %5232 = vmatmul.mubr.msk.f32.gmra.mrb[28].mxu0 %vm411_vm0, %v6492_v46 }
 0x10b   : > { %5013 = vmatprep.mubr.msk.f32.mxu1 %vm411_vm0, %v6201_v11  ;;  %5234 = vmatprep.mubr.msk.f32.mxu0 %vm411_vm0, %v3175_v4 }
 0x10e   : > { %5014 = vmatmul.mubr.msk.f32.gmra.mrb[16].mxu1 %vm411_vm0, %v6211_v35  ;;  %5235 = vmatmul.mubr.msk.f32.gmra.mrb[30].mxu0 %vm411_vm0, %v3176_v49  ;;  %v1999_v35 = vld [vmem:[#allocation2 + $0xd9] sm:$0xff] }
 0x10f   : > { %5016 = vmatprep.mubr.msk.f32.mxu1 %vm411_vm0, %v6213_v38  ;;  %5239 = vmatprep.mubr.msk.f32.mxu0 %vm411_vm0, %v5955_v41  ;;  %v2001_v38 = vld [vmem:[#allocation2 + $0xf1] sm:$0xff] }
 0x110   : > { %v6902_v41 = vld [vmem:[#allocation32_spill] sm:$0xff] }
 0x112   : > { %5017 = vmatmul.mubr.msk.f32.gmra.mrb[18].mxu1 %vm411_vm0, %v6227_v36  ;;  %5240 = vmatmul.mubr.msk.f32.vlgmr.msra.gmra.mrb[0].mxu0 %vm411_vm0, %v5971_v45  ;;  %v2000_v36 = vld [vmem:[#allocation2 + $0xe1] sm:$0xff] }
 0x113   : > { %5019 = vmatprep.mubr.msk.f32.mxu1 %vm411_vm0, %v6231_v16  ;;  %5242 = vmatprep.mubr.msk.f32.mxu0 %vm411_vm0, %v5977_v47  ;;  %v3562_v45 = vld [vmem:[#allocation2 + $0x19a] sm:$0xff] }
 0x114   : > { %v6903_v47 = vld [vmem:[#allocation33_spill] sm:$0xff] }
 0x116   : > { %5020 = vmatmul.mubr.msk.f32.gmra.mrb[20].mxu1 %vm411_vm0, %v6242_v43  ;;  %5243 = vmatmul.mubr.msk.f32.gmra.mrb[2].mxu0 %vm411_vm0, %v5990_v48 }
 0x117   : > { %5022 = vmatprep.mubr.msk.f32.mxu1 %vm411_vm0, %v6244_v18  ;;  %5245 = vmatprep.mubr.msk.f32.mxu0 %vm411_vm0, %v5994_v50 }
 0x11a   : > { %5023 = vmatmul.mubr.msk.f32.gmra.mrb[22].mxu1 %vm411_vm0, %v6254_v22  ;;  %5246 = vmatmul.mubr.msk.f32.gmra.mrb[4].mxu0 %vm411_vm0, %v6006_v52 }
 0x11b   : > { %5025 = vmatprep.mubr.msk.f32.mxu1 %vm411_vm0, %v6256_v19  ;;  %5248 = vmatprep.mubr.msk.f32.mxu0 %vm411_vm0, %v6010_v54 }
 0x11e   : > { %5026 = vmatmul.mubr.msk.f32.gmra.mrb[24].mxu1 %vm411_vm0, %v6266_v28  ;;  %5249 = vmatmul.mubr.msk.f32.gmra.mrb[6].mxu0 %vm411_vm0, %v6022_v56 }
 0x11f   : > { %5028 = vmatprep.mubr.msk.f32.mxu1 %vm411_vm0, %v6268_v24  ;;  %5251 = vmatprep.mubr.msk.f32.mxu0 %vm411_vm0, %v6026_v58 }
 0x122   : > { %5029 = vmatmul.mubr.msk.f32.gmra.mrb[26].mxu1 %vm411_vm0, %v6278_v61  ;;  %5252 = vmatmul.mubr.msk.f32.gmra.mrb[8].mxu0 %vm411_vm0, %v6038_v60 }
 0x123   : > { %5031 = vmatprep.mubr.msk.f32.mxu1 %vm411_vm0, %v6280_v9  ;;  %5254 = vmatprep.mubr.msk.f32.mxu0 %vm411_vm0, %v6042_v63 }
 0x126   : > { %5032 = vmatmul.mubr.msk.f32.gmra.mrb[28].mxu1 %vm411_vm0, %v6290_v53  ;;  %5255 = vmatmul.mubr.msk.f32.gmra.mrb[10].mxu0 %vm411_vm0, %v6054_v2 }
 0x127   : > { %5034 = vmatprep.mubr.msk.f32.mxu1 %vm411_vm0, %v6348_v1  ;;  %5257 = vmatprep.mubr.msk.f32.mxu0 %vm411_vm0, %v6056_v7 }
 0x12a   : > { %5035 = vmatmul.mubr.msk.f32.gmra.mrb[30].mxu1 %vm411_vm0, %v6358_v37  ;;  %5258 = vmatmul.mubr.msk.f32.gmra.mrb[12].mxu0 %vm411_vm0, %v6065_v10 }
 0x12b   : > { %5063 = vmatprep.mubr.msk.f32.mxu1 %vm411_vm0, %v1999_v35  ;;  %5260 = vmatprep.mubr.msk.f32.mxu0 %vm411_vm0, %v6069_v12 }
 0x12e   : > { %5064 = vmatmul.mubr.msk.f32.vlgmr.msra.gmra.mrb[16].mxu1 %vm411_vm0, %v2000_v36  ;;  %5261 = vmatmul.mubr.msk.f32.gmra.mrb[14].mxu0 %vm411_vm0, %v6085_v15 }
 0x12f   : > { %5066 = vmatprep.mubr.msk.f32.mxu1 %vm411_vm0, %v2001_v38  ;;  %5263 = vmatprep.mubr.msk.f32.mxu0 %vm411_vm0, %v6090_v17 }
 0x132   : > { %5067 = vmatmul.mubr.msk.f32.gmra.mrb[18].mxu1 %vm411_vm0, %v2002_v40  ;;  %5264 = vmatmul.mubr.msk.f32.gmra.mrb[16].mxu0 %vm411_vm0, %v6103_v27 }
 0x133   : > { %5069 = vmatprep.mubr.msk.f32.mxu1 %vm411_vm0, %v6884_v34  ;;  %5266 = vmatprep.mubr.msk.f32.mxu0 %vm411_vm0, %v6107_v20 }
 0x136   : > { %5070 = vmatmul.mubr.msk.f32.gmra.mrb[20].mxu1 %vm411_vm0, %v6886_v57  ;;  %5267 = vmatmul.mubr.msk.f32.gmra.mrb[18].mxu0 %vm411_vm0, %v6119_v5 }
 0x137   : > { %5072 = vmatprep.mubr.msk.f32.mxu1 %vm411_vm0, %v6888_v39  ;;  %5269 = vmatprep.mubr.msk.f32.mxu0 %vm411_vm0, %v6123_v26 }
 0x13a   : > { %5073 = vmatmul.mubr.msk.f32.gmra.mrb[22].mxu1 %vm411_vm0, %v6890_v42  ;;  %5270 = vmatmul.mubr.msk.f32.gmra.mrb[20].mxu0 %vm411_vm0, %v6135_v3 }
 0x13b   : > { %5075 = vmatprep.mubr.msk.f32.mxu1 %vm411_vm0, %v6892_v62  ;;  %5272 = vmatprep.mubr.msk.f32.mxu0 %vm411_vm0, %v6139_v0 }
 0x13e   : > { %5076 = vmatmul.mubr.msk.f32.gmra.mrb[24].mxu1 %vm411_vm0, %v6894_v21  ;;  %5273 = vmatmul.mubr.msk.f32.gmra.mrb[22].mxu0 %vm411_vm0, %v6151_v59 }
 0x13f   : > { %5078 = vmatprep.mubr.msk.f32.mxu1 %vm411_vm0, %v6896_v29  ;;  %5275 = vmatprep.mubr.msk.f32.mxu0 %vm411_vm0, %v6155_v55 }
 0x142   : > { %5079 = vmatmul.mubr.msk.f32.gmra.mrb[26].mxu1 %vm411_vm0, %v6898_v30  ;;  %5276 = vmatmul.mubr.msk.f32.gmra.mrb[24].mxu0 %vm411_vm0, %v6167_v51 }
 0x143   : > { %5081 = vmatprep.mubr.msk.f32.mxu1 %vm411_vm0, %v6899_v31  ;;  %5278 = vmatprep.mubr.msk.f32.mxu0 %vm411_vm0, %v6171_v32  ;;  %v3563_v32 = vld [vmem:[#allocation2 + $0x1a2] sm:$0xff] }
 0x146   : > { %5082 = vmatmul.mubr.msk.f32.gmra.mrb[28].mxu1 %vm411_vm0, %v6901_v13  ;;  %5279 = vmatmul.mubr.msk.f32.gmra.mrb[26].mxu0 %vm411_vm0, %v6873_v25 }
 0x147   : > { %5084 = vmatprep.mubr.msk.f32.mxu1 %vm411_vm0, %v6482_v33  ;;  %5281 = vmatprep.mubr.msk.f32.mxu0 %vm411_vm0, %v6902_v41 }
 0x14a   : > { %5085 = vmatmul.mubr.msk.f32.gmra.mrb[30].mxu1 %vm411_vm0, %v6492_v46  ;;  %5282 = vmatmul.mubr.msk.f32.gmra.mrb[28].mxu0 %vm411_vm0, %v6903_v47 }
 0x14b   : > { %5284 = vmatprep.mubr.msk.f32.mxu0 %vm411_vm0, %v3562_v45 }
 0x14e   : > { %5285 = vmatmul.mubr.msk.f32.gmra.mrb[30].mxu0 %vm411_vm0, %v3563_v32 }
 0x1c1   : > { %v4991_v48 = vpop.f32.mrb[0].mxu1 }
 0x1c2   : > { %v1792_v50 = vpop.f32.mrb[1].mxu1 }
 0x1c5   : > { %v4994_v51 = vpop.f32.mrb[2].mxu1 }
 0x1c6   : > { %v1802_v52 = vpop.f32.mrb[3].mxu1 }
 0x1c9   : > { %v4997_v53 = vpop.f32.mrb[4].mxu1 }
 0x1ca   : > { %v1812_v54 = vpop.f32.mrb[5].mxu1 }
 0x1cd   : > { %v5000_v55 = vpop.f32.mrb[6].mxu1 }
 0x1ce   : > { %v1822_v56 = vpop.f32.mrb[7].mxu1 }
 0x1d1   : > { %v6622_v58 = vpop.f32.mrb[8].mxu1 }
 0x1d2   : > { %v6624_v59 = vpop.f32.mrb[9].mxu1 }
 0x1d5   : > { %v6626_v60 = vpop.f32.mrb[10].mxu1 }
 0x1d6   : > { %v6628_v61 = vpop.f32.mrb[11].mxu1 }
 0x1d9   : > { %v6630_v63 = vpop.f32.mrb[12].mxu1 }
 0x1da   : > { %v6632_v0 = vpop.f32.mrb[13].mxu1 }
 0x1dd   : > { %v6634_v2 = vpop.f32.mrb[14].mxu1 }
 0x1de   : > { %v6636_v7 = vpop.f32.mrb[15].mxu1 }
 0x1e5   : > { %v5241_v10 = vpop.f32.mrb[0].mxu0 }
 0x1e6   : > { %v5289_v11 = vadd.f32 %v5241_v10, %v4991_v48  ;;  %v3728_v12 = vpop.f32.mrb[1].mxu0 }
 0x1e7   : > { %v5290_v14 = vadd.f32 %v3728_v12, %v1792_v50 }
 0x1e8   : > { %3920 = vst.msk [vmem:[%s6643_s9 + $0x8] sm:$0xff] %vm411_vm0, %v5289_v11  ;;  %v3952_v15 = vsel %vm411_vm0, %v5289_v11, 0.0  ;;  %v4023_v16 = vmul.f32 %v5289_v11, %v5289_v11 }
 0x1e9   : > { %3919 = vst.msk [vmem:[%s6643_s9] sm:$0xff] %vm411_vm0, %v5290_v14  ;;  %v3951_v17 = vsel %vm411_vm0, %v5290_v14, 0.0  ;;  %v4022_v18 = vmul.f32 %v5290_v14, %v5290_v14  ;;  %v5244_v27 = vpop.f32.mrb[2].mxu0 }
 0x1ea   : > { %v4055_v19 = vsel %vm411_vm0, %v4023_v16, 0.0  ;;  %v3953_v20 = vadd.f32 %v3952_v15, %v3951_v17  ;;  %v5291_v22 = vadd.f32 %v5244_v27, %v4994_v51  ;;  %v3738_v5 = vpop.f32.mrb[3].mxu0 }
 0x1eb   : > { %v4054_v24 = vsel %vm411_vm0, %v4022_v18, 0.0  ;;  %v5292_v26 = vadd.f32 %v3738_v5, %v1802_v52 }
 0x1ec   : > { %v4056_v28 = vadd.f32 %v4055_v19, %v4054_v24  ;;  %3922 = vst.msk [vmem:[%s6643_s9 + $0x18] sm:$0xff] %vm411_vm0, %v5291_v22  ;;  %v4025_v3 = vmul.f32 %v5291_v22, %v5291_v22  ;;  %v3956_v57 = vsel %vm411_vm0, %v5291_v22, 0.0 }
 0x1ed   : > { %3921 = vst.msk [vmem:[%s6643_s9 + $0x10] sm:$0xff] %vm411_vm0, %v5292_v26  ;;  %v3954_v9 = vsel %vm411_vm0, %v5292_v26, 0.0  ;;  %v4024_v43 = vmul.f32 %v5292_v26, %v5292_v26  ;;  %v5247_v1 = vpop.f32.mrb[4].mxu0 }
 0x1ee   : > { %v3955_v37 = vadd.f32 %v3954_v9, %v3953_v20  ;;  %v5293_v25 = vadd.f32 %v5247_v1, %v4997_v53  ;;  %v3748_v34 = vpop.f32.mrb[5].mxu0  ;;  %v4059_v21 = vsel %vm411_vm0, %v4025_v3, 0.0 }
 0x1ef   : > { %v4057_v39 = vsel %vm411_vm0, %v4024_v43, 0.0  ;;  %v5294_v42 = vadd.f32 %v3748_v34, %v1812_v54 }
 0x1f0   : > { %v4058_v62 = vadd.f32 %v4057_v39, %v4056_v28  ;;  %3924 = vst.msk [vmem:[%s6643_s9 + $0x28] sm:$0xff] %vm411_vm0, %v5293_v25  ;;  %v3957_v8 = vadd.f32 %v3956_v57, %v3955_v37  ;;  %v4027_v23 = vmul.f32 %v5293_v25, %v5293_v25  ;;  %v3960_v46 = vsel %vm411_vm0, %v5293_v25, 0.0 }
 0x1f1   : > { %3923 = vst.msk [vmem:[%s6643_s9 + $0x20] sm:$0xff] %vm411_vm0, %v5294_v42  ;;  %v3958_v29 = vsel %vm411_vm0, %v5294_v42, 0.0  ;;  %v4026_v6 = vmul.f32 %v5294_v42, %v5294_v42  ;;  %v5250_v30 = vpop.f32.mrb[6].mxu0 }
 0x1f2   : > { %v3959_v31 = vadd.f32 %v3958_v29, %v3957_v8  ;;  %v4060_v33 = vadd.f32 %v4059_v21, %v4058_v62  ;;  %v5295_v44 = vadd.f32 %v5250_v30, %v5000_v55  ;;  %v3758_v13 = vpop.f32.mrb[7].mxu0  ;;  %v4063_v38 = vsel %vm411_vm0, %v4027_v23, 0.0 }
 0x1f3   : > { %v4061_v4 = vsel %vm411_vm0, %v4026_v6, 0.0  ;;  %v5296_v49 = vadd.f32 %v3758_v13, %v1822_v56 }
 0x1f4   : > { %v4062_v35 = vadd.f32 %v4061_v4, %v4060_v33  ;;  %3926 = vst.msk [vmem:[%s6643_s9 + $0x38] sm:$0xff] %vm411_vm0, %v5295_v44  ;;  %v3961_v36 = vadd.f32 %v3960_v46, %v3959_v31  ;;  %v4029_v40 = vmul.f32 %v5295_v44, %v5295_v44  ;;  %v3964_v52 = vsel %vm411_vm0, %v5295_v44, 0.0 }
 0x1f5   : > { %3925 = vst.msk [vmem:[%s6643_s9 + $0x30] sm:$0xff] %vm411_vm0, %v5296_v49  ;;  %v3962_v41 = vsel %vm411_vm0, %v5296_v49, 0.0  ;;  %v4028_v45 = vmul.f32 %v5296_v49, %v5296_v49  ;;  %v5253_v47 = vpop.f32.mrb[8].mxu0 }
 0x1f6   : > { %v3963_v32 = vadd.f32 %v3962_v41, %v3961_v36  ;;  %v4064_v48 = vadd.f32 %v4063_v38, %v4062_v35  ;;  %v5297_v50 = vadd.f32 %v5253_v47, %v6622_v58  ;;  %v3768_v51 = vpop.f32.mrb[9].mxu0  ;;  %v4067_v10 = vsel %vm411_vm0, %v4029_v40, 0.0 }
 0x1f7   : > { %v4065_v53 = vsel %vm411_vm0, %v4028_v45, 0.0  ;;  %v5298_v54 = vadd.f32 %v3768_v51, %v6624_v59 }
 0x1f8   : > { %v4066_v55 = vadd.f32 %v4065_v53, %v4064_v48  ;;  %3928 = vst.msk [vmem:[%s6643_s9 + $0x48] sm:$0xff] %vm411_vm0, %v5297_v50  ;;  %v3965_v56 = vadd.f32 %v3964_v52, %v3963_v32  ;;  %v4031_v11 = vmul.f32 %v5297_v50, %v5297_v50  ;;  %v3968_v18 = vsel %vm411_vm0, %v5297_v50, 0.0 }
 0x1f9   : > { %3927 = vst.msk [vmem:[%s6643_s9 + $0x40] sm:$0xff] %vm411_vm0, %v5298_v54  ;;  %v3966_v58 = vsel %vm411_vm0, %v5298_v54, 0.0  ;;  %v4030_v12 = vmul.f32 %v5298_v54, %v5298_v54  ;;  %v5256_v14 = vpop.f32.mrb[10].mxu0 }
 0x1fa   : > { %v3967_v15 = vadd.f32 %v3966_v58, %v3965_v56  ;;  %v4068_v16 = vadd.f32 %v4067_v10, %v4066_v55  ;;  %v5299_v17 = vadd.f32 %v5256_v14, %v6626_v60  ;;  %v3778_v59 = vpop.f32.mrb[11].mxu0  ;;  %v4071_v5 = vsel %vm411_vm0, %v4031_v11, 0.0 }
 0x1fb   : > { %v4069_v27 = vsel %vm411_vm0, %v4030_v12, 0.0  ;;  %v5300_v19 = vadd.f32 %v3778_v59, %v6628_v61 }
 0x1fc   : > { %v4070_v20 = vadd.f32 %v4069_v27, %v4068_v16  ;;  %3930 = vst.msk [vmem:[%s6643_s9 + $0x58] sm:$0xff] %vm411_vm0, %v5299_v17  ;;  %v3969_v22 = vadd.f32 %v3968_v18, %v3967_v15  ;;  %v4033_v24 = vmul.f32 %v5299_v17, %v5299_v17  ;;  %v3972_v1 = vsel %vm411_vm0, %v5299_v17, 0.0 }
 0x1fd   : > { %3929 = vst.msk [vmem:[%s6643_s9 + $0x50] sm:$0xff] %vm411_vm0, %v5300_v19  ;;  %v3970_v60 = vsel %vm411_vm0, %v5300_v19, 0.0  ;;  %v4032_v26 = vmul.f32 %v5300_v19, %v5300_v19  ;;  %v5259_v28 = vpop.f32.mrb[12].mxu0 }
 0x1fe   : > { %v3971_v3 = vadd.f32 %v3970_v60, %v3969_v22  ;;  %v4072_v9 = vadd.f32 %v4071_v5, %v4070_v20  ;;  %v5301_v43 = vadd.f32 %v5259_v28, %v6630_v63  ;;  %v3788_v61 = vpop.f32.mrb[13].mxu0  ;;  %v4075_v39 = vsel %vm411_vm0, %v4033_v24, 0.0 }
 0x1ff   : > { %v4073_v37 = vsel %vm411_vm0, %v4032_v26, 0.0  ;;  %v5302_v25 = vadd.f32 %v3788_v61, %v6632_v0 }
 0x200   : > { %v4074_v34 = vadd.f32 %v4073_v37, %v4072_v9  ;;  %3932 = vst.msk [vmem:[%s6643_s9 + $0x68] sm:$0xff] %vm411_vm0, %v5301_v43  ;;  %v3973_v57 = vadd.f32 %v3972_v1, %v3971_v3  ;;  %v4035_v42 = vmul.f32 %v5301_v43, %v5301_v43  ;;  %v3976_v31 = vsel %vm411_vm0, %v5301_v43, 0.0 }
 0x201   : > { %3931 = vst.msk [vmem:[%s6643_s9 + $0x60] sm:$0xff] %vm411_vm0, %v5302_v25  ;;  %v3974_v62 = vsel %vm411_vm0, %v5302_v25, 0.0  ;;  %v4034_v63 = vmul.f32 %v5302_v25, %v5302_v25  ;;  %v5065_v8 = vpop.f32.mrb[16].mxu1  ;;  %v5262_v21 = vpop.f32.mrb[14].mxu0 }
 0x202   : > { %v3975_v23 = vadd.f32 %v3974_v62, %v3973_v57  ;;  %v4076_v29 = vadd.f32 %v4075_v39, %v4074_v34  ;;  %v5303_v0 = vadd.f32 %v5262_v21, %v6634_v2  ;;  %v2259_v6 = vpop.f32.mrb[17].mxu1  ;;  %v3798_v30 = vpop.f32.mrb[15].mxu0  ;;  %v4079_v4 = vsel %vm411_vm0, %v4035_v42, 0.0 }
 0x203   : > { %v4077_v33 = vsel %vm411_vm0, %v4034_v63, 0.0  ;;  %v5304_v44 = vadd.f32 %v3798_v30, %v6636_v7 }
 0x204   : > { %v4078_v13 = vadd.f32 %v4077_v33, %v4076_v29  ;;  %3934 = vst.msk [vmem:[%s6643_s9 + $0x78] sm:$0xff] %vm411_vm0, %v5303_v0  ;;  %v3977_v46 = vadd.f32 %v3976_v31, %v3975_v23  ;;  %v4037_v49 = vmul.f32 %v5303_v0, %v5303_v0  ;;  %v3980_v32 = vsel %vm411_vm0, %v5303_v0, 0.0 }
 0x205   : > { %3933 = vst.msk [vmem:[%s6643_s9 + $0x70] sm:$0xff] %vm411_vm0, %v5304_v44  ;;  %v3978_v2 = vsel %vm411_vm0, %v5304_v44, 0.0  ;;  %v4036_v35 = vmul.f32 %v5304_v44, %v5304_v44  ;;  %v5068_v36 = vpop.f32.mrb[18].mxu1  ;;  %v5265_v38 = vpop.f32.mrb[16].mxu0 }
 0x206   : > { %v3979_v40 = vadd.f32 %v3978_v2, %v3977_v46  ;;  %v4080_v41 = vadd.f32 %v4079_v4, %v4078_v13  ;;  %v5305_v45 = vadd.f32 %v5265_v38, %v5065_v8  ;;  %v2269_v7 = vpop.f32.mrb[19].mxu1  ;;  %v3808_v47 = vpop.f32.mrb[17].mxu0  ;;  %v4083_v53 = vsel %vm411_vm0, %v4037_v49, 0.0 }
 0x207   : > { %v4081_v48 = vsel %vm411_vm0, %v4036_v35, 0.0  ;;  %v5306_v50 = vadd.f32 %v3808_v47, %v2259_v6 }
 0x208   : > { %v4082_v51 = vadd.f32 %v4081_v48, %v4080_v41  ;;  %3936 = vst.msk [vmem:[%s6643_s9 + $0x88] sm:$0xff] %vm411_vm0, %v5305_v45  ;;  %v3981_v52 = vadd.f32 %v3980_v32, %v3979_v40  ;;  %v4039_v54 = vmul.f32 %v5305_v45, %v5305_v45  ;;  %v3984_v17 = vsel %vm411_vm0, %v5305_v45, 0.0 }
 0x209   : > { %3935 = vst.msk [vmem:[%s6643_s9 + $0x80] sm:$0xff] %vm411_vm0, %v5306_v50  ;;  %v3982_v55 = vsel %vm411_vm0, %v5306_v50, 0.0  ;;  %v4038_v56 = vmul.f32 %v5306_v50, %v5306_v50  ;;  %v5071_v10 = vpop.f32.mrb[20].mxu1  ;;  %v5268_v11 = vpop.f32.mrb[18].mxu0 }
 0x20a   : > { %v3983_v58 = vadd.f32 %v3982_v55, %v3981_v52  ;;  %v4084_v12 = vadd.f32 %v4083_v53, %v4082_v51  ;;  %v5307_v14 = vadd.f32 %v5268_v11, %v5068_v36  ;;  %v2279_v15 = vpop.f32.mrb[21].mxu1  ;;  %v3818_v16 = vpop.f32.mrb[19].mxu0  ;;  %v4087_v20 = vsel %vm411_vm0, %v4039_v54, 0.0 }
 0x20b   : > { %v4085_v59 = vsel %vm411_vm0, %v4038_v56, 0.0  ;;  %v5308_v18 = vadd.f32 %v3818_v16, %v2269_v7 }
 0x20c   : > { %v4086_v27 = vadd.f32 %v4085_v59, %v4084_v12  ;;  %3938 = vst.msk [vmem:[%s6643_s9 + $0x98] sm:$0xff] %vm411_vm0, %v5307_v14  ;;  %v3985_v19 = vadd.f32 %v3984_v17, %v3983_v58  ;;  %v4041_v22 = vmul.f32 %v5307_v14, %v5307_v14  ;;  %v3988_v1 = vsel %vm411_vm0, %v5307_v14, 0.0 }
 0x20d   : > { %3937 = vst.msk [vmem:[%s6643_s9 + $0x90] sm:$0xff] %vm411_vm0, %v5308_v18  ;;  %v3986_v5 = vsel %vm411_vm0, %v5308_v18, 0.0  ;;  %v4040_v24 = vmul.f32 %v5308_v18, %v5308_v18  ;;  %v5074_v60 = vpop.f32.mrb[22].mxu1  ;;  %v5271_v26 = vpop.f32.mrb[20].mxu0 }
 0x20e   : > { %v3987_v28 = vadd.f32 %v3986_v5, %v3985_v19  ;;  %v4088_v3 = vadd.f32 %v4087_v20, %v4086_v27  ;;  %v5309_v9 = vadd.f32 %v5271_v26, %v5071_v10  ;;  %v2289_v43 = vpop.f32.mrb[23].mxu1  ;;  %v3828_v61 = vpop.f32.mrb[21].mxu0  ;;  %v4091_v39 = vsel %vm411_vm0, %v4041_v22, 0.0 }
 0x20f   : > { %v4089_v37 = vsel %vm411_vm0, %v4040_v24, 0.0  ;;  %v5310_v25 = vadd.f32 %v3828_v61, %v2279_v15 }
 0x210   : > { %v4090_v34 = vadd.f32 %v4089_v37, %v4088_v3  ;;  %3940 = vst.msk [vmem:[%s6643_s9 + $0xa8] sm:$0xff] %vm411_vm0, %v5309_v9  ;;  %v3989_v57 = vadd.f32 %v3988_v1, %v3987_v28  ;;  %v4043_v42 = vmul.f32 %v5309_v9, %v5309_v9  ;;  %v3992_v31 = vsel %vm411_vm0, %v5309_v9, 0.0 }
 0x211   : > { %3939 = vst.msk [vmem:[%s6643_s9 + $0xa0] sm:$0xff] %vm411_vm0, %v5310_v25  ;;  %v3990_v62 = vsel %vm411_vm0, %v5310_v25, 0.0  ;;  %v4042_v63 = vmul.f32 %v5310_v25, %v5310_v25  ;;  %v5077_v8 = vpop.f32.mrb[24].mxu1  ;;  %v5274_v21 = vpop.f32.mrb[22].mxu0 }
 0x212   : > { %v3991_v23 = vadd.f32 %v3990_v62, %v3989_v57  ;;  %v4092_v29 = vadd.f32 %v4091_v39, %v4090_v34  ;;  %v5311_v0 = vadd.f32 %v5274_v21, %v5074_v60  ;;  %v2299_v6 = vpop.f32.mrb[25].mxu1  ;;  %v3838_v30 = vpop.f32.mrb[23].mxu0  ;;  %v4095_v4 = vsel %vm411_vm0, %v4043_v42, 0.0 }
 0x213   : > { %v4093_v33 = vsel %vm411_vm0, %v4042_v63, 0.0  ;;  %v5312_v44 = vadd.f32 %v3838_v30, %v2289_v43 }
 0x214   : > { %v4094_v13 = vadd.f32 %v4093_v33, %v4092_v29  ;;  %3942 = vst.msk [vmem:[%s6643_s9 + $0xb8] sm:$0xff] %vm411_vm0, %v5311_v0  ;;  %v3993_v46 = vadd.f32 %v3992_v31, %v3991_v23  ;;  %v4045_v49 = vmul.f32 %v5311_v0, %v5311_v0  ;;  %v3996_v32 = vsel %vm411_vm0, %v5311_v0, 0.0 }
 0x215   : > { %3941 = vst.msk [vmem:[%s6643_s9 + $0xb0] sm:$0xff] %vm411_vm0, %v5312_v44  ;;  %v3994_v2 = vsel %vm411_vm0, %v5312_v44, 0.0  ;;  %v4044_v35 = vmul.f32 %v5312_v44, %v5312_v44  ;;  %v5080_v36 = vpop.f32.mrb[26].mxu1  ;;  %v5277_v38 = vpop.f32.mrb[24].mxu0 }
 0x216   : > { %v3995_v40 = vadd.f32 %v3994_v2, %v3993_v46  ;;  %v4096_v41 = vadd.f32 %v4095_v4, %v4094_v13  ;;  %v5313_v45 = vadd.f32 %v5277_v38, %v5077_v8  ;;  %v2309_v7 = vpop.f32.mrb[27].mxu1  ;;  %v3848_v47 = vpop.f32.mrb[25].mxu0  ;;  %v4099_v53 = vsel %vm411_vm0, %v4045_v49, 0.0 }
 0x217   : > { %v4097_v48 = vsel %vm411_vm0, %v4044_v35, 0.0  ;;  %v5314_v50 = vadd.f32 %v3848_v47, %v2299_v6 }
 0x218   : > { %v4098_v51 = vadd.f32 %v4097_v48, %v4096_v41  ;;  %3944 = vst.msk [vmem:[%s6643_s9 + $0xc8] sm:$0xff] %vm411_vm0, %v5313_v45  ;;  %v3997_v52 = vadd.f32 %v3996_v32, %v3995_v40  ;;  %v4047_v54 = vmul.f32 %v5313_v45, %v5313_v45  ;;  %v4000_v17 = vsel %vm411_vm0, %v5313_v45, 0.0 }
 0x219   : > { %3943 = vst.msk [vmem:[%s6643_s9 + $0xc0] sm:$0xff] %vm411_vm0, %v5314_v50  ;;  %v3998_v55 = vsel %vm411_vm0, %v5314_v50, 0.0  ;;  %v4046_v56 = vmul.f32 %v5314_v50, %v5314_v50  ;;  %v5083_v10 = vpop.f32.mrb[28].mxu1  ;;  %v5280_v11 = vpop.f32.mrb[26].mxu0 }
 0x21a   : > { %v3999_v58 = vadd.f32 %v3998_v55, %v3997_v52  ;;  %v4100_v12 = vadd.f32 %v4099_v53, %v4098_v51  ;;  %v5315_v14 = vadd.f32 %v5280_v11, %v5080_v36  ;;  %v2319_v15 = vpop.f32.mrb[29].mxu1  ;;  %v3858_v16 = vpop.f32.mrb[27].mxu0  ;;  %v4103_v20 = vsel %vm411_vm0, %v4047_v54, 0.0 }
 0x21b   : > { %v4101_v59 = vsel %vm411_vm0, %v4046_v56, 0.0  ;;  %v5316_v18 = vadd.f32 %v3858_v16, %v2309_v7 }
 0x21c   : > { %v4102_v27 = vadd.f32 %v4101_v59, %v4100_v12  ;;  %3946 = vst.msk [vmem:[%s6643_s9 + $0xd8] sm:$0xff] %vm411_vm0, %v5315_v14  ;;  %v4001_v19 = vadd.f32 %v4000_v17, %v3999_v58  ;;  %v4049_v22 = vmul.f32 %v5315_v14, %v5315_v14  ;;  %v4004_v1 = vsel %vm411_vm0, %v5315_v14, 0.0 }
 0x21d   : > { %3945 = vst.msk [vmem:[%s6643_s9 + $0xd0] sm:$0xff] %vm411_vm0, %v5316_v18  ;;  %v4002_v5 = vsel %vm411_vm0, %v5316_v18, 0.0  ;;  %v4048_v24 = vmul.f32 %v5316_v18, %v5316_v18  ;;  %v5086_v60 = vpop.f32.mrb[30].mxu1  ;;  %v5283_v26 = vpop.f32.mrb[28].mxu0 }
 0x21e   : > { %v4003_v28 = vadd.f32 %v4002_v5, %v4001_v19  ;;  %v4104_v3 = vadd.f32 %v4103_v20, %v4102_v27  ;;  %v5317_v9 = vadd.f32 %v5283_v26, %v5083_v10  ;;  %v2329_v43 = vpop.f32.mrb[31].mxu1  ;;  %v3868_v61 = vpop.f32.mrb[29].mxu0  ;;  %v4107_v39 = vsel %vm411_vm0, %v4049_v22, 0.0 }
 0x21f   : > { %v4105_v37 = vsel %vm411_vm0, %v4048_v24, 0.0  ;;  %v5318_v25 = vadd.f32 %v3868_v61, %v2319_v15 }
 0x220   : > { %v4106_v34 = vadd.f32 %v4105_v37, %v4104_v3  ;;  %3948 = vst.msk [vmem:[%s6643_s9 + $0xe8] sm:$0xff] %vm411_vm0, %v5317_v9  ;;  %v4005_v57 = vadd.f32 %v4004_v1, %v4003_v28  ;;  %v4051_v42 = vmul.f32 %v5317_v9, %v5317_v9  ;;  %v4008_v6 = vsel %vm411_vm0, %v5317_v9, 0.0 }
 0x221   : > { %3947 = vst.msk [vmem:[%s6643_s9 + $0xe0] sm:$0xff] %vm411_vm0, %v5318_v25  ;;  %v4006_v62 = vsel %vm411_vm0, %v5318_v25, 0.0  ;;  %v4050_v63 = vmul.f32 %v5318_v25, %v5318_v25  ;;  %v5286_v8 = vpop.f32.mrb[30].mxu0 }
 0x222   : > { %v4007_v21 = vadd.f32 %v4006_v62, %v4005_v57  ;;  %v4108_v23 = vadd.f32 %v4107_v39, %v4106_v34  ;;  %v5319_v29 = vadd.f32 %v5286_v8, %v5086_v60  ;;  %v3878_v0 = vpop.f32.mrb[31].mxu0  ;;  %v4111_v13 = vsel %vm411_vm0, %v4051_v42, 0.0 }
 0x223   : > { %v4109_v30 = vsel %vm411_vm0, %v4050_v63, 0.0  ;;  %v5320_v31 = vadd.f32 %v3878_v0, %v2329_v43 }
 0x224   : > { %v4110_v33 = vadd.f32 %v4109_v30, %v4108_v23  ;;  %3950 = vst.msk [vmem:[%s6643_s9 + $0xf8] sm:$0xff] %vm411_vm0, %v5319_v29  ;;  %v4009_v44 = vadd.f32 %v4008_v6, %v4007_v21  ;;  %v4053_v46 = vmul.f32 %v5319_v29, %v5319_v29  ;;  %v4012_v36 = vsel %vm411_vm0, %v5319_v29, 0.0 }
 0x225   : > { %3949 = vst.msk [vmem:[%s6643_s9 + $0xf0] sm:$0xff] %vm411_vm0, %v5320_v31  ;;  %v4010_v4 = vsel %vm411_vm0, %v5320_v31, 0.0  ;;  %v4052_v49 = vmul.f32 %v5320_v31, %v5320_v31 }
 0x226   : > { %v4011_v2 = vadd.f32 %v4010_v4, %v4009_v44  ;;  %v4112_v35 = vadd.f32 %v4111_v13, %v4110_v33  ;;  %v4115_v45 = vsel %vm411_vm0, %v4053_v46, 0.0 }
 0x227   : > { %v4113_v38 = vsel %vm411_vm0, %v4052_v49, 0.0 }
 0x228   : > { %v4013_v40 = vadd.f32 %v4012_v36, %v4011_v2  ;;  %v4114_v41 = vadd.f32 %v4113_v38, %v4112_v35 }
 0x22a   : > { %v4014_v7 = vrot.slane %v4013_v40, 4  ;;  %v4116_v47 = vadd.f32 %v4115_v45, %v4114_v41 }
 0x22c   : > { %v4015_v32 = vadd.f32 %v4014_v7, %v4013_v40  ;;  %v4117_v48 = vrot.slane %v4116_v47, 4 }
 0x22e   : > { %v4016_v50 = vrot.slane %v4015_v32, 2  ;;  %v4118_v51 = vadd.f32 %v4117_v48, %v4116_v47 }
 0x230   : > { %v4017_v52 = vadd.f32 %v4016_v50, %v4015_v32  ;;  %v4119_v53 = vrot.slane %v4118_v51, 2 }
 0x232   : > { %v4018_v54 = vrot.slane %v4017_v52, 1  ;;  %v4120_v55 = vadd.f32 %v4119_v53, %v4118_v51 }
 0x234   : > { %v4019_v56 = vadd.f32 %v4018_v54, %v4017_v52  ;;  %v4121_v10 = vrot.slane %v4120_v55, 1 }
 0x236   : > { %4021 = vst.msk [vmem:[%s265_s11] sm:$0x1] %vm4020_vm2, %v4019_v56  ;;  %v4122_v11 = vadd.f32 %v4121_v10, %v4120_v55 }
 0x238   : > { %4123 = vst.msk [vmem:[%s268_s14] sm:$0x1] %vm4020_vm2, %v4122_v11 }
 0x239 PF: > { %s17_s21 = sadd.s32 1, %s5561_s21  }
 0x23a   : > { %p14_p4 = scmp.ge.s32.totalorder %s17_s21, 4  }
 0x23c   :  { %16 = sbr.rel (!%p14_p4) target bundleno = 1 (0x1), region = 100 }

</bundles_post_ra>
